<compile_context>
chip_gen: v7x
topology: tpu7x:2x2x1
jax: 0.10.0
libtpu: 0.0.40
codegen_flags: <defaults>
</compile_context>

<pallas_src>
import jax
import jax.numpy as jnp
import numpy as np
from jax.experimental import pallas as pl
from jax.experimental.pallas import tpu as pltpu


# --------------------------- generation-aware sizing ----------------------------------

def _physical_vmem_bytes():
    try:
        v = int(pltpu.get_tpu_info().vmem_capacity_bytes)
        if v > 0:
            return v
    except Exception:
        pass
    return 64 * 1024 * 1024          # conservative: assume the smallest (v7x-sized) VMEM


_VMEM_PHYS = _physical_vmem_bytes()
# Scoped limit ~= 3/4 of physical (about 96 MiB on v5e/v6e, 48 MiB on v7x), cap 100 MiB.
_VMEM_LIMIT = min(100 * 1024 * 1024, (_VMEM_PHYS * 3) // 4)
_BIG_VMEM = _VMEM_LIMIT >= 64 * 1024 * 1024
_FUSED_TILE_B = 128 if _BIG_VMEM else 64      # fused conv+mlp kernel: rows = images
_HEAD_TILE_B = 512 if _BIG_VMEM else 256      # fallback head kernel: rows = images
_CONV_TILE_M = 2048                           # fallback conv kernel: rows = B*Ho*Wo


def _pick_tile(total, cap, align=8):
    """Largest `align`-aligned tile <= cap.  If the whole problem fits in one tile but is
    large enough, split it in two so the 'parallel' grid axis can occupy both TensorCores
    on v7x (harmless on single-TC v5e/v6e)."""
    if total <= cap:
        if total >= 4 * align and total % (2 * align) == 0:
            return total // 2
        return total
    return max(align, (cap // align) * align)


_COMPILER_PARAMS = pltpu.CompilerParams(
    dimension_semantics=("parallel",),
    vmem_limit_bytes=_VMEM_LIMIT,
)


# ------------------------------- Pallas kernels ----------------------------------------


def _fused_kernel(pa_ref, pc_ref,
                  wca_ref, bca_ref, w1a_ref, b1a_ref, w2a_ref, b2a_ref,
                  wcc_ref, bcc_ref, w1c_ref, b1c_ref, w2c_ref, b2c_ref,
                  wv_ref, bv_ref,
                  ha_ref, v_ref):
    """conv3x3+ReLU -> flatten -> fc1+ReLU -> fc2+ReLU for both branches + critic_linear,
    for one batch tile.  Every intermediate stays in VMEM (nothing written back to HBM
    except hidden_actor and value)."""
    tb = ha_ref.shape[0]

    def branch(p_ref, wc_ref, bc_ref, w1_ref, b1_ref, w2_ref, b2_ref):
        # conv as matmul over im2col rows (tb*P, K); 1/255 is folded into wc at prep time.
        conv = jnp.dot(p_ref[...], wc_ref[...], preferred_element_type=jnp.float32)
        conv = jnp.maximum(conv + bc_ref[...], 0.0).astype(jnp.bfloat16)    # (tb*P, 32)
        # In-VMEM relayout to per-image rows.  Column order (ho, wo, cout) matches the
        # permuted fc1 weight rows, so this is a plain row-major reshape.
        x = conv.reshape(tb, w1_ref.shape[0])                               # (tb, P*32)
        h = jnp.dot(x, w1_ref[...], preferred_element_type=jnp.float32)
        h = jnp.maximum(h + b1_ref[...], 0.0).astype(jnp.bfloat16)
        h = jnp.dot(h, w2_ref[...], preferred_element_type=jnp.float32)
        return jnp.maximum(h + b2_ref[...], 0.0)                            # (tb, H) f32

    ha_ref[...] = branch(pa_ref, wca_ref, bca_ref, w1a_ref, b1a_ref, w2a_ref, b2a_ref)
    hc = branch(pc_ref, wcc_ref, bcc_ref, w1c_ref, b1c_ref, w2c_ref, b2c_ref)
    # hidden_critic is intentionally NOT an output: it only feeds the value head here.
    v_ref[...] = jnp.dot(hc.astype(jnp.bfloat16), wv_ref[...],
                         preferred_element_type=jnp.float32) + bv_ref[...]


def fused_conv_mlp(patches_a, patches_c, prep, B, P):
    """One pallas_call computing (hidden_actor, value) for both branches."""
    a, c = prep["actor"], prep["critic"]
    Ka = patches_a.shape[1]
    Kc = patches_c.shape[1]
    F, H = a["w1"].shape
    assert F == P * 32
    tb = _pick_tile(B, _FUSED_TILE_B)
    grid = (pl.cdiv(B, tb),)
    row = lambda i: (i, 0)
    full = lambda i: (0, 0)
    return pl.pallas_call(
        _fused_kernel,
        out_shape=(jax.ShapeDtypeStruct((B, H), jnp.float32),
                   jax.ShapeDtypeStruct((B, 1), jnp.float32)),
        grid=grid,
        in_specs=[
            pl.BlockSpec((tb * P, Ka), row),
            pl.BlockSpec((tb * P, Kc), row),
            pl.BlockSpec((Ka, 32), full), pl.BlockSpec((1, 32), full),
            pl.BlockSpec((F, H), full), pl.BlockSpec((1, H), full),
            pl.BlockSpec((H, H), full), pl.BlockSpec((1, H), full),
            pl.BlockSpec((Kc, 32), full), pl.BlockSpec((1, 32), full),
            pl.BlockSpec((F, H), full), pl.BlockSpec((1, H), full),
            pl.BlockSpec((H, H), full), pl.BlockSpec((1, H), full),
            pl.BlockSpec((H, 1), full), pl.BlockSpec((1, 1), full),
        ],
        out_specs=(pl.BlockSpec((tb, H), row), pl.BlockSpec((tb, 1), row)),
        compiler_params=_COMPILER_PARAMS,
    )(patches_a, patches_c,
      a["w_conv"], a["b_conv"], a["w1"], a["b1"], a["w2"], a["b2"],
      c["w_conv"], c["b_conv"], c["w1"], c["b1"], c["w2"], c["b2"],
      prep["wv"], prep["bv"])


# ----- fallback path: conv kernel -> free reshape -> fused head kernel -----------------


def _conv_mm_kernel(p_ref, w_ref, b_ref, o_ref):
    acc = jnp.dot(p_ref[...], w_ref[...], preferred_element_type=jnp.float32)
    o_ref[...] = jnp.maximum(acc + b_ref[...], 0.0).astype(o_ref.dtype)


def conv3x3_as_matmul(patches, w_mat, bias):
    """relu(patches @ w_mat + bias) -> bf16, tiled over rows M = B*Ho*Wo."""
    M, K = patches.shape
    N = w_mat.shape[1]
    tm = _pick_tile(M, _CONV_TILE_M)
    grid = (pl.cdiv(M, tm),)
    return pl.pallas_call(
        _conv_mm_kernel,
        out_shape=jax.ShapeDtypeStruct((M, N), jnp.bfloat16),
        grid=grid,
        in_specs=[
            pl.BlockSpec((tm, K), lambda i: (i, 0)),
            pl.BlockSpec((K, N), lambda i: (0, 0)),
            pl.BlockSpec((1, N), lambda i: (0, 0)),
        ],
        out_specs=pl.BlockSpec((tm, N), lambda i: (i, 0)),
        compiler_params=_COMPILER_PARAMS,
    )(patches, w_mat, bias)


def _head_kernel(xa_ref, xc_ref,
                 w1a_ref, b1a_ref, w2a_ref, b2a_ref,
                 w1c_ref, b1c_ref, w2c_ref, b2c_ref,
                 wv_ref, bv_ref,
                 ha_ref, v_ref):
    def mlp(x, w1_ref, b1_ref, w2_ref, b2_ref):
        h = jnp.dot(x, w1_ref[...], preferred_element_type=jnp.float32)
        h = jnp.maximum(h + b1_ref[...], 0.0).astype(jnp.bfloat16)
        h = jnp.dot(h, w2_ref[...], preferred_element_type=jnp.float32)
        return jnp.maximum(h + b2_ref[...], 0.0)

    ha_ref[...] = mlp(xa_ref[...], w1a_ref, b1a_ref, w2a_ref, b2a_ref)
    hc = mlp(xc_ref[...], w1c_ref, b1c_ref, w2c_ref, b2c_ref)
    v_ref[...] = jnp.dot(hc.astype(jnp.bfloat16), wv_ref[...],
                         preferred_element_type=jnp.float32) + bv_ref[...]


def fused_heads(xa, xc, prep):
    B, F = xa.shape
    a, c = prep["actor"], prep["critic"]
    H = a["w2"].shape[1]
    tb = _pick_tile(B, _HEAD_TILE_B)
    grid = (pl.cdiv(B, tb),)
    row = lambda i: (i, 0)
    full = lambda i: (0, 0)
    return pl.pallas_call(
        _head_kernel,
        out_shape=(jax.ShapeDtypeStruct((B, H), jnp.float32),
                   jax.ShapeDtypeStruct((B, 1), jnp.float32)),
        grid=grid,
        in_specs=[
            pl.BlockSpec((tb, F), row), pl.BlockSpec((tb, F), row),
            pl.BlockSpec((F, H), full), pl.BlockSpec((1, H), full),
            pl.BlockSpec((H, H), full), pl.BlockSpec((1, H), full),
            pl.BlockSpec((F, H), full), pl.BlockSpec((1, H), full),
            pl.BlockSpec((H, H), full), pl.BlockSpec((1, H), full),
            pl.BlockSpec((H, 1), full), pl.BlockSpec((1, 1), full),
        ],
        out_specs=(pl.BlockSpec((tb, H), row), pl.BlockSpec((tb, 1), row)),
        compiler_params=_COMPILER_PARAMS,
    )(xa, xc,
      a["w1"], a["b1"], a["w2"], a["b2"],
      c["w1"], c["b1"], c["w2"], c["b2"],
      prep["wv"], prep["bv"])


# ----------------------------- JAX glue -------------------------------------------------


def im2col_3x3(x_nchw):
    """(B, C, H, W) -> patches (B*Ho*Wo, C*9); rows ordered (b, ho, wo), cols (c, kh, kw).
    TODO(synk): replace with an in-kernel shifted-accumulation conv to avoid the ~9x read
    inflation of the (small) raw input; that needs in-kernel cross-lane relayouts that are
    riskier to lower than the fused reshape, so the gather stays on the XLA side (in bf16
    to halve its traffic)."""
    B, C, H, W = x_nchw.shape
    Ho, Wo = H - 2, W - 2
    cols = [x_nchw[:, :, kh:kh + Ho, kw:kw + Wo] for kh in range(3) for kw in range(3)]
    p = jnp.stack(cols, axis=2).reshape(B, C, 3, 3, Ho, Wo)
    p = jnp.transpose(p, (0, 4, 5, 1, 2, 3)).reshape(B * Ho * Wo, C * 9)
    return p, Ho, Wo


def prepare_params(params, num_image):
    """One-time layout / constant folding (done outside the jitted forward).

    * conv weight (Cout, Cin, 3, 3) -> (Cin*9, Cout) matmul layout with the 1/255 input
      scale folded in, bf16;
    * fc1 weight rows permuted from PyTorch Flatten() order (cout, ho, wo) to the kernels'
      natural (ho, wo, cout) order, bf16 (no runtime transpose needed);
    * fc2 / value weights bf16; all biases kept f32 (added after f32 accumulation).
    """
    Ho = Wo = num_image - 2

    def prep_branch(conv_w, conv_b, fc1_w, fc1_b, fc2_w, fc2_b):
        cout, cin = conv_w.shape[0], conv_w.shape[1]
        H = fc1_w.shape[1]
        w_conv = (conv_w.reshape(cout, cin * 9).T * (1.0 / 255.0)).astype(jnp.bfloat16)
        b_conv = conv_b.reshape(1, cout).astype(jnp.float32)
        w1 = (fc1_w.reshape(cout, Ho, Wo, H)
              .transpose(1, 2, 0, 3)
              .reshape(Ho * Wo * cout, H)).astype(jnp.bfloat16)
        return dict(
            w_conv=w_conv, b_conv=b_conv,
            w1=w1, b1=fc1_b.reshape(1, H).astype(jnp.float32),
            w2=fc2_w.astype(jnp.bfloat16), b2=fc2_b.reshape(1, H).astype(jnp.float32),
        )

    return {
        "actor": prep_branch(params["a_conv_w"], params["a_conv_b"],
                             params["a_fc1_w"], params["a_fc1_b"],
                             params["a_fc2_w"], params["a_fc2_b"]),
        "critic": prep_branch(params["c_conv_w"], params["c_conv_b"],
                              params["c_fc1_w"], params["c_fc1_b"],
                              params["c_fc2_w"], params["c_fc2_b"]),
        "wv": params["critic_linear_w"].astype(jnp.bfloat16),
        "bv": params["critic_linear_b"].reshape(1, 1).astype(jnp.float32),
    }


def cnn_base_forward_fused(prep, agent_id, share_inputs, inputs,
                           rnn_hxs_actor, rnn_hxs_critic, rnn_c_actor, rnn_c_critic,
                           masks):
    """Primary path: single fused pallas_call per forward."""
    B = inputs.shape[0]
    pa, Ho, Wo = im2col_3x3(inputs.astype(jnp.bfloat16))
    pc, _, _ = im2col_3x3(share_inputs.astype(jnp.bfloat16))
    ha, value = fused_conv_mlp(pa, pc, prep, B, Ho * Wo)
    # Not recurrent under default flags: hidden states pass through unchanged.
    return value, ha, rnn_hxs_actor, rnn_hxs_critic


def cnn_base_forward_split(prep, agent_id, share_inputs, inputs,
                           rnn_hxs_actor, rnn_hxs_critic, rnn_c_actor, rnn_c_critic,
                           masks):
    """Fallback path: conv kernel -> metadata-only reshape -> fused head kernel.
    Same math as the fused path (bf16 handoff), one extra HBM round trip."""
    B = inputs.shape[0]

    def conv_branch(x_nchw, bp):
        patches, Ho, Wo = im2col_3x3(x_nchw.astype(jnp.bfloat16))
        out = conv3x3_as_matmul(patches, bp["w_conv"], bp["b_conv"])   # (B*Ho*Wo, 32) bf16
        # Rows are ordered (b, ho, wo) so this reshape is a free row-major relabel that
        # exactly matches the permuted fc1 weight rows (no transpose).
        return out.reshape(B, Ho * Wo * out.shape[1])

    xa = conv_branch(inputs, prep["actor"])
    xc = conv_branch(share_inputs, prep["critic"])
    ha, value = fused_heads(xa, xc, prep)
    return value, ha, rnn_hxs_actor, rnn_hxs_critic


# ----------------------------- References ----------------------------------------------


def pipeline_reference(prep, share_inputs, inputs):
    """Pure-jnp golden model of the kernels' exact arithmetic (same folded bf16 weights,
    same casts, f32 accumulation).  Differences vs. the Pallas output are summation-order
    rounding only, so a tight tolerance catches any layout / permutation / tiling bug."""
    hp = jax.lax.Precision.HIGHEST
    f32 = lambda t: t.astype(jnp.float32)
    B = inputs.shape[0]

    def branch(x, bp):
        p, _, _ = im2col_3x3(x.astype(jnp.bfloat16))
        conv = jnp.dot(f32(p), f32(bp["w_conv"]), precision=hp) + bp["b_conv"]
        conv = jnp.maximum(conv, 0.0).astype(jnp.bfloat16)
        xx = conv.reshape(B, -1)
        h = jnp.dot(f32(xx), f32(bp["w1"]), precision=hp) + bp["b1"]
        h = jnp.maximum(h, 0.0).astype(jnp.bfloat16)
        h = jnp.dot(f32(h), f32(bp["w2"]), precision=hp) + bp["b2"]
        return jnp.maximum(h, 0.0)

    ha = branch(inputs, prep["actor"])
    hc = branch(share_inputs, prep["critic"])
    v = (jnp.dot(f32(hc.astype(jnp.bfloat16)), f32(prep["wv"]), precision=hp)
         + prep["bv"])
    return v, ha


def reference_forward(params, share_inputs, inputs):
    """Pure-f32 reference of the PyTorch CNNBase forward (default flags)."""
    hp = jax.lax.Precision.HIGHEST

    def branch(x, cw, cb, w1, b1, w2, b2):
        x = x / 255.0
        y = jax.lax.conv_general_dilated(
            x, cw, window_strides=(1, 1), padding="VALID",
            dimension_numbers=("NCHW", "OIHW", "NCHW"), precision=hp)
        y = jnp.maximum(y + cb.reshape(1, -1, 1, 1), 0.0)
        y = y.reshape(y.shape[0], -1)                # PyTorch Flatten(): (cout, ho, wo)
        y = jnp.maximum(jnp.dot(y, w1, precision=hp) + b1, 0.0)
        y = jnp.maximum(jnp.dot(y, w2, precision=hp) + b2, 0.0)
        return y

    ha = branch(inputs, params["a_conv_w"], params["a_conv_b"],
                params["a_fc1_w"], params["a_fc1_b"],
                params["a_fc2_w"], params["a_fc2_b"])
    hc = branch(share_inputs, params["c_conv_w"], params["c_conv_b"],
                params["c_fc1_w"], params["c_fc1_b"],
                params["c_fc2_w"], params["c_fc2_b"])
    v = jnp.dot(hc, params["critic_linear_w"], precision=hp) + params["critic_linear_b"]
    return v, ha


# ----------------------------- Parameter init ------------------------------------------


def init_params(key, num_inputs, num_agents, num_image, hidden_size):
    """Deterministic synthetic parameters matching CNNBase.__init__ shapes (PyTorch
    layout: conv (Cout, Cin, 3, 3); linear weights as (in_features, out_features) with
    fc1 row order = NCHW Flatten() order (cout, ho, wo))."""
    Ho = num_image - 3 + 1
    flat = 32 * Ho * Ho
    ks = jax.random.split(key, 8)

    def w(k, shape, s):
        return jax.random.normal(k, shape, jnp.float32) * s

    p = {}
    p["a_conv_w"] = w(ks[0], (32, num_inputs, 3, 3), 0.1)
    p["a_conv_b"] = jnp.zeros((32,), jnp.float32)
    p["a_fc1_w"] = w(ks[1], (flat, hidden_size), 0.02)
    p["a_fc1_b"] = jnp.zeros((hidden_size,), jnp.float32)
    p["a_fc2_w"] = w(ks[2], (hidden_size, hidden_size), 0.1)
    p["a_fc2_b"] = jnp.zeros((hidden_size,), jnp.float32)
    p["c_conv_w"] = w(ks[3], (32, num_inputs * num_agents, 3, 3), 0.1)
    p["c_conv_b"] = jnp.zeros((32,), jnp.float32)
    p["c_fc1_w"] = w(ks[4], (flat, hidden_size), 0.02)
    p["c_fc1_b"] = jnp.zeros((hidden_size,), jnp.float32)
    p["c_fc2_w"] = w(ks[5], (hidden_size, hidden_size), 0.1)
    p["c_fc2_b"] = jnp.zeros((hidden_size,), jnp.float32)
    p["critic_linear_w"] = w(ks[6], (hidden_size, 1), 0.1)
    p["critic_linear_b"] = jnp.zeros((1,), jnp.float32)
    return p


# ----------------------------- Main -----------------------------------------------------

if __name__ == "__main__":
    B = 2
    num_inputs = 4
    num_agents = 2
    num_image = 16
    hidden_size = 32

    key = jax.random.PRNGKey(0)
    k_in, k_share, k_hxa, k_hxc, k_params = jax.random.split(key, 5)

    inputs = jax.random.uniform(k_in, (B, num_inputs, num_image, num_image),
                                jnp.float32, 0.0, 255.0)
    share_inputs = jax.random.uniform(
        k_share, (B, num_inputs * num_agents, num_image, num_image),
        jnp.float32, 0.0, 255.0)
    rnn_hxs_actor = jax.random.normal(k_hxa, (B, hidden_size), jnp.float32)
    rnn_hxs_critic = jax.random.normal(k_hxc, (B, hidden_size), jnp.float32)
    rnn_c_actor = jnp.zeros((B, hidden_size), jnp.float32)
    rnn_c_critic = jnp.zeros((B, hidden_size), jnp.float32)
    masks = jnp.ones((B, 1), jnp.float32)
    agent_id = jnp.zeros((B, 1), jnp.int32)

    params = init_params(k_params, num_inputs, num_agents, num_image, hidden_size)
    # One-time weight layout folding (flatten permutation, 1/255 scale, bf16 casts).
    prep = prepare_params(params, num_image)

    args = (prep, agent_id, share_inputs, inputs,
            rnn_hxs_actor, rnn_hxs_critic, rnn_c_actor, rnn_c_critic, masks)

    # Bit-accurate (same bf16 casts / folding) golden model: tight check for layout bugs.
    v_q, ha_q = pipeline_reference(prep, share_inputs, inputs)

    def run_and_check(fn):
        value, ha, hxa, hxc = jax.jit(fn)(*args)
        jax.block_until_ready((value, ha, hxa, hxc))
        np.testing.assert_allclose(np.asarray(ha), np.asarray(ha_q), rtol=2e-3, atol=2e-3)
        np.testing.assert_allclose(np.asarray(value), np.asarray(v_q),
                                   rtol=2e-3, atol=2e-3)
        return value, ha, hxa, hxc

    try:
        value, hidden_actor, hxa, hxc = run_and_check(cnn_base_forward_fused)
    except Exception:
        # Mosaic build without support for the in-kernel (tb*P,32)->(tb,P*32) relayout:
        # fall back to the two-kernel split (identical math, one extra bf16 round trip).
        value, hidden_actor, hxa, hxc = run_and_check(cnn_base_forward_split)

    assert value.shape == (B, 1)
    assert hidden_actor.shape == (B, hidden_size)
    assert hxa.shape == (B, hidden_size) and hxc.shape == (B, hidden_size)

    # Loose end-to-end check against the pure-f32 reference of the PyTorch forward
    # (bf16 operands bound the achievable accuracy here; the tight check above covers
    # layout / permutation correctness).
    v_ref, ha_ref = reference_forward(params, share_inputs, inputs)
    np.testing.assert_allclose(np.asarray(hidden_actor), np.asarray(ha_ref),
                               rtol=5e-2, atol=5e-2)
    np.testing.assert_allclose(np.asarray(value), np.asarray(v_ref),
                               rtol=5e-2, atol=5e-2)

    print("KERNEL_OK")
</pallas_src>

<mosaic_0001>
module attributes {stable_mosaic.version = 11 : i64} {
  func.func @_fused_kernel(%arg0: i32, %arg1: memref<392x36xbf16, #tpu.memory_space<vmem>>, %arg2: memref<392x72xbf16, #tpu.memory_space<vmem>>, %arg3: memref<36x32xbf16, #tpu.memory_space<vmem>>, %arg4: memref<1x32xf32, #tpu.memory_space<vmem>>, %arg5: memref<6272x32xbf16, #tpu.memory_space<vmem>>, %arg6: memref<1x32xf32, #tpu.memory_space<vmem>>, %arg7: memref<32x32xbf16, #tpu.memory_space<vmem>>, %arg8: memref<1x32xf32, #tpu.memory_space<vmem>>, %arg9: memref<72x32xbf16, #tpu.memory_space<vmem>>, %arg10: memref<1x32xf32, #tpu.memory_space<vmem>>, %arg11: memref<6272x32xbf16, #tpu.memory_space<vmem>>, %arg12: memref<1x32xf32, #tpu.memory_space<vmem>>, %arg13: memref<32x32xbf16, #tpu.memory_space<vmem>>, %arg14: memref<1x32xf32, #tpu.memory_space<vmem>>, %arg15: memref<32x1xbf16, #tpu.memory_space<vmem>>, %arg16: memref<1x1xf32, #tpu.memory_space<vmem>>, %arg17: memref<2x32xf32, #tpu.memory_space<vmem>>, %arg18: memref<2x1xf32, #tpu.memory_space<vmem>>) attributes {dimension_semantics = [#tpu.dimension_semantics<parallel>], iteration_bounds = array<i64: 1>, scalar_prefetch = 0 : i64, scratch_operands = 0 : i64, tpu.core_type = #tpu.core_type<tc>, window_params = [{transform_indices = @transform_0, window_bounds = array<i64: 392, 36>}, {transform_indices = @transform_1, window_bounds = array<i64: 392, 72>}, {pipeline_mode = #tpu.pipeline_mode<synchronous>, transform_indices = @transform_2, window_bounds = array<i64: 36, 32>}, {pipeline_mode = #tpu.pipeline_mode<synchronous>, transform_indices = @transform_3, window_bounds = array<i64: 1, 32>}, {pipeline_mode = #tpu.pipeline_mode<synchronous>, transform_indices = @transform_4, window_bounds = array<i64: 6272, 32>}, {pipeline_mode = #tpu.pipeline_mode<synchronous>, transform_indices = @transform_5, window_bounds = array<i64: 1, 32>}, {pipeline_mode = #tpu.pipeline_mode<synchronous>, transform_indices = @transform_6, window_bounds = array<i64: 32, 32>}, {pipeline_mode = #tpu.pipeline_mode<synchronous>, transform_indices = @transform_7, window_bounds = array<i64: 1, 32>}, {pipeline_mode = #tpu.pipeline_mode<synchronous>, transform_indices = @transform_8, window_bounds = array<i64: 72, 32>}, {pipeline_mode = #tpu.pipeline_mode<synchronous>, transform_indices = @transform_9, window_bounds = array<i64: 1, 32>}, {pipeline_mode = #tpu.pipeline_mode<synchronous>, transform_indices = @transform_10, window_bounds = array<i64: 6272, 32>}, {pipeline_mode = #tpu.pipeline_mode<synchronous>, transform_indices = @transform_11, window_bounds = array<i64: 1, 32>}, {pipeline_mode = #tpu.pipeline_mode<synchronous>, transform_indices = @transform_12, window_bounds = array<i64: 32, 32>}, {pipeline_mode = #tpu.pipeline_mode<synchronous>, transform_indices = @transform_13, window_bounds = array<i64: 1, 32>}, {pipeline_mode = #tpu.pipeline_mode<synchronous>, transform_indices = @transform_14, window_bounds = array<i64: 32, 1>}, {pipeline_mode = #tpu.pipeline_mode<synchronous>, transform_indices = @transform_15, window_bounds = array<i64: 1, 1>}, {transform_indices = @transform_16, window_bounds = array<i64: 2, 32>}, {transform_indices = @transform_17, window_bounds = array<i64: 2, 1>}]} {
    %c0 = arith.constant 0 : index
    %c0_0 = arith.constant 0 : index
    %0 = vector.load %arg1[%c0, %c0_0] : memref<392x36xbf16, #tpu.memory_space<vmem>>, vector<392x36xbf16>
    %c0_1 = arith.constant 0 : index
    %c0_2 = arith.constant 0 : index
    %1 = vector.load %arg3[%c0_1, %c0_2] : memref<36x32xbf16, #tpu.memory_space<vmem>>, vector<36x32xbf16>
    %cst = arith.constant dense<0.000000e+00> : vector<392x32xf32>
    %2 = tpu.matmul %0, %1, %cst {dimension_numbers = #tpu.dot_dimension_numbers<[1], [0], [0], [1], [0, 0, 1, 1], [], []>} : vector<392x36xbf16>, vector<36x32xbf16>, vector<392x32xf32> -> vector<392x32xf32>
    %c0_3 = arith.constant 0 : index
    %c0_4 = arith.constant 0 : index
    %3 = vector.load %arg4[%c0_3, %c0_4] : memref<1x32xf32, #tpu.memory_space<vmem>>, vector<1x32xf32>
    %4 = vector.broadcast %3 : vector<1x32xf32> to vector<392x32xf32>
    %5 = arith.addf %2, %4 : vector<392x32xf32>
    %cst_5 = arith.constant 0.000000e+00 : f32
    %6 = vector.broadcast %cst_5 : f32 to vector<392x32xf32>
    %7 = arith.maximumf %5, %6 : vector<392x32xf32>
    %8 = arith.truncf %7 : vector<392x32xf32> to vector<392x32xbf16>
    %9 = vector.shape_cast %8 : vector<392x32xbf16> to vector<2x6272xbf16>
    %c0_6 = arith.constant 0 : index
    %c0_7 = arith.constant 0 : index
    %10 = vector.load %arg5[%c0_6, %c0_7] : memref<6272x32xbf16, #tpu.memory_space<vmem>>, vector<6272x32xbf16>
    %cst_8 = arith.constant dense<0.000000e+00> : vector<2x32xf32>
    %11 = tpu.matmul %9, %10, %cst_8 {dimension_numbers = #tpu.dot_dimension_numbers<[1], [0], [0], [1], [0, 0, 1, 1], [], []>} : vector<2x6272xbf16>, vector<6272x32xbf16>, vector<2x32xf32> -> vector<2x32xf32>
    %c0_9 = arith.constant 0 : index
    %c0_10 = arith.constant 0 : index
    %12 = vector.load %arg6[%c0_9, %c0_10] : memref<1x32xf32, #tpu.memory_space<vmem>>, vector<1x32xf32>
    %13 = vector.broadcast %12 : vector<1x32xf32> to vector<2x32xf32>
    %14 = arith.addf %11, %13 : vector<2x32xf32>
    %cst_11 = arith.constant 0.000000e+00 : f32
    %15 = vector.broadcast %cst_11 : f32 to vector<2x32xf32>
    %16 = arith.maximumf %14, %15 : vector<2x32xf32>
    %17 = arith.truncf %16 : vector<2x32xf32> to vector<2x32xbf16>
    %c0_12 = arith.constant 0 : index
    %c0_13 = arith.constant 0 : index
    %18 = vector.load %arg7[%c0_12, %c0_13] : memref<32x32xbf16, #tpu.memory_space<vmem>>, vector<32x32xbf16>
    %cst_14 = arith.constant dense<0.000000e+00> : vector<2x32xf32>
    %19 = tpu.matmul %17, %18, %cst_14 {dimension_numbers = #tpu.dot_dimension_numbers<[1], [0], [0], [1], [0, 0, 1, 1], [], []>} : vector<2x32xbf16>, vector<32x32xbf16>, vector<2x32xf32> -> vector<2x32xf32>
    %c0_15 = arith.constant 0 : index
    %c0_16 = arith.constant 0 : index
    %20 = vector.load %arg8[%c0_15, %c0_16] : memref<1x32xf32, #tpu.memory_space<vmem>>, vector<1x32xf32>
    %21 = vector.broadcast %20 : vector<1x32xf32> to vector<2x32xf32>
    %22 = arith.addf %19, %21 : vector<2x32xf32>
    %cst_17 = arith.constant 0.000000e+00 : f32
    %23 = vector.broadcast %cst_17 : f32 to vector<2x32xf32>
    %24 = arith.maximumf %22, %23 : vector<2x32xf32>
    %c0_18 = arith.constant 0 : index
    %c0_19 = arith.constant 0 : index
    %25 = vector.load %arg17[%c0_18, %c0_19] : memref<2x32xf32, #tpu.memory_space<vmem>>, vector<2x32xf32>
    tpu.vector_store %arg17[%c0_18, %c0_19], %24 {strides = array<i32>} : memref<2x32xf32, #tpu.memory_space<vmem>>, vector<2x32xf32>,
    %c0_20 = arith.constant 0 : index
    %c0_21 = arith.constant 0 : index
    %26 = vector.load %arg2[%c0_20, %c0_21] : memref<392x72xbf16, #tpu.memory_space<vmem>>, vector<392x72xbf16>
    %c0_22 = arith.constant 0 : index
    %c0_23 = arith.constant 0 : index
    %27 = vector.load %arg9[%c0_22, %c0_23] : memref<72x32xbf16, #tpu.memory_space<vmem>>, vector<72x32xbf16>
    %cst_24 = arith.constant dense<0.000000e+00> : vector<392x32xf32>
    %28 = tpu.matmul %26, %27, %cst_24 {dimension_numbers = #tpu.dot_dimension_numbers<[1], [0], [0], [1], [0, 0, 1, 1], [], []>} : vector<392x72xbf16>, vector<72x32xbf16>, vector<392x32xf32> -> vector<392x32xf32>
    %c0_25 = arith.constant 0 : index
    %c0_26 = arith.constant 0 : index
    %29 = vector.load %arg10[%c0_25, %c0_26] : memref<1x32xf32, #tpu.memory_space<vmem>>, vector<1x32xf32>
    %30 = vector.broadcast %29 : vector<1x32xf32> to vector<392x32xf32>
    %31 = arith.addf %28, %30 : vector<392x32xf32>
    %cst_27 = arith.constant 0.000000e+00 : f32
    %32 = vector.broadcast %cst_27 : f32 to vector<392x32xf32>
    %33 = arith.maximumf %31, %32 : vector<392x32xf32>
    %34 = arith.truncf %33 : vector<392x32xf32> to vector<392x32xbf16>
    %35 = vector.shape_cast %34 : vector<392x32xbf16> to vector<2x6272xbf16>
    %c0_28 = arith.constant 0 : index
    %c0_29 = arith.constant 0 : index
    %36 = vector.load %arg11[%c0_28, %c0_29] : memref<6272x32xbf16, #tpu.memory_space<vmem>>, vector<6272x32xbf16>
    %cst_30 = arith.constant dense<0.000000e+00> : vector<2x32xf32>
    %37 = tpu.matmul %35, %36, %cst_30 {dimension_numbers = #tpu.dot_dimension_numbers<[1], [0], [0], [1], [0, 0, 1, 1], [], []>} : vector<2x6272xbf16>, vector<6272x32xbf16>, vector<2x32xf32> -> vector<2x32xf32>
    %c0_31 = arith.constant 0 : index
    %c0_32 = arith.constant 0 : index
    %38 = vector.load %arg12[%c0_31, %c0_32] : memref<1x32xf32, #tpu.memory_space<vmem>>, vector<1x32xf32>
    %39 = vector.broadcast %38 : vector<1x32xf32> to vector<2x32xf32>
    %40 = arith.addf %37, %39 : vector<2x32xf32>
    %cst_33 = arith.constant 0.000000e+00 : f32
    %41 = vector.broadcast %cst_33 : f32 to vector<2x32xf32>
    %42 = arith.maximumf %40, %41 : vector<2x32xf32>
    %43 = arith.truncf %42 : vector<2x32xf32> to vector<2x32xbf16>
    %c0_34 = arith.constant 0 : index
    %c0_35 = arith.constant 0 : index
    %44 = vector.load %arg13[%c0_34, %c0_35] : memref<32x32xbf16, #tpu.memory_space<vmem>>, vector<32x32xbf16>
    %cst_36 = arith.constant dense<0.000000e+00> : vector<2x32xf32>
    %45 = tpu.matmul %43, %44, %cst_36 {dimension_numbers = #tpu.dot_dimension_numbers<[1], [0], [0], [1], [0, 0, 1, 1], [], []>} : vector<2x32xbf16>, vector<32x32xbf16>, vector<2x32xf32> -> vector<2x32xf32>
    %c0_37 = arith.constant 0 : index
    %c0_38 = arith.constant 0 : index
    %46 = vector.load %arg14[%c0_37, %c0_38] : memref<1x32xf32, #tpu.memory_space<vmem>>, vector<1x32xf32>
    %47 = vector.broadcast %46 : vector<1x32xf32> to vector<2x32xf32>
    %48 = arith.addf %45, %47 : vector<2x32xf32>
    %cst_39 = arith.constant 0.000000e+00 : f32
    %49 = vector.broadcast %cst_39 : f32 to vector<2x32xf32>
    %50 = arith.maximumf %48, %49 : vector<2x32xf32>
    %51 = arith.truncf %50 : vector<2x32xf32> to vector<2x32xbf16>
    %c0_40 = arith.constant 0 : index
    %c0_41 = arith.constant 0 : index
    %52 = vector.load %arg15[%c0_40, %c0_41] : memref<32x1xbf16, #tpu.memory_space<vmem>>, vector<32x1xbf16>
    %cst_42 = arith.constant dense<0.000000e+00> : vector<2x1xf32>
    %53 = tpu.matmul %51, %52, %cst_42 {dimension_numbers = #tpu.dot_dimension_numbers<[1], [0], [0], [1], [0, 0, 1, 1], [], []>} : vector<2x32xbf16>, vector<32x1xbf16>, vector<2x1xf32> -> vector<2x1xf32>
    %c0_43 = arith.constant 0 : index
    %c0_44 = arith.constant 0 : index
    %54 = vector.load %arg16[%c0_43, %c0_44] : memref<1x1xf32, #tpu.memory_space<vmem>>, vector<1x1xf32>
    %55 = vector.broadcast %54 : vector<1x1xf32> to vector<2x1xf32>
    %56 = arith.addf %53, %55 : vector<2x1xf32>
    %c0_45 = arith.constant 0 : index
    %c0_46 = arith.constant 0 : index
    %57 = vector.load %arg18[%c0_45, %c0_46] : memref<2x1xf32, #tpu.memory_space<vmem>>, vector<2x1xf32>
    tpu.vector_store %arg18[%c0_45, %c0_46], %56 {strides = array<i32>} : memref<2x1xf32, #tpu.memory_space<vmem>>, vector<2x1xf32>,
    return
  }
  func.func @transform_0(%arg0: i32) -> (i32, i32) {
    %c0_i32 = arith.constant 0 : i32
    %c0_i32_0 = arith.constant 0 : i32
    return %arg0, %c0_i32 : i32, i32
  }
  func.func @transform_1(%arg0: i32) -> (i32, i32) {
    %c0_i32 = arith.constant 0 : i32
    %c0_i32_0 = arith.constant 0 : i32
    return %arg0, %c0_i32 : i32, i32
  }
  func.func @transform_2(%arg0: i32) -> (i32, i32) {
    %c0_i32 = arith.constant 0 : i32
    %c0_i32_0 = arith.constant 0 : i32
    %c0_i32_1 = arith.constant 0 : i32
    return %c0_i32, %c0_i32_0 : i32, i32
  }
  func.func @transform_3(%arg0: i32) -> (i32, i32) {
    %c0_i32 = arith.constant 0 : i32
    %c0_i32_0 = arith.constant 0 : i32
    %c0_i32_1 = arith.constant 0 : i32
    return %c0_i32, %c0_i32_0 : i32, i32
  }
  func.func @transform_4(%arg0: i32) -> (i32, i32) {
    %c0_i32 = arith.constant 0 : i32
    %c0_i32_0 = arith.constant 0 : i32
    %c0_i32_1 = arith.constant 0 : i32
    return %c0_i32, %c0_i32_0 : i32, i32
  }
  func.func @transform_5(%arg0: i32) -> (i32, i32) {
    %c0_i32 = arith.constant 0 : i32
    %c0_i32_0 = arith.constant 0 : i32
    %c0_i32_1 = arith.constant 0 : i32
    return %c0_i32, %c0_i32_0 : i32, i32
  }
  func.func @transform_6(%arg0: i32) -> (i32, i32) {
    %c0_i32 = arith.constant 0 : i32
    %c0_i32_0 = arith.constant 0 : i32
    %c0_i32_1 = arith.constant 0 : i32
    return %c0_i32, %c0_i32_0 : i32, i32
  }
  func.func @transform_7(%arg0: i32) -> (i32, i32) {
    %c0_i32 = arith.constant 0 : i32
    %c0_i32_0 = arith.constant 0 : i32
    %c0_i32_1 = arith.constant 0 : i32
    return %c0_i32, %c0_i32_0 : i32, i32
  }
  func.func @transform_8(%arg0: i32) -> (i32, i32) {
    %c0_i32 = arith.constant 0 : i32
    %c0_i32_0 = arith.constant 0 : i32
    %c0_i32_1 = arith.constant 0 : i32
    return %c0_i32, %c0_i32_0 : i32, i32
  }
  func.func @transform_9(%arg0: i32) -> (i32, i32) {
    %c0_i32 = arith.constant 0 : i32
    %c0_i32_0 = arith.constant 0 : i32
    %c0_i32_1 = arith.constant 0 : i32
    return %c0_i32, %c0_i32_0 : i32, i32
  }
  func.func @transform_10(%arg0: i32) -> (i32, i32) {
    %c0_i32 = arith.constant 0 : i32
    %c0_i32_0 = arith.constant 0 : i32
    %c0_i32_1 = arith.constant 0 : i32
    return %c0_i32, %c0_i32_0 : i32, i32
  }
  func.func @transform_11(%arg0: i32) -> (i32, i32) {
    %c0_i32 = arith.constant 0 : i32
    %c0_i32_0 = arith.constant 0 : i32
    %c0_i32_1 = arith.constant 0 : i32
    return %c0_i32, %c0_i32_0 : i32, i32
  }
  func.func @transform_12(%arg0: i32) -> (i32, i32) {
    %c0_i32 = arith.constant 0 : i32
    %c0_i32_0 = arith.constant 0 : i32
    %c0_i32_1 = arith.constant 0 : i32
    return %c0_i32, %c0_i32_0 : i32, i32
  }
  func.func @transform_13(%arg0: i32) -> (i32, i32) {
    %c0_i32 = arith.constant 0 : i32
    %c0_i32_0 = arith.constant 0 : i32
    %c0_i32_1 = arith.constant 0 : i32
    return %c0_i32, %c0_i32_0 : i32, i32
  }
  func.func @transform_14(%arg0: i32) -> (i32, i32) {
    %c0_i32 = arith.constant 0 : i32
    %c0_i32_0 = arith.constant 0 : i32
    %c0_i32_1 = arith.constant 0 : i32
    return %c0_i32, %c0_i32_0 : i32, i32
  }
  func.func @transform_15(%arg0: i32) -> (i32, i32) {
    %c0_i32 = arith.constant 0 : i32
    %c0_i32_0 = arith.constant 0 : i32
    %c0_i32_1 = arith.constant 0 : i32
    return %c0_i32, %c0_i32_0 : i32, i32
  }
  func.func @transform_16(%arg0: i32) -> (i32, i32) {
    %c0_i32 = arith.constant 0 : i32
    %c0_i32_0 = arith.constant 0 : i32
    return %arg0, %c0_i32 : i32, i32
  }
  func.func @transform_17(%arg0: i32) -> (i32, i32) {
    %c0_i32 = arith.constant 0 : i32
    %c0_i32_0 = arith.constant 0 : i32
    return %arg0, %c0_i32 : i32, i32
  }
}

module attributes {stable_mosaic.version = 11 : i64} {
  func.func @_conv_mm_kernel(%arg0: i32, %arg1: memref<392x72xbf16, #tpu.memory_space<vmem>>, %arg2: memref<72x32xbf16, #tpu.memory_space<vmem>>, %arg3: memref<1x32xf32, #tpu.memory_space<vmem>>, %arg4: memref<392x32xbf16, #tpu.memory_space<vmem>>) attributes {dimension_semantics = [#tpu.dimension_semantics<parallel>], iteration_bounds = array<i64: 1>, scalar_prefetch = 0 : i64, scratch_operands = 0 : i64, tpu.core_type = #tpu.core_type<tc>, window_params = [{transform_indices = @transform_0, window_bounds = array<i64: 392, 72>}, {pipeline_mode = #tpu.pipeline_mode<synchronous>, transform_indices = @transform_1, window_bounds = array<i64: 72, 32>}, {pipeline_mode = #tpu.pipeline_mode<synchronous>, transform_indices = @transform_2, window_bounds = array<i64: 1, 32>}, {transform_indices = @transform_3, window_bounds = array<i64: 392, 32>}]} {
    %c0 = arith.constant 0 : index
    %c0_0 = arith.constant 0 : index
    %0 = vector.load %arg1[%c0, %c0_0] : memref<392x72xbf16, #tpu.memory_space<vmem>>, vector<392x72xbf16>
    %c0_1 = arith.constant 0 : index
    %c0_2 = arith.constant 0 : index
    %1 = vector.load %arg2[%c0_1, %c0_2] : memref<72x32xbf16, #tpu.memory_space<vmem>>, vector<72x32xbf16>
    %cst = arith.constant dense<0.000000e+00> : vector<392x32xf32>
    %2 = tpu.matmul %0, %1, %cst {dimension_numbers = #tpu.dot_dimension_numbers<[1], [0], [0], [1], [0, 0, 1, 1], [], []>} : vector<392x72xbf16>, vector<72x32xbf16>, vector<392x32xf32> -> vector<392x32xf32>
    %c0_3 = arith.constant 0 : index
    %c0_4 = arith.constant 0 : index
    %3 = vector.load %arg3[%c0_3, %c0_4] : memref<1x32xf32, #tpu.memory_space<vmem>>, vector<1x32xf32>
    %4 = vector.broadcast %3 : vector<1x32xf32> to vector<392x32xf32>
    %5 = arith.addf %2, %4 : vector<392x32xf32>
    %cst_5 = arith.constant 0.000000e+00 : f32
    %6 = vector.broadcast %cst_5 : f32 to vector<392x32xf32>
    %7 = arith.maximumf %5, %6 : vector<392x32xf32>
    %8 = arith.truncf %7 : vector<392x32xf32> to vector<392x32xbf16>
    %c0_6 = arith.constant 0 : index
    %c0_7 = arith.constant 0 : index
    %9 = vector.load %arg4[%c0_6, %c0_7] : memref<392x32xbf16, #tpu.memory_space<vmem>>, vector<392x32xbf16>
    tpu.vector_store %arg4[%c0_6, %c0_7], %8 {strides = array<i32>} : memref<392x32xbf16, #tpu.memory_space<vmem>>, vector<392x32xbf16>,
    return
  }
  func.func @transform_0(%arg0: i32) -> (i32, i32) {
    %c0_i32 = arith.constant 0 : i32
    %c0_i32_0 = arith.constant 0 : i32
    return %arg0, %c0_i32 : i32, i32
  }
  func.func @transform_1(%arg0: i32) -> (i32, i32) {
    %c0_i32 = arith.constant 0 : i32
    %c0_i32_0 = arith.constant 0 : i32
    %c0_i32_1 = arith.constant 0 : i32
    return %c0_i32, %c0_i32_0 : i32, i32
  }
  func.func @transform_2(%arg0: i32) -> (i32, i32) {
    %c0_i32 = arith.constant 0 : i32
    %c0_i32_0 = arith.constant 0 : i32
    %c0_i32_1 = arith.constant 0 : i32
    return %c0_i32, %c0_i32_0 : i32, i32
  }
  func.func @transform_3(%arg0: i32) -> (i32, i32) {
    %c0_i32 = arith.constant 0 : i32
    %c0_i32_0 = arith.constant 0 : i32
    return %arg0, %c0_i32 : i32, i32
  }
}

module attributes {stable_mosaic.version = 11 : i64} {
  func.func @_conv_mm_kernel(%arg0: i32, %arg1: memref<392x36xbf16, #tpu.memory_space<vmem>>, %arg2: memref<36x32xbf16, #tpu.memory_space<vmem>>, %arg3: memref<1x32xf32, #tpu.memory_space<vmem>>, %arg4: memref<392x32xbf16, #tpu.memory_space<vmem>>) attributes {dimension_semantics = [#tpu.dimension_semantics<parallel>], iteration_bounds = array<i64: 1>, scalar_prefetch = 0 : i64, scratch_operands = 0 : i64, tpu.core_type = #tpu.core_type<tc>, window_params = [{transform_indices = @transform_0, window_bounds = array<i64: 392, 36>}, {pipeline_mode = #tpu.pipeline_mode<synchronous>, transform_indices = @transform_1, window_bounds = array<i64: 36, 32>}, {pipeline_mode = #tpu.pipeline_mode<synchronous>, transform_indices = @transform_2, window_bounds = array<i64: 1, 32>}, {transform_indices = @transform_3, window_bounds = array<i64: 392, 32>}]} {
    %c0 = arith.constant 0 : index
    %c0_0 = arith.constant 0 : index
    %0 = vector.load %arg1[%c0, %c0_0] : memref<392x36xbf16, #tpu.memory_space<vmem>>, vector<392x36xbf16>
    %c0_1 = arith.constant 0 : index
    %c0_2 = arith.constant 0 : index
    %1 = vector.load %arg2[%c0_1, %c0_2] : memref<36x32xbf16, #tpu.memory_space<vmem>>, vector<36x32xbf16>
    %cst = arith.constant dense<0.000000e+00> : vector<392x32xf32>
    %2 = tpu.matmul %0, %1, %cst {dimension_numbers = #tpu.dot_dimension_numbers<[1], [0], [0], [1], [0, 0, 1, 1], [], []>} : vector<392x36xbf16>, vector<36x32xbf16>, vector<392x32xf32> -> vector<392x32xf32>
    %c0_3 = arith.constant 0 : index
    %c0_4 = arith.constant 0 : index
    %3 = vector.load %arg3[%c0_3, %c0_4] : memref<1x32xf32, #tpu.memory_space<vmem>>, vector<1x32xf32>
    %4 = vector.broadcast %3 : vector<1x32xf32> to vector<392x32xf32>
    %5 = arith.addf %2, %4 : vector<392x32xf32>
    %cst_5 = arith.constant 0.000000e+00 : f32
    %6 = vector.broadcast %cst_5 : f32 to vector<392x32xf32>
    %7 = arith.maximumf %5, %6 : vector<392x32xf32>
    %8 = arith.truncf %7 : vector<392x32xf32> to vector<392x32xbf16>
    %c0_6 = arith.constant 0 : index
    %c0_7 = arith.constant 0 : index
    %9 = vector.load %arg4[%c0_6, %c0_7] : memref<392x32xbf16, #tpu.memory_space<vmem>>, vector<392x32xbf16>
    tpu.vector_store %arg4[%c0_6, %c0_7], %8 {strides = array<i32>} : memref<392x32xbf16, #tpu.memory_space<vmem>>, vector<392x32xbf16>,
    return
  }
  func.func @transform_0(%arg0: i32) -> (i32, i32) {
    %c0_i32 = arith.constant 0 : i32
    %c0_i32_0 = arith.constant 0 : i32
    return %arg0, %c0_i32 : i32, i32
  }
  func.func @transform_1(%arg0: i32) -> (i32, i32) {
    %c0_i32 = arith.constant 0 : i32
    %c0_i32_0 = arith.constant 0 : i32
    %c0_i32_1 = arith.constant 0 : i32
    return %c0_i32, %c0_i32_0 : i32, i32
  }
  func.func @transform_2(%arg0: i32) -> (i32, i32) {
    %c0_i32 = arith.constant 0 : i32
    %c0_i32_0 = arith.constant 0 : i32
    %c0_i32_1 = arith.constant 0 : i32
    return %c0_i32, %c0_i32_0 : i32, i32
  }
  func.func @transform_3(%arg0: i32) -> (i32, i32) {
    %c0_i32 = arith.constant 0 : i32
    %c0_i32_0 = arith.constant 0 : i32
    return %arg0, %c0_i32 : i32, i32
  }
}

module attributes {stable_mosaic.version = 11 : i64} {
  func.func @_head_kernel(%arg0: i32, %arg1: memref<2x6272xbf16, #tpu.memory_space<vmem>>, %arg2: memref<2x6272xbf16, #tpu.memory_space<vmem>>, %arg3: memref<6272x32xbf16, #tpu.memory_space<vmem>>, %arg4: memref<1x32xf32, #tpu.memory_space<vmem>>, %arg5: memref<32x32xbf16, #tpu.memory_space<vmem>>, %arg6: memref<1x32xf32, #tpu.memory_space<vmem>>, %arg7: memref<6272x32xbf16, #tpu.memory_space<vmem>>, %arg8: memref<1x32xf32, #tpu.memory_space<vmem>>, %arg9: memref<32x32xbf16, #tpu.memory_space<vmem>>, %arg10: memref<1x32xf32, #tpu.memory_space<vmem>>, %arg11: memref<32x1xbf16, #tpu.memory_space<vmem>>, %arg12: memref<1x1xf32, #tpu.memory_space<vmem>>, %arg13: memref<2x32xf32, #tpu.memory_space<vmem>>, %arg14: memref<2x1xf32, #tpu.memory_space<vmem>>) attributes {dimension_semantics = [#tpu.dimension_semantics<parallel>], iteration_bounds = array<i64: 1>, scalar_prefetch = 0 : i64, scratch_operands = 0 : i64, tpu.core_type = #tpu.core_type<tc>, window_params = [{transform_indices = @transform_0, window_bounds = array<i64: 2, 6272>}, {transform_indices = @transform_1, window_bounds = array<i64: 2, 6272>}, {pipeline_mode = #tpu.pipeline_mode<synchronous>, transform_indices = @transform_2, window_bounds = array<i64: 6272, 32>}, {pipeline_mode = #tpu.pipeline_mode<synchronous>, transform_indices = @transform_3, window_bounds = array<i64: 1, 32>}, {pipeline_mode = #tpu.pipeline_mode<synchronous>, transform_indices = @transform_4, window_bounds = array<i64: 32, 32>}, {pipeline_mode = #tpu.pipeline_mode<synchronous>, transform_indices = @transform_5, window_bounds = array<i64: 1, 32>}, {pipeline_mode = #tpu.pipeline_mode<synchronous>, transform_indices = @transform_6, window_bounds = array<i64: 6272, 32>}, {pipeline_mode = #tpu.pipeline_mode<synchronous>, transform_indices = @transform_7, window_bounds = array<i64: 1, 32>}, {pipeline_mode = #tpu.pipeline_mode<synchronous>, transform_indices = @transform_8, window_bounds = array<i64: 32, 32>}, {pipeline_mode = #tpu.pipeline_mode<synchronous>, transform_indices = @transform_9, window_bounds = array<i64: 1, 32>}, {pipeline_mode = #tpu.pipeline_mode<synchronous>, transform_indices = @transform_10, window_bounds = array<i64: 32, 1>}, {pipeline_mode = #tpu.pipeline_mode<synchronous>, transform_indices = @transform_11, window_bounds = array<i64: 1, 1>}, {transform_indices = @transform_12, window_bounds = array<i64: 2, 32>}, {transform_indices = @transform_13, window_bounds = array<i64: 2, 1>}]} {
    %c0 = arith.constant 0 : index
    %c0_0 = arith.constant 0 : index
    %0 = vector.load %arg1[%c0, %c0_0] : memref<2x6272xbf16, #tpu.memory_space<vmem>>, vector<2x6272xbf16>
    %c0_1 = arith.constant 0 : index
    %c0_2 = arith.constant 0 : index
    %1 = vector.load %arg3[%c0_1, %c0_2] : memref<6272x32xbf16, #tpu.memory_space<vmem>>, vector<6272x32xbf16>
    %cst = arith.constant dense<0.000000e+00> : vector<2x32xf32>
    %2 = tpu.matmul %0, %1, %cst {dimension_numbers = #tpu.dot_dimension_numbers<[1], [0], [0], [1], [0, 0, 1, 1], [], []>} : vector<2x6272xbf16>, vector<6272x32xbf16>, vector<2x32xf32> -> vector<2x32xf32>
    %c0_3 = arith.constant 0 : index
    %c0_4 = arith.constant 0 : index
    %3 = vector.load %arg4[%c0_3, %c0_4] : memref<1x32xf32, #tpu.memory_space<vmem>>, vector<1x32xf32>
    %4 = vector.broadcast %3 : vector<1x32xf32> to vector<2x32xf32>
    %5 = arith.addf %2, %4 : vector<2x32xf32>
    %cst_5 = arith.constant 0.000000e+00 : f32
    %6 = vector.broadcast %cst_5 : f32 to vector<2x32xf32>
    %7 = arith.maximumf %5, %6 : vector<2x32xf32>
    %8 = arith.truncf %7 : vector<2x32xf32> to vector<2x32xbf16>
    %c0_6 = arith.constant 0 : index
    %c0_7 = arith.constant 0 : index
    %9 = vector.load %arg5[%c0_6, %c0_7] : memref<32x32xbf16, #tpu.memory_space<vmem>>, vector<32x32xbf16>
    %cst_8 = arith.constant dense<0.000000e+00> : vector<2x32xf32>
    %10 = tpu.matmul %8, %9, %cst_8 {dimension_numbers = #tpu.dot_dimension_numbers<[1], [0], [0], [1], [0, 0, 1, 1], [], []>} : vector<2x32xbf16>, vector<32x32xbf16>, vector<2x32xf32> -> vector<2x32xf32>
    %c0_9 = arith.constant 0 : index
    %c0_10 = arith.constant 0 : index
    %11 = vector.load %arg6[%c0_9, %c0_10] : memref<1x32xf32, #tpu.memory_space<vmem>>, vector<1x32xf32>
    %12 = vector.broadcast %11 : vector<1x32xf32> to vector<2x32xf32>
    %13 = arith.addf %10, %12 : vector<2x32xf32>
    %cst_11 = arith.constant 0.000000e+00 : f32
    %14 = vector.broadcast %cst_11 : f32 to vector<2x32xf32>
    %15 = arith.maximumf %13, %14 : vector<2x32xf32>
    %c0_12 = arith.constant 0 : index
    %c0_13 = arith.constant 0 : index
    %16 = vector.load %arg13[%c0_12, %c0_13] : memref<2x32xf32, #tpu.memory_space<vmem>>, vector<2x32xf32>
    tpu.vector_store %arg13[%c0_12, %c0_13], %15 {strides = array<i32>} : memref<2x32xf32, #tpu.memory_space<vmem>>, vector<2x32xf32>,
    %c0_14 = arith.constant 0 : index
    %c0_15 = arith.constant 0 : index
    %17 = vector.load %arg2[%c0_14, %c0_15] : memref<2x6272xbf16, #tpu.memory_space<vmem>>, vector<2x6272xbf16>
    %c0_16 = arith.constant 0 : index
    %c0_17 = arith.constant 0 : index
    %18 = vector.load %arg7[%c0_16, %c0_17] : memref<6272x32xbf16, #tpu.memory_space<vmem>>, vector<6272x32xbf16>
    %cst_18 = arith.constant dense<0.000000e+00> : vector<2x32xf32>
    %19 = tpu.matmul %17, %18, %cst_18 {dimension_numbers = #tpu.dot_dimension_numbers<[1], [0], [0], [1], [0, 0, 1, 1], [], []>} : vector<2x6272xbf16>, vector<6272x32xbf16>, vector<2x32xf32> -> vector<2x32xf32>
    %c0_19 = arith.constant 0 : index
    %c0_20 = arith.constant 0 : index
    %20 = vector.load %arg8[%c0_19, %c0_20] : memref<1x32xf32, #tpu.memory_space<vmem>>, vector<1x32xf32>
    %21 = vector.broadcast %20 : vector<1x32xf32> to vector<2x32xf32>
    %22 = arith.addf %19, %21 : vector<2x32xf32>
    %cst_21 = arith.constant 0.000000e+00 : f32
    %23 = vector.broadcast %cst_21 : f32 to vector<2x32xf32>
    %24 = arith.maximumf %22, %23 : vector<2x32xf32>
    %25 = arith.truncf %24 : vector<2x32xf32> to vector<2x32xbf16>
    %c0_22 = arith.constant 0 : index
    %c0_23 = arith.constant 0 : index
    %26 = vector.load %arg9[%c0_22, %c0_23] : memref<32x32xbf16, #tpu.memory_space<vmem>>, vector<32x32xbf16>
    %cst_24 = arith.constant dense<0.000000e+00> : vector<2x32xf32>
    %27 = tpu.matmul %25, %26, %cst_24 {dimension_numbers = #tpu.dot_dimension_numbers<[1], [0], [0], [1], [0, 0, 1, 1], [], []>} : vector<2x32xbf16>, vector<32x32xbf16>, vector<2x32xf32> -> vector<2x32xf32>
    %c0_25 = arith.constant 0 : index
    %c0_26 = arith.constant 0 : index
    %28 = vector.load %arg10[%c0_25, %c0_26] : memref<1x32xf32, #tpu.memory_space<vmem>>, vector<1x32xf32>
    %29 = vector.broadcast %28 : vector<1x32xf32> to vector<2x32xf32>
    %30 = arith.addf %27, %29 : vector<2x32xf32>
    %cst_27 = arith.constant 0.000000e+00 : f32
    %31 = vector.broadcast %cst_27 : f32 to vector<2x32xf32>
    %32 = arith.maximumf %30, %31 : vector<2x32xf32>
    %33 = arith.truncf %32 : vector<2x32xf32> to vector<2x32xbf16>
    %c0_28 = arith.constant 0 : index
    %c0_29 = arith.constant 0 : index
    %34 = vector.load %arg11[%c0_28, %c0_29] : memref<32x1xbf16, #tpu.memory_space<vmem>>, vector<32x1xbf16>
    %cst_30 = arith.constant dense<0.000000e+00> : vector<2x1xf32>
    %35 = tpu.matmul %33, %34, %cst_30 {dimension_numbers = #tpu.dot_dimension_numbers<[1], [0], [0], [1], [0, 0, 1, 1], [], []>} : vector<2x32xbf16>, vector<32x1xbf16>, vector<2x1xf32> -> vector<2x1xf32>
    %c0_31 = arith.constant 0 : index
    %c0_32 = arith.constant 0 : index
    %36 = vector.load %arg12[%c0_31, %c0_32] : memref<1x1xf32, #tpu.memory_space<vmem>>, vector<1x1xf32>
    %37 = vector.broadcast %36 : vector<1x1xf32> to vector<2x1xf32>
    %38 = arith.addf %35, %37 : vector<2x1xf32>
    %c0_33 = arith.constant 0 : index
    %c0_34 = arith.constant 0 : index
    %39 = vector.load %arg14[%c0_33, %c0_34] : memref<2x1xf32, #tpu.memory_space<vmem>>, vector<2x1xf32>
    tpu.vector_store %arg14[%c0_33, %c0_34], %38 {strides = array<i32>} : memref<2x1xf32, #tpu.memory_space<vmem>>, vector<2x1xf32>,
    return
  }
  func.func @transform_0(%arg0: i32) -> (i32, i32) {
    %c0_i32 = arith.constant 0 : i32
    %c0_i32_0 = arith.constant 0 : i32
    return %arg0, %c0_i32 : i32, i32
  }
  func.func @transform_1(%arg0: i32) -> (i32, i32) {
    %c0_i32 = arith.constant 0 : i32
    %c0_i32_0 = arith.constant 0 : i32
    return %arg0, %c0_i32 : i32, i32
  }
  func.func @transform_2(%arg0: i32) -> (i32, i32) {
    %c0_i32 = arith.constant 0 : i32
    %c0_i32_0 = arith.constant 0 : i32
    %c0_i32_1 = arith.constant 0 : i32
    return %c0_i32, %c0_i32_0 : i32, i32
  }
  func.func @transform_3(%arg0: i32) -> (i32, i32) {
    %c0_i32 = arith.constant 0 : i32
    %c0_i32_0 = arith.constant 0 : i32
    %c0_i32_1 = arith.constant 0 : i32
    return %c0_i32, %c0_i32_0 : i32, i32
  }
  func.func @transform_4(%arg0: i32) -> (i32, i32) {
    %c0_i32 = arith.constant 0 : i32
    %c0_i32_0 = arith.constant 0 : i32
    %c0_i32_1 = arith.constant 0 : i32
    return %c0_i32, %c0_i32_0 : i32, i32
  }
  func.func @transform_5(%arg0: i32) -> (i32, i32) {
    %c0_i32 = arith.constant 0 : i32
    %c0_i32_0 = arith.constant 0 : i32
    %c0_i32_1 = arith.constant 0 : i32
    return %c0_i32, %c0_i32_0 : i32, i32
  }
  func.func @transform_6(%arg0: i32) -> (i32, i32) {
    %c0_i32 = arith.constant 0 : i32
    %c0_i32_0 = arith.constant 0 : i32
    %c0_i32_1 = arith.constant 0 : i32
    return %c0_i32, %c0_i32_0 : i32, i32
  }
  func.func @transform_7(%arg0: i32) -> (i32, i32) {
    %c0_i32 = arith.constant 0 : i32
    %c0_i32_0 = arith.constant 0 : i32
    %c0_i32_1 = arith.constant 0 : i32
    return %c0_i32, %c0_i32_0 : i32, i32
  }
  func.func @transform_8(%arg0: i32) -> (i32, i32) {
    %c0_i32 = arith.constant 0 : i32
    %c0_i32_0 = arith.constant 0 : i32
    %c0_i32_1 = arith.constant 0 : i32
    return %c0_i32, %c0_i32_0 : i32, i32
  }
  func.func @transform_9(%arg0: i32) -> (i32, i32) {
    %c0_i32 = arith.constant 0 : i32
    %c0_i32_0 = arith.constant 0 : i32
    %c0_i32_1 = arith.constant 0 : i32
    return %c0_i32, %c0_i32_0 : i32, i32
  }
  func.func @transform_10(%arg0: i32) -> (i32, i32) {
    %c0_i32 = arith.constant 0 : i32
    %c0_i32_0 = arith.constant 0 : i32
    %c0_i32_1 = arith.constant 0 : i32
    return %c0_i32, %c0_i32_0 : i32, i32
  }
  func.func @transform_11(%arg0: i32) -> (i32, i32) {
    %c0_i32 = arith.constant 0 : i32
    %c0_i32_0 = arith.constant 0 : i32
    %c0_i32_1 = arith.constant 0 : i32
    return %c0_i32, %c0_i32_0 : i32, i32
  }
  func.func @transform_12(%arg0: i32) -> (i32, i32) {
    %c0_i32 = arith.constant 0 : i32
    %c0_i32_0 = arith.constant 0 : i32
    return %arg0, %c0_i32 : i32, i32
  }
  func.func @transform_13(%arg0: i32) -> (i32, i32) {
    %c0_i32 = arith.constant 0 : i32
    %c0_i32_0 = arith.constant 0 : i32
    return %arg0, %c0_i32 : i32, i32
  }
}

</mosaic_0001>

<bundles_post_ra>
// kernel: cnn_base_forward_split.4
= control target key start
LH: loop header
LB: loop body
LE: loop exit
PB: predicated region body
PF: predicated region fallthrough
CT: control target
= control target key end

     0   :  { %v1178_v0 = vmov 0.0   ;;  %vm1179_vm0 = vmmov 0   ;;  %vm306_vm1 = vcmask 1043456   ;;  %vm230_vm2 = vcmask 588800   ;;  %s1625_s1 = inlined_call_operand.vmem [shape: bf16[72,32], index: 1, kind: input, shape index: {}]   ;;  %s1626_s0 = inlined_call_operand.vmem [shape: bf16[392,72], index: 0, kind: input, shape index: {}]   ;;  %s1627_s2 = inlined_call_operand.vmem [shape: f32[1,32], index: 2, kind: input, shape index: {}]   ;;  %s1628_s3 = inlined_call_operand.vmem [shape: bf16[392,32], index: 3, kind: output, shape index: {}]  }
   0x1   :  { %1026 = vmatprep.subr.bf16.mxu0 %v1178_v0  ;;  %v1148_v1 = vld [vmem:[%s1625_s1] sm:$0xff]   ;;  %1136 = vmatprep.subr.bf16.mxu1 %v1178_v0  ;;  %v1149_v2 = vld [vmem:[%s1625_s1 + $0x8] sm:$0xff]   ;;  %v1150_v3 = vld [vmem:[%s1625_s1 + $0x10] sm:$0xff]   ;;  %vm788_vm3 = vcmask 257024  }
   0x2   :  { %1036 = vmatprep.mubr.msk.bf16.mxu0 %vm1179_vm0, %v1178_v0  ;;  %1088 = vmatprep.mubr.msk.bf16.mxu1 %vm1179_vm0, %v1178_v0  ;;  %v1151_v4 = vld [vmem:[%s1625_s1 + $0x18] sm:$0xff]   ;;  %v1152_v5 = vld [vmem:[%s1625_s1 + $0x20] ss:$0 sps:$4 sm:$0xff]   ;;  %v1154_v8 = vld [vmem:[%s1626_s0 + $0x68] sm:$0xff]  }
   0x3   :  { %1027 = vmatpush3.bf16.msra.mxu0 %v1148_v1  ;;  %1141 = vmatpush3.bf16.msra.mxu1 %v1148_v1  ;;  %v308_v6 = vsel %vm306_vm1, %v1152_v5, 0  ;;  %v1153_v7 = vld [vmem:[%s1626_s0] sm:$0xff]   ;;  %v1155_v9 = vld [vmem:[%s1626_s0 + $0x8] sm:$0xff]   ;;  %v1156_v10 = vld [vmem:[%s1626_s0 + $0x70] sm:$0xff]  }
   0x4   :  { %1028 = vmatprep.subr.bf16.mxu0 %v1178_v0  ;;  %1137 = vmatprep.subr.bf16.mxu1 %v1178_v0  ;;  %v1157_v11 = vld [vmem:[%s1626_s0 + $0x10] sm:$0xff]   ;;  %v1158_v12 = vld [vmem:[%s1626_s0 + $0x78] sm:$0xff]   ;;  %v1160_v14 = vld [vmem:[%s1626_s0 + $0x80] sm:$0xff]  }
   0x5   :  { %v1159_v13 = vld [vmem:[%s1626_s0 + $0x18] sm:$0xff]   ;;  %v1161_v15 = vld [vmem:[%s1626_s0 + $0x20] sm:$0xff]   ;;  %v1162_v16 = vld [vmem:[%s1626_s0 + $0x88] sm:$0xff]  }
   0x6   :  { %v1163_v17 = vld [vmem:[%s1626_s0 + $0x28] sm:$0xff]   ;;  %v1164_v18 = vld [vmem:[%s1626_s0 + $0x90] sm:$0xff]   ;;  %v1166_v20 = vld [vmem:[%s1626_s0 + $0x98] sm:$0xff]  }
   0x7   :  { %1029 = vmatpush3.bf16.msra.mxu0 %v1149_v2  ;;  %1142 = vmatpush3.bf16.msra.mxu1 %v1149_v2  ;;  %v1165_v19 = vld [vmem:[%s1626_s0 + $0x30] sm:$0xff]   ;;  %v1167_v21 = vld [vmem:[%s1626_s0 + $0x38] sm:$0xff]   ;;  %v1168_v22 = vld [vmem:[%s1626_s0 + $0xa0] sm:$0xff]  }
   0x8   :  { %1030 = vmatprep.subr.bf16.mxu0 %v1178_v0  ;;  %1138 = vmatprep.subr.bf16.mxu1 %v1178_v0  ;;  %v1169_v23 = vld [vmem:[%s1626_s0 + $0x40] sm:$0xff]   ;;  %v1170_v24 = vld [vmem:[%s1626_s0 + $0xa8] sm:$0xff]   ;;  %v1172_v26 = vld [vmem:[%s1626_s0 + $0xb0] sm:$0xff]  }
   0x9   :  { %v1171_v25 = vld [vmem:[%s1626_s0 + $0x48] sm:$0xff]   ;;  %v1173_v27 = vld [vmem:[%s1626_s0 + $0x50] sm:$0xff]   ;;  %v1174_v28 = vld [vmem:[%s1626_s0 + $0xb8] sm:$0xff]  }
   0xa   :  { %v1175_v29 = vld [vmem:[%s1626_s0 + $0x58] sm:$0xff]   ;;  %v1176_v30 = vld [vmem:[%s1626_s0 + $0xc0] ss:$0 sps:$4 sm:$0xff]  }
   0xb   :  { %1031 = vmatpush3.bf16.msra.mxu0 %v1150_v3  ;;  %1143 = vmatpush3.bf16.msra.mxu1 %v1150_v3  ;;  %v1177_v31 = vld [vmem:[%s1626_s0 + $0x60] sm:$0xff]  }
   0xc   :  { %1032 = vmatprep.subr.bf16.mxu0 %v1178_v0  ;;  %1139 = vmatprep.subr.bf16.mxu1 %v1178_v0  ;;  %v1378_v32 = vld [vmem:[%s1627_s2] ss:$0 sm:$0xff] }
   0xf   :  { %1033 = vmatpush3.bf16.msra.mxu0 %v1151_v4  ;;  %1144 = vmatpush3.bf16.msra.mxu1 %v1151_v4 }
  0x10   :  { %1034 = vmatprep.subr.bf16.mxu0 %v1178_v0  ;;  %1140 = vmatprep.subr.bf16.mxu1 %v1178_v0 }
  0x13   :  { %1035 = vmatpush3.bf16.msra.mxu0 %v308_v6  ;;  %1145 = vmatpush3.bf16.msra.mxu1 %v308_v6 }
  0x16   :  { %1037 = vmatmul.mubr.msk.bf16.vlgmr.msra.gmra.mrb[0].mxu0 %vm230_vm2, %v1153_v7  ;;  %1089 = vmatmul.mubr.msk.bf16.vlgmr.msra.gmra.mrb[0].mxu1 %vm230_vm2, %v1154_v8 }
  0x17   :  { %1040 = vmatprep.mubr.msk.bf16.mxu0 %vm1179_vm0, %v1178_v0  ;;  %1092 = vmatprep.mubr.msk.bf16.mxu1 %vm1179_vm0, %v1178_v0 }
  0x1e   :  { %1041 = vmatmul.mubr.msk.bf16.gmra.mrb[4].mxu0 %vm230_vm2, %v1155_v9  ;;  %1093 = vmatmul.mubr.msk.bf16.gmra.mrb[4].mxu1 %vm230_vm2, %v1156_v10 }
  0x1f   :  { %1044 = vmatprep.mubr.msk.bf16.mxu0 %vm1179_vm0, %v1178_v0  ;;  %1096 = vmatprep.mubr.msk.bf16.mxu1 %vm1179_vm0, %v1178_v0 }
  0x26   :  { %1045 = vmatmul.mubr.msk.bf16.gmra.mrb[8].mxu0 %vm230_vm2, %v1157_v11  ;;  %1097 = vmatmul.mubr.msk.bf16.gmra.mrb[8].mxu1 %vm230_vm2, %v1158_v12 }
  0x27   :  { %1048 = vmatprep.mubr.msk.bf16.mxu0 %vm1179_vm0, %v1178_v0  ;;  %1100 = vmatprep.mubr.msk.bf16.mxu1 %vm1179_vm0, %v1178_v0 }
  0x2e   :  { %1049 = vmatmul.mubr.msk.bf16.gmra.mrb[12].mxu0 %vm230_vm2, %v1159_v13  ;;  %1101 = vmatmul.mubr.msk.bf16.gmra.mrb[12].mxu1 %vm230_vm2, %v1160_v14 }
  0x2f   :  { %1052 = vmatprep.mubr.msk.bf16.mxu0 %vm1179_vm0, %v1178_v0  ;;  %1104 = vmatprep.mubr.msk.bf16.mxu1 %vm1179_vm0, %v1178_v0 }
  0x36   :  { %1053 = vmatmul.mubr.msk.bf16.gmra.mrb[16].mxu0 %vm230_vm2, %v1161_v15  ;;  %1105 = vmatmul.mubr.msk.bf16.gmra.mrb[16].mxu1 %vm230_vm2, %v1162_v16 }
  0x37   :  { %1056 = vmatprep.mubr.msk.bf16.mxu0 %vm1179_vm0, %v1178_v0  ;;  %1108 = vmatprep.mubr.msk.bf16.mxu1 %vm1179_vm0, %v1178_v0 }
  0x3e   :  { %1057 = vmatmul.mubr.msk.bf16.gmra.mrb[20].mxu0 %vm230_vm2, %v1163_v17  ;;  %1109 = vmatmul.mubr.msk.bf16.gmra.mrb[20].mxu1 %vm230_vm2, %v1164_v18 }
  0x3f   :  { %1060 = vmatprep.mubr.msk.bf16.mxu0 %vm1179_vm0, %v1178_v0  ;;  %1112 = vmatprep.mubr.msk.bf16.mxu1 %vm1179_vm0, %v1178_v0 }
  0x46   :  { %1061 = vmatmul.mubr.msk.bf16.gmra.mrb[24].mxu0 %vm230_vm2, %v1165_v19  ;;  %1113 = vmatmul.mubr.msk.bf16.gmra.mrb[24].mxu1 %vm230_vm2, %v1166_v20 }
  0x47   :  { %1064 = vmatprep.mubr.msk.bf16.mxu0 %vm1179_vm0, %v1178_v0  ;;  %1116 = vmatprep.mubr.msk.bf16.mxu1 %vm1179_vm0, %v1178_v0 }
  0x4e   :  { %1065 = vmatmul.mubr.msk.bf16.gmra.mrb[28].mxu0 %vm230_vm2, %v1167_v21  ;;  %1117 = vmatmul.mubr.msk.bf16.gmra.mrb[28].mxu1 %vm230_vm2, %v1168_v22 }
  0x4f   :  { %1068 = vmatprep.mubr.msk.bf16.mxu0 %vm1179_vm0, %v1178_v0  ;;  %1120 = vmatprep.mubr.msk.bf16.mxu1 %vm1179_vm0, %v1178_v0 }
  0x56   :  { %1069 = vmatmul.mubr.msk.bf16.gmra.mrb[32].mxu0 %vm230_vm2, %v1169_v23  ;;  %1121 = vmatmul.mubr.msk.bf16.gmra.mrb[32].mxu1 %vm230_vm2, %v1170_v24 }
  0x57   :  { %1072 = vmatprep.mubr.msk.bf16.mxu0 %vm1179_vm0, %v1178_v0  ;;  %1124 = vmatprep.mubr.msk.bf16.mxu1 %vm1179_vm0, %v1178_v0 }
  0x5e   :  { %1073 = vmatmul.mubr.msk.bf16.gmra.mrb[36].mxu0 %vm230_vm2, %v1171_v25  ;;  %1125 = vmatmul.mubr.msk.bf16.gmra.mrb[36].mxu1 %vm230_vm2, %v1172_v26 }
  0x5f   :  { %1076 = vmatprep.mubr.msk.bf16.mxu0 %vm1179_vm0, %v1178_v0  ;;  %1128 = vmatprep.mubr.msk.bf16.mxu1 %vm1179_vm0, %v1178_v0 }
  0x66   :  { %1077 = vmatmul.mubr.msk.bf16.gmra.mrb[40].mxu0 %vm230_vm2, %v1173_v27  ;;  %1129 = vmatmul.mubr.msk.bf16.gmra.mrb[40].mxu1 %vm230_vm2, %v1174_v28 }
  0x67   :  { %1080 = vmatprep.mubr.msk.bf16.mxu0 %vm1179_vm0, %v1178_v0  ;;  %1132 = vmatprep.mubr.msk.bf16.mxu1 %vm1179_vm0, %v1178_v0 }
  0x6e   :  { %1081 = vmatmul.mubr.msk.bf16.gmra.mrb[44].mxu0 %vm230_vm2, %v1175_v29  ;;  %1133 = vmatmul.mubr.msk.bf16.gmra.mrb[44].mxu1 %vm230_vm2, %v1176_v30 }
  0x6f   :  { %1084 = vmatprep.mubr.msk.bf16.mxu0 %vm1179_vm0, %v1178_v0 }
  0x76   :  { %1085 = vmatmul.mubr.msk.bf16.gmra.mrb[48].mxu0 %vm230_vm2, %v1177_v31 }
  0xe9   :  { %v344_v33 = vpop.f32.mrb[0].mxu0  ;;  %v448_v34 = vpop.f32.mrb[0].mxu1 }
  0xea   :  { %v345_v35 = vadd.f32 %v1378_v32, %v344_v33  ;;  %v1038_v36 = vpop.f32.mrb[1].mxu0  ;;  %v449_v37 = vadd.f32 %v1378_v32, %v448_v34  ;;  %v1090_v38 = vpop.f32.mrb[1].mxu1 }
  0xeb   :  { %v347_v39 = vpop.f32.mrb[2].mxu0  ;;  %v451_v40 = vpop.f32.mrb[2].mxu1 }
  0xec   :  { %v542_v41 = vmax.f32 %v345_v35, 0.0  ;;  %v348_v42 = vadd.f32 %v1378_v32, %v347_v39  ;;  %v1039_v43 = vpop.f32.mrb[3].mxu0  ;;  %v568_v44 = vmax.f32 %v449_v37, 0.0  ;;  %v452_v45 = vadd.f32 %v1378_v32, %v451_v40  ;;  %v1091_v46 = vpop.f32.mrb[3].mxu1 }
  0xee   :  { %v947_v47 = vpack.c.bf16 %v542_v41, %v542_v41  ;;  %v543_v48 = vmax.f32 %v348_v42, 0.0  ;;  %v973_v49 = vpack.c.bf16 %v568_v44, %v568_v44  ;;  %v569_v50 = vmax.f32 %v452_v45, 0.0 }
  0xf0   :  { %789 = vst.msk [vmem:[%s1628_s3] sm:$0xf] %vm788_vm3, %v947_v47  ;;  %v948_v51 = vpack.c.bf16 %v543_v48, %v543_v48  ;;  %815 = vst.msk [vmem:[%s1628_s3 + $0x68] sm:$0xf] %vm788_vm3, %v973_v49  ;;  %v974_v52 = vpack.c.bf16 %v569_v50, %v569_v50 }
  0xf1   :  { %v352_v53 = vpop.f32.mrb[4].mxu0  ;;  %v456_v54 = vpop.f32.mrb[4].mxu1 }
  0xf2   :  { %790 = vst.msk [vmem:[%s1628_s3 + $0x4] sm:$0xf] %vm788_vm3, %v948_v51  ;;  %v353_v55 = vadd.f32 %v1378_v32, %v352_v53  ;;  %v1042_v56 = vpop.f32.mrb[5].mxu0  ;;  %816 = vst.msk [vmem:[%s1628_s3 + $0x6c] sm:$0xf] %vm788_vm3, %v974_v52  ;;  %v457_v57 = vadd.f32 %v1378_v32, %v456_v54  ;;  %v1094_v58 = vpop.f32.mrb[5].mxu1 }
  0xf3   :  { %v355_v59 = vpop.f32.mrb[6].mxu0  ;;  %v459_v60 = vpop.f32.mrb[6].mxu1 }
  0xf4   :  { %v544_v61 = vmax.f32 %v353_v55, 0.0  ;;  %v356_v62 = vadd.f32 %v1378_v32, %v355_v59  ;;  %v1043_v63 = vpop.f32.mrb[7].mxu0  ;;  %v570_v0 = vmax.f32 %v457_v57, 0.0  ;;  %v460_v1 = vadd.f32 %v1378_v32, %v459_v60  ;;  %v1095_v2 = vpop.f32.mrb[7].mxu1 }
  0xf6   :  { %v949_v3 = vpack.c.bf16 %v544_v61, %v544_v61  ;;  %v545_v4 = vmax.f32 %v356_v62, 0.0  ;;  %v975_v5 = vpack.c.bf16 %v570_v0, %v570_v0  ;;  %v571_v6 = vmax.f32 %v460_v1, 0.0 }
  0xf8   :  { %791 = vst.msk [vmem:[%s1628_s3 + $0x8] sm:$0xf] %vm788_vm3, %v949_v3  ;;  %v950_v7 = vpack.c.bf16 %v545_v4, %v545_v4  ;;  %817 = vst.msk [vmem:[%s1628_s3 + $0x70] sm:$0xf] %vm788_vm3, %v975_v5  ;;  %v976_v8 = vpack.c.bf16 %v571_v6, %v571_v6 }
  0xf9   :  { %v360_v9 = vpop.f32.mrb[8].mxu0  ;;  %v464_v10 = vpop.f32.mrb[8].mxu1 }
  0xfa   :  { %792 = vst.msk [vmem:[%s1628_s3 + $0xc] sm:$0xf] %vm788_vm3, %v950_v7  ;;  %v361_v11 = vadd.f32 %v1378_v32, %v360_v9  ;;  %v1046_v12 = vpop.f32.mrb[9].mxu0  ;;  %818 = vst.msk [vmem:[%s1628_s3 + $0x74] sm:$0xf] %vm788_vm3, %v976_v8  ;;  %v465_v13 = vadd.f32 %v1378_v32, %v464_v10  ;;  %v1098_v14 = vpop.f32.mrb[9].mxu1 }
  0xfb   :  { %v363_v15 = vpop.f32.mrb[10].mxu0  ;;  %v467_v16 = vpop.f32.mrb[10].mxu1 }
  0xfc   :  { %v546_v17 = vmax.f32 %v361_v11, 0.0  ;;  %v364_v18 = vadd.f32 %v1378_v32, %v363_v15  ;;  %v1047_v19 = vpop.f32.mrb[11].mxu0  ;;  %v572_v20 = vmax.f32 %v465_v13, 0.0  ;;  %v468_v21 = vadd.f32 %v1378_v32, %v467_v16  ;;  %v1099_v22 = vpop.f32.mrb[11].mxu1 }
  0xfe   :  { %v951_v23 = vpack.c.bf16 %v546_v17, %v546_v17  ;;  %v547_v24 = vmax.f32 %v364_v18, 0.0  ;;  %v977_v25 = vpack.c.bf16 %v572_v20, %v572_v20  ;;  %v573_v26 = vmax.f32 %v468_v21, 0.0 }
 0x100   :  { %793 = vst.msk [vmem:[%s1628_s3 + $0x10] sm:$0xf] %vm788_vm3, %v951_v23  ;;  %v952_v27 = vpack.c.bf16 %v547_v24, %v547_v24  ;;  %819 = vst.msk [vmem:[%s1628_s3 + $0x78] sm:$0xf] %vm788_vm3, %v977_v25  ;;  %v978_v28 = vpack.c.bf16 %v573_v26, %v573_v26 }
 0x101   :  { %v368_v29 = vpop.f32.mrb[12].mxu0  ;;  %v472_v30 = vpop.f32.mrb[12].mxu1 }
 0x102   :  { %794 = vst.msk [vmem:[%s1628_s3 + $0x14] sm:$0xf] %vm788_vm3, %v952_v27  ;;  %v369_v31 = vadd.f32 %v1378_v32, %v368_v29  ;;  %v1050_v33 = vpop.f32.mrb[13].mxu0  ;;  %820 = vst.msk [vmem:[%s1628_s3 + $0x7c] sm:$0xf] %vm788_vm3, %v978_v28  ;;  %v473_v34 = vadd.f32 %v1378_v32, %v472_v30  ;;  %v1102_v35 = vpop.f32.mrb[13].mxu1 }
 0x103   :  { %v371_v36 = vpop.f32.mrb[14].mxu0  ;;  %v475_v37 = vpop.f32.mrb[14].mxu1 }
 0x104   :  { %v548_v38 = vmax.f32 %v369_v31, 0.0  ;;  %v372_v39 = vadd.f32 %v1378_v32, %v371_v36  ;;  %v1051_v40 = vpop.f32.mrb[15].mxu0  ;;  %v574_v41 = vmax.f32 %v473_v34, 0.0  ;;  %v476_v42 = vadd.f32 %v1378_v32, %v475_v37  ;;  %v1103_v43 = vpop.f32.mrb[15].mxu1 }
 0x106   :  { %v953_v44 = vpack.c.bf16 %v548_v38, %v548_v38  ;;  %v549_v45 = vmax.f32 %v372_v39, 0.0  ;;  %v979_v46 = vpack.c.bf16 %v574_v41, %v574_v41  ;;  %v575_v47 = vmax.f32 %v476_v42, 0.0 }
 0x108   :  { %795 = vst.msk [vmem:[%s1628_s3 + $0x18] sm:$0xf] %vm788_vm3, %v953_v44  ;;  %v954_v48 = vpack.c.bf16 %v549_v45, %v549_v45  ;;  %821 = vst.msk [vmem:[%s1628_s3 + $0x80] sm:$0xf] %vm788_vm3, %v979_v46  ;;  %v980_v49 = vpack.c.bf16 %v575_v47, %v575_v47 }
 0x109   :  { %v376_v50 = vpop.f32.mrb[16].mxu0  ;;  %v480_v51 = vpop.f32.mrb[16].mxu1 }
 0x10a   :  { %796 = vst.msk [vmem:[%s1628_s3 + $0x1c] sm:$0xf] %vm788_vm3, %v954_v48  ;;  %v377_v52 = vadd.f32 %v1378_v32, %v376_v50  ;;  %v1054_v53 = vpop.f32.mrb[17].mxu0  ;;  %822 = vst.msk [vmem:[%s1628_s3 + $0x84] sm:$0xf] %vm788_vm3, %v980_v49  ;;  %v481_v54 = vadd.f32 %v1378_v32, %v480_v51  ;;  %v1106_v55 = vpop.f32.mrb[17].mxu1 }
 0x10b   :  { %v379_v56 = vpop.f32.mrb[18].mxu0  ;;  %v483_v57 = vpop.f32.mrb[18].mxu1 }
 0x10c   :  { %v550_v58 = vmax.f32 %v377_v52, 0.0  ;;  %v380_v59 = vadd.f32 %v1378_v32, %v379_v56  ;;  %v1055_v60 = vpop.f32.mrb[19].mxu0  ;;  %v576_v61 = vmax.f32 %v481_v54, 0.0  ;;  %v484_v62 = vadd.f32 %v1378_v32, %v483_v57  ;;  %v1107_v63 = vpop.f32.mrb[19].mxu1 }
 0x10e   :  { %v955_v0 = vpack.c.bf16 %v550_v58, %v550_v58  ;;  %v551_v1 = vmax.f32 %v380_v59, 0.0  ;;  %v981_v2 = vpack.c.bf16 %v576_v61, %v576_v61  ;;  %v577_v3 = vmax.f32 %v484_v62, 0.0 }
 0x110   :  { %797 = vst.msk [vmem:[%s1628_s3 + $0x20] sm:$0xf] %vm788_vm3, %v955_v0  ;;  %v956_v4 = vpack.c.bf16 %v551_v1, %v551_v1  ;;  %823 = vst.msk [vmem:[%s1628_s3 + $0x88] sm:$0xf] %vm788_vm3, %v981_v2  ;;  %v982_v5 = vpack.c.bf16 %v577_v3, %v577_v3 }
 0x111   :  { %v384_v6 = vpop.f32.mrb[20].mxu0  ;;  %v488_v7 = vpop.f32.mrb[20].mxu1 }
 0x112   :  { %798 = vst.msk [vmem:[%s1628_s3 + $0x24] sm:$0xf] %vm788_vm3, %v956_v4  ;;  %v385_v8 = vadd.f32 %v1378_v32, %v384_v6  ;;  %v1058_v9 = vpop.f32.mrb[21].mxu0  ;;  %824 = vst.msk [vmem:[%s1628_s3 + $0x8c] sm:$0xf] %vm788_vm3, %v982_v5  ;;  %v489_v10 = vadd.f32 %v1378_v32, %v488_v7  ;;  %v1110_v11 = vpop.f32.mrb[21].mxu1 }
 0x113   :  { %v387_v12 = vpop.f32.mrb[22].mxu0  ;;  %v491_v13 = vpop.f32.mrb[22].mxu1 }
 0x114   :  { %v552_v14 = vmax.f32 %v385_v8, 0.0  ;;  %v388_v15 = vadd.f32 %v1378_v32, %v387_v12  ;;  %v1059_v16 = vpop.f32.mrb[23].mxu0  ;;  %v578_v17 = vmax.f32 %v489_v10, 0.0  ;;  %v492_v18 = vadd.f32 %v1378_v32, %v491_v13  ;;  %v1111_v19 = vpop.f32.mrb[23].mxu1 }
 0x116   :  { %v957_v20 = vpack.c.bf16 %v552_v14, %v552_v14  ;;  %v553_v21 = vmax.f32 %v388_v15, 0.0  ;;  %v983_v22 = vpack.c.bf16 %v578_v17, %v578_v17  ;;  %v579_v23 = vmax.f32 %v492_v18, 0.0 }
 0x118   :  { %799 = vst.msk [vmem:[%s1628_s3 + $0x28] sm:$0xf] %vm788_vm3, %v957_v20  ;;  %v958_v24 = vpack.c.bf16 %v553_v21, %v553_v21  ;;  %825 = vst.msk [vmem:[%s1628_s3 + $0x90] sm:$0xf] %vm788_vm3, %v983_v22  ;;  %v984_v25 = vpack.c.bf16 %v579_v23, %v579_v23 }
 0x119   :  { %v392_v26 = vpop.f32.mrb[24].mxu0  ;;  %v496_v27 = vpop.f32.mrb[24].mxu1 }
 0x11a   :  { %800 = vst.msk [vmem:[%s1628_s3 + $0x2c] sm:$0xf] %vm788_vm3, %v958_v24  ;;  %v393_v28 = vadd.f32 %v1378_v32, %v392_v26  ;;  %v1062_v29 = vpop.f32.mrb[25].mxu0  ;;  %826 = vst.msk [vmem:[%s1628_s3 + $0x94] sm:$0xf] %vm788_vm3, %v984_v25  ;;  %v497_v30 = vadd.f32 %v1378_v32, %v496_v27  ;;  %v1114_v31 = vpop.f32.mrb[25].mxu1 }
 0x11b   :  { %v395_v33 = vpop.f32.mrb[26].mxu0  ;;  %v499_v34 = vpop.f32.mrb[26].mxu1 }
 0x11c   :  { %v554_v35 = vmax.f32 %v393_v28, 0.0  ;;  %v396_v36 = vadd.f32 %v1378_v32, %v395_v33  ;;  %v1063_v37 = vpop.f32.mrb[27].mxu0  ;;  %v580_v38 = vmax.f32 %v497_v30, 0.0  ;;  %v500_v39 = vadd.f32 %v1378_v32, %v499_v34  ;;  %v1115_v40 = vpop.f32.mrb[27].mxu1 }
 0x11e   :  { %v959_v41 = vpack.c.bf16 %v554_v35, %v554_v35  ;;  %v555_v42 = vmax.f32 %v396_v36, 0.0  ;;  %v985_v43 = vpack.c.bf16 %v580_v38, %v580_v38  ;;  %v581_v44 = vmax.f32 %v500_v39, 0.0 }
 0x120   :  { %801 = vst.msk [vmem:[%s1628_s3 + $0x30] sm:$0xf] %vm788_vm3, %v959_v41  ;;  %v960_v45 = vpack.c.bf16 %v555_v42, %v555_v42  ;;  %827 = vst.msk [vmem:[%s1628_s3 + $0x98] sm:$0xf] %vm788_vm3, %v985_v43  ;;  %v986_v46 = vpack.c.bf16 %v581_v44, %v581_v44 }
 0x121   :  { %v400_v47 = vpop.f32.mrb[28].mxu0  ;;  %v504_v48 = vpop.f32.mrb[28].mxu1 }
 0x122   :  { %802 = vst.msk [vmem:[%s1628_s3 + $0x34] sm:$0xf] %vm788_vm3, %v960_v45  ;;  %v401_v49 = vadd.f32 %v1378_v32, %v400_v47  ;;  %v1066_v50 = vpop.f32.mrb[29].mxu0  ;;  %828 = vst.msk [vmem:[%s1628_s3 + $0x9c] sm:$0xf] %vm788_vm3, %v986_v46  ;;  %v505_v51 = vadd.f32 %v1378_v32, %v504_v48  ;;  %v1118_v52 = vpop.f32.mrb[29].mxu1 }
 0x123   :  { %v403_v53 = vpop.f32.mrb[30].mxu0  ;;  %v507_v54 = vpop.f32.mrb[30].mxu1 }
 0x124   :  { %v556_v55 = vmax.f32 %v401_v49, 0.0  ;;  %v404_v56 = vadd.f32 %v1378_v32, %v403_v53  ;;  %v1067_v57 = vpop.f32.mrb[31].mxu0  ;;  %v582_v58 = vmax.f32 %v505_v51, 0.0  ;;  %v508_v59 = vadd.f32 %v1378_v32, %v507_v54  ;;  %v1119_v60 = vpop.f32.mrb[31].mxu1 }
 0x126   :  { %v961_v61 = vpack.c.bf16 %v556_v55, %v556_v55  ;;  %v557_v62 = vmax.f32 %v404_v56, 0.0  ;;  %v987_v63 = vpack.c.bf16 %v582_v58, %v582_v58  ;;  %v583_v0 = vmax.f32 %v508_v59, 0.0 }
 0x128   :  { %803 = vst.msk [vmem:[%s1628_s3 + $0x38] sm:$0xf] %vm788_vm3, %v961_v61  ;;  %v962_v1 = vpack.c.bf16 %v557_v62, %v557_v62  ;;  %829 = vst.msk [vmem:[%s1628_s3 + $0xa0] sm:$0xf] %vm788_vm3, %v987_v63  ;;  %v988_v2 = vpack.c.bf16 %v583_v0, %v583_v0 }
 0x129   :  { %v408_v3 = vpop.f32.mrb[32].mxu0  ;;  %v512_v4 = vpop.f32.mrb[32].mxu1 }
 0x12a   :  { %804 = vst.msk [vmem:[%s1628_s3 + $0x3c] sm:$0xf] %vm788_vm3, %v962_v1  ;;  %v409_v5 = vadd.f32 %v1378_v32, %v408_v3  ;;  %v1070_v6 = vpop.f32.mrb[33].mxu0  ;;  %830 = vst.msk [vmem:[%s1628_s3 + $0xa4] sm:$0xf] %vm788_vm3, %v988_v2  ;;  %v513_v7 = vadd.f32 %v1378_v32, %v512_v4  ;;  %v1122_v8 = vpop.f32.mrb[33].mxu1 }
 0x12b   :  { %v411_v9 = vpop.f32.mrb[34].mxu0  ;;  %v515_v10 = vpop.f32.mrb[34].mxu1 }
 0x12c   :  { %v558_v11 = vmax.f32 %v409_v5, 0.0  ;;  %v412_v12 = vadd.f32 %v1378_v32, %v411_v9  ;;  %v1071_v13 = vpop.f32.mrb[35].mxu0  ;;  %v584_v14 = vmax.f32 %v513_v7, 0.0  ;;  %v516_v15 = vadd.f32 %v1378_v32, %v515_v10  ;;  %v1123_v16 = vpop.f32.mrb[35].mxu1 }
 0x12e   :  { %v963_v17 = vpack.c.bf16 %v558_v11, %v558_v11  ;;  %v559_v18 = vmax.f32 %v412_v12, 0.0  ;;  %v989_v19 = vpack.c.bf16 %v584_v14, %v584_v14  ;;  %v585_v20 = vmax.f32 %v516_v15, 0.0 }
 0x130   :  { %805 = vst.msk [vmem:[%s1628_s3 + $0x40] sm:$0xf] %vm788_vm3, %v963_v17  ;;  %v964_v21 = vpack.c.bf16 %v559_v18, %v559_v18  ;;  %831 = vst.msk [vmem:[%s1628_s3 + $0xa8] sm:$0xf] %vm788_vm3, %v989_v19  ;;  %v990_v22 = vpack.c.bf16 %v585_v20, %v585_v20 }
 0x131   :  { %v416_v23 = vpop.f32.mrb[36].mxu0  ;;  %v520_v24 = vpop.f32.mrb[36].mxu1 }
 0x132   :  { %806 = vst.msk [vmem:[%s1628_s3 + $0x44] sm:$0xf] %vm788_vm3, %v964_v21  ;;  %v417_v25 = vadd.f32 %v1378_v32, %v416_v23  ;;  %v1074_v26 = vpop.f32.mrb[37].mxu0  ;;  %832 = vst.msk [vmem:[%s1628_s3 + $0xac] sm:$0xf] %vm788_vm3, %v990_v22  ;;  %v521_v27 = vadd.f32 %v1378_v32, %v520_v24  ;;  %v1126_v28 = vpop.f32.mrb[37].mxu1 }
 0x133   :  { %v419_v29 = vpop.f32.mrb[38].mxu0  ;;  %v523_v30 = vpop.f32.mrb[38].mxu1 }
 0x134   :  { %v560_v31 = vmax.f32 %v417_v25, 0.0  ;;  %v420_v33 = vadd.f32 %v1378_v32, %v419_v29  ;;  %v1075_v34 = vpop.f32.mrb[39].mxu0  ;;  %v586_v35 = vmax.f32 %v521_v27, 0.0  ;;  %v524_v36 = vadd.f32 %v1378_v32, %v523_v30  ;;  %v1127_v37 = vpop.f32.mrb[39].mxu1 }
 0x136   :  { %v965_v38 = vpack.c.bf16 %v560_v31, %v560_v31  ;;  %v561_v39 = vmax.f32 %v420_v33, 0.0  ;;  %v991_v40 = vpack.c.bf16 %v586_v35, %v586_v35  ;;  %v587_v41 = vmax.f32 %v524_v36, 0.0 }
 0x138   :  { %807 = vst.msk [vmem:[%s1628_s3 + $0x48] sm:$0xf] %vm788_vm3, %v965_v38  ;;  %v966_v42 = vpack.c.bf16 %v561_v39, %v561_v39  ;;  %833 = vst.msk [vmem:[%s1628_s3 + $0xb0] sm:$0xf] %vm788_vm3, %v991_v40  ;;  %v992_v43 = vpack.c.bf16 %v587_v41, %v587_v41 }
 0x139   :  { %v424_v44 = vpop.f32.mrb[40].mxu0  ;;  %v528_v45 = vpop.f32.mrb[40].mxu1 }
 0x13a   :  { %808 = vst.msk [vmem:[%s1628_s3 + $0x4c] sm:$0xf] %vm788_vm3, %v966_v42  ;;  %v425_v46 = vadd.f32 %v1378_v32, %v424_v44  ;;  %v1078_v47 = vpop.f32.mrb[41].mxu0  ;;  %834 = vst.msk [vmem:[%s1628_s3 + $0xb4] sm:$0xf] %vm788_vm3, %v992_v43  ;;  %v529_v48 = vadd.f32 %v1378_v32, %v528_v45  ;;  %v1130_v49 = vpop.f32.mrb[41].mxu1 }
 0x13b   :  { %v427_v50 = vpop.f32.mrb[42].mxu0  ;;  %v531_v51 = vpop.f32.mrb[42].mxu1 }
 0x13c   :  { %v562_v52 = vmax.f32 %v425_v46, 0.0  ;;  %v428_v53 = vadd.f32 %v1378_v32, %v427_v50  ;;  %v1079_v54 = vpop.f32.mrb[43].mxu0  ;;  %v588_v55 = vmax.f32 %v529_v48, 0.0  ;;  %v532_v56 = vadd.f32 %v1378_v32, %v531_v51  ;;  %v1131_v57 = vpop.f32.mrb[43].mxu1 }
 0x13e   :  { %v967_v58 = vpack.c.bf16 %v562_v52, %v562_v52  ;;  %v563_v59 = vmax.f32 %v428_v53, 0.0  ;;  %v993_v60 = vpack.c.bf16 %v588_v55, %v588_v55  ;;  %v589_v61 = vmax.f32 %v532_v56, 0.0 }
 0x140   :  { %809 = vst.msk [vmem:[%s1628_s3 + $0x50] sm:$0xf] %vm788_vm3, %v967_v58  ;;  %v968_v62 = vpack.c.bf16 %v563_v59, %v563_v59  ;;  %835 = vst.msk [vmem:[%s1628_s3 + $0xb8] sm:$0xf] %vm788_vm3, %v993_v60  ;;  %v994_v63 = vpack.c.bf16 %v589_v61, %v589_v61 }
 0x141   :  { %v432_v0 = vpop.f32.mrb[44].mxu0  ;;  %v536_v1 = vpop.f32.mrb[44].mxu1 }
 0x142   :  { %810 = vst.msk [vmem:[%s1628_s3 + $0x54] sm:$0xf] %vm788_vm3, %v968_v62  ;;  %v433_v2 = vadd.f32 %v1378_v32, %v432_v0  ;;  %v1082_v3 = vpop.f32.mrb[45].mxu0  ;;  %836 = vst.msk [vmem:[%s1628_s3 + $0xbc] sm:$0xf] %vm788_vm3, %v994_v63  ;;  %v537_v4 = vadd.f32 %v1378_v32, %v536_v1  ;;  %v1134_v5 = vpop.f32.mrb[45].mxu1 }
 0x143   :  { %v435_v6 = vpop.f32.mrb[46].mxu0  ;;  %v539_v7 = vpop.f32.mrb[46].mxu1 }
 0x144   :  { %v564_v8 = vmax.f32 %v433_v2, 0.0  ;;  %v436_v9 = vadd.f32 %v1378_v32, %v435_v6  ;;  %v1083_v10 = vpop.f32.mrb[47].mxu0  ;;  %v590_v11 = vmax.f32 %v537_v4, 0.0  ;;  %v1135_v12 = vpop.f32.mrb[47].mxu1 }
 0x146   :  { %v969_v13 = vpack.c.bf16 %v564_v8, %v564_v8  ;;  %v565_v14 = vmax.f32 %v436_v9, 0.0  ;;  %v995_v15 = vpack.c.bf16 %v590_v11, %v590_v11 }
 0x148   :  { %811 = vst.msk [vmem:[%s1628_s3 + $0x58] sm:$0xf] %vm788_vm3, %v969_v13  ;;  %v970_v16 = vpack.c.bf16 %v565_v14, %v565_v14  ;;  %837 = vst.msk [vmem:[%s1628_s3 + $0xc0] sm:$0xf] %vm788_vm3, %v995_v15 }
 0x149   :  { %v440_v17 = vpop.f32.mrb[48].mxu0 }
 0x14a   :  { %812 = vst.msk [vmem:[%s1628_s3 + $0x5c] sm:$0xf] %vm788_vm3, %v970_v16  ;;  %v441_v18 = vadd.f32 %v1378_v32, %v440_v17  ;;  %v1086_v19 = vpop.f32.mrb[49].mxu0 }
 0x14b   :  { %v443_v20 = vpop.f32.mrb[50].mxu0 }
 0x14c   :  { %v566_v21 = vmax.f32 %v441_v18, 0.0  ;;  %v444_v22 = vadd.f32 %v1378_v32, %v443_v20  ;;  %v1087_v23 = vpop.f32.mrb[51].mxu0 }
 0x14e   :  { %v971_v24 = vpack.c.bf16 %v566_v21, %v566_v21  ;;  %v567_v25 = vmax.f32 %v444_v22, 0.0 }
 0x150   :  { %813 = vst.msk [vmem:[%s1628_s3 + $0x60] sm:$0xf] %vm788_vm3, %v971_v24  ;;  %v972_v26 = vpack.c.bf16 %v567_v25, %v567_v25 }
 0x152   :  { %814 = vst.msk [vmem:[%s1628_s3 + $0x64] sm:$0xf] %vm788_vm3, %v972_v26 }

// kernel: cnn_base_forward_split.3
= control target key start
LH: loop header
LB: loop body
LE: loop exit
PB: predicated region body
PF: predicated region fallthrough
CT: control target
= control target key end

     0   :  { %v1148_v0 = vmov 0.0   ;;  %vm1149_vm0 = vmmov 0   ;;  %vm290_vm1 = vcmask 1041408   ;;  %vm214_vm2 = vcmask 293888   ;;  %s1585_s1 = inlined_call_operand.vmem [shape: bf16[36,32], index: 1, kind: input, shape index: {}]   ;;  %s1586_s0 = inlined_call_operand.vmem [shape: bf16[392,36], index: 0, kind: input, shape index: {}]   ;;  %s1587_s2 = inlined_call_operand.vmem [shape: f32[1,32], index: 2, kind: input, shape index: {}]   ;;  %s1588_s3 = inlined_call_operand.vmem [shape: bf16[392,32], index: 3, kind: output, shape index: {}]  }
   0x1   :  { %1006 = vmatprep.subr.bf16.mxu0 %v1148_v0  ;;  %v1120_v1 = vld [vmem:[%s1585_s1] sm:$0xff]   ;;  %1112 = vmatprep.subr.bf16.mxu1 %v1148_v0  ;;  %v1121_v2 = vld [vmem:[%s1585_s1 + $0x8] sm:$0xff]   ;;  %v1122_v3 = vld [vmem:[%s1585_s1 + $0x10] ss:$0 sps:$4 sm:$0x33]   ;;  %vm772_vm3 = vcmask 257024  }
   0x2   :  { %1012 = vmatprep.mubr.msk.bf16.mxu0 %vm1149_vm0, %v1148_v0  ;;  %1064 = vmatprep.mubr.msk.bf16.mxu1 %vm1149_vm0, %v1148_v0  ;;  %v292_v4 = vsel %vm290_vm1, %v1122_v3, 0  ;;  %v1123_v5 = vld [vmem:[%s1586_s0] sm:$0xff]   ;;  %v1124_v6 = vld [vmem:[%s1586_s0 + $0x68] sm:$0xff]   ;;  %v1126_v8 = vld [vmem:[%s1586_s0 + $0x70] sm:$0xff]  }
   0x3   :  { %1007 = vmatpush3.bf16.msra.mxu0 %v1120_v1  ;;  %1115 = vmatpush3.bf16.msra.mxu1 %v1120_v1  ;;  %v1125_v7 = vld [vmem:[%s1586_s0 + $0x8] sm:$0xff]   ;;  %v1127_v9 = vld [vmem:[%s1586_s0 + $0x10] sm:$0xff]   ;;  %v1128_v10 = vld [vmem:[%s1586_s0 + $0x78] sm:$0xff]  }
   0x4   :  { %1008 = vmatprep.subr.bf16.mxu0 %v1148_v0  ;;  %1113 = vmatprep.subr.bf16.mxu1 %v1148_v0  ;;  %v1129_v11 = vld [vmem:[%s1586_s0 + $0x18] sm:$0xff]   ;;  %v1130_v12 = vld [vmem:[%s1586_s0 + $0x80] sm:$0xff]   ;;  %v1132_v14 = vld [vmem:[%s1586_s0 + $0x88] sm:$0xff]  }
   0x5   :  { %v1131_v13 = vld [vmem:[%s1586_s0 + $0x20] sm:$0xff]   ;;  %v1133_v15 = vld [vmem:[%s1586_s0 + $0x28] sm:$0xff]   ;;  %v1134_v16 = vld [vmem:[%s1586_s0 + $0x90] sm:$0xff]  }
   0x6   :  { %v1135_v17 = vld [vmem:[%s1586_s0 + $0x30] sm:$0xff]   ;;  %v1136_v18 = vld [vmem:[%s1586_s0 + $0x98] sm:$0xff]   ;;  %v1138_v20 = vld [vmem:[%s1586_s0 + $0xa0] sm:$0xff]  }
   0x7   :  { %1009 = vmatpush3.bf16.msra.mxu0 %v1121_v2  ;;  %1116 = vmatpush3.bf16.msra.mxu1 %v1121_v2  ;;  %v1137_v19 = vld [vmem:[%s1586_s0 + $0x38] sm:$0xff]   ;;  %v1139_v21 = vld [vmem:[%s1586_s0 + $0x40] sm:$0xff]   ;;  %v1140_v22 = vld [vmem:[%s1586_s0 + $0xa8] sm:$0xff]  }
   0x8   :  { %1010 = vmatprep.subr.bf16.mxu0 %v1148_v0  ;;  %1114 = vmatprep.subr.bf16.mxu1 %v1148_v0  ;;  %v1141_v23 = vld [vmem:[%s1586_s0 + $0x48] sm:$0xff]   ;;  %v1142_v24 = vld [vmem:[%s1586_s0 + $0xb0] sm:$0xff]   ;;  %v1144_v26 = vld [vmem:[%s1586_s0 + $0xb8] sm:$0xff]  }
   0x9   :  { %v1143_v25 = vld [vmem:[%s1586_s0 + $0x50] sm:$0xff]   ;;  %v1145_v27 = vld [vmem:[%s1586_s0 + $0x58] sm:$0xff]   ;;  %v1146_v28 = vld [vmem:[%s1586_s0 + $0xc0] ss:$0 sps:$4 sm:$0xff]  }
   0xa   :  { %v1147_v29 = vld [vmem:[%s1586_s0 + $0x60] sm:$0xff]  }
   0xb   :  { %1011 = vmatpush3.bf16.msra.mxu0 %v292_v4  ;;  %1117 = vmatpush3.bf16.msra.mxu1 %v292_v4  ;;  %v1338_v30 = vld [vmem:[%s1587_s2] ss:$0 sm:$0xff] }
   0xe   :  { %1013 = vmatmul.mubr.msk.bf16.vlgmr.msra.gmra.mrb[0].mxu0 %vm214_vm2, %v1123_v5  ;;  %1065 = vmatmul.mubr.msk.bf16.vlgmr.msra.gmra.mrb[0].mxu1 %vm214_vm2, %v1124_v6 }
   0xf   :  { %1016 = vmatprep.mubr.msk.bf16.mxu0 %vm1149_vm0, %v1148_v0  ;;  %1068 = vmatprep.mubr.msk.bf16.mxu1 %vm1149_vm0, %v1148_v0 }
  0x16   :  { %1017 = vmatmul.mubr.msk.bf16.gmra.mrb[4].mxu0 %vm214_vm2, %v1125_v7  ;;  %1069 = vmatmul.mubr.msk.bf16.gmra.mrb[4].mxu1 %vm214_vm2, %v1126_v8 }
  0x17   :  { %1020 = vmatprep.mubr.msk.bf16.mxu0 %vm1149_vm0, %v1148_v0  ;;  %1072 = vmatprep.mubr.msk.bf16.mxu1 %vm1149_vm0, %v1148_v0 }
  0x1e   :  { %1021 = vmatmul.mubr.msk.bf16.gmra.mrb[8].mxu0 %vm214_vm2, %v1127_v9  ;;  %1073 = vmatmul.mubr.msk.bf16.gmra.mrb[8].mxu1 %vm214_vm2, %v1128_v10 }
  0x1f   :  { %1024 = vmatprep.mubr.msk.bf16.mxu0 %vm1149_vm0, %v1148_v0  ;;  %1076 = vmatprep.mubr.msk.bf16.mxu1 %vm1149_vm0, %v1148_v0 }
  0x26   :  { %1025 = vmatmul.mubr.msk.bf16.gmra.mrb[12].mxu0 %vm214_vm2, %v1129_v11  ;;  %1077 = vmatmul.mubr.msk.bf16.gmra.mrb[12].mxu1 %vm214_vm2, %v1130_v12 }
  0x27   :  { %1028 = vmatprep.mubr.msk.bf16.mxu0 %vm1149_vm0, %v1148_v0  ;;  %1080 = vmatprep.mubr.msk.bf16.mxu1 %vm1149_vm0, %v1148_v0 }
  0x2e   :  { %1029 = vmatmul.mubr.msk.bf16.gmra.mrb[16].mxu0 %vm214_vm2, %v1131_v13  ;;  %1081 = vmatmul.mubr.msk.bf16.gmra.mrb[16].mxu1 %vm214_vm2, %v1132_v14 }
  0x2f   :  { %1032 = vmatprep.mubr.msk.bf16.mxu0 %vm1149_vm0, %v1148_v0  ;;  %1084 = vmatprep.mubr.msk.bf16.mxu1 %vm1149_vm0, %v1148_v0 }
  0x36   :  { %1033 = vmatmul.mubr.msk.bf16.gmra.mrb[20].mxu0 %vm214_vm2, %v1133_v15  ;;  %1085 = vmatmul.mubr.msk.bf16.gmra.mrb[20].mxu1 %vm214_vm2, %v1134_v16 }
  0x37   :  { %1036 = vmatprep.mubr.msk.bf16.mxu0 %vm1149_vm0, %v1148_v0  ;;  %1088 = vmatprep.mubr.msk.bf16.mxu1 %vm1149_vm0, %v1148_v0 }
  0x3e   :  { %1037 = vmatmul.mubr.msk.bf16.gmra.mrb[24].mxu0 %vm214_vm2, %v1135_v17  ;;  %1089 = vmatmul.mubr.msk.bf16.gmra.mrb[24].mxu1 %vm214_vm2, %v1136_v18 }
  0x3f   :  { %1040 = vmatprep.mubr.msk.bf16.mxu0 %vm1149_vm0, %v1148_v0  ;;  %1092 = vmatprep.mubr.msk.bf16.mxu1 %vm1149_vm0, %v1148_v0 }
  0x46   :  { %1041 = vmatmul.mubr.msk.bf16.gmra.mrb[28].mxu0 %vm214_vm2, %v1137_v19  ;;  %1093 = vmatmul.mubr.msk.bf16.gmra.mrb[28].mxu1 %vm214_vm2, %v1138_v20 }
  0x47   :  { %1044 = vmatprep.mubr.msk.bf16.mxu0 %vm1149_vm0, %v1148_v0  ;;  %1096 = vmatprep.mubr.msk.bf16.mxu1 %vm1149_vm0, %v1148_v0 }
  0x4e   :  { %1045 = vmatmul.mubr.msk.bf16.gmra.mrb[32].mxu0 %vm214_vm2, %v1139_v21  ;;  %1097 = vmatmul.mubr.msk.bf16.gmra.mrb[32].mxu1 %vm214_vm2, %v1140_v22 }
  0x4f   :  { %1048 = vmatprep.mubr.msk.bf16.mxu0 %vm1149_vm0, %v1148_v0  ;;  %1100 = vmatprep.mubr.msk.bf16.mxu1 %vm1149_vm0, %v1148_v0 }
  0x56   :  { %1049 = vmatmul.mubr.msk.bf16.gmra.mrb[36].mxu0 %vm214_vm2, %v1141_v23  ;;  %1101 = vmatmul.mubr.msk.bf16.gmra.mrb[36].mxu1 %vm214_vm2, %v1142_v24 }
  0x57   :  { %1052 = vmatprep.mubr.msk.bf16.mxu0 %vm1149_vm0, %v1148_v0  ;;  %1104 = vmatprep.mubr.msk.bf16.mxu1 %vm1149_vm0, %v1148_v0 }
  0x5e   :  { %1053 = vmatmul.mubr.msk.bf16.gmra.mrb[40].mxu0 %vm214_vm2, %v1143_v25  ;;  %1105 = vmatmul.mubr.msk.bf16.gmra.mrb[40].mxu1 %vm214_vm2, %v1144_v26 }
  0x5f   :  { %1056 = vmatprep.mubr.msk.bf16.mxu0 %vm1149_vm0, %v1148_v0  ;;  %1108 = vmatprep.mubr.msk.bf16.mxu1 %vm1149_vm0, %v1148_v0 }
  0x66   :  { %1057 = vmatmul.mubr.msk.bf16.gmra.mrb[44].mxu0 %vm214_vm2, %v1145_v27  ;;  %1109 = vmatmul.mubr.msk.bf16.gmra.mrb[44].mxu1 %vm214_vm2, %v1146_v28 }
  0x67   :  { %1060 = vmatprep.mubr.msk.bf16.mxu0 %vm1149_vm0, %v1148_v0 }
  0x6e   :  { %1061 = vmatmul.mubr.msk.bf16.gmra.mrb[48].mxu0 %vm214_vm2, %v1147_v29 }
  0xe1   :  { %v328_v31 = vpop.f32.mrb[0].mxu0  ;;  %v432_v32 = vpop.f32.mrb[0].mxu1 }
  0xe2   :  { %v329_v33 = vadd.f32 %v1338_v30, %v328_v31  ;;  %v1014_v34 = vpop.f32.mrb[1].mxu0  ;;  %v433_v35 = vadd.f32 %v1338_v30, %v432_v32  ;;  %v1066_v36 = vpop.f32.mrb[1].mxu1 }
  0xe3   :  { %v331_v37 = vpop.f32.mrb[2].mxu0  ;;  %v435_v38 = vpop.f32.mrb[2].mxu1 }
  0xe4   :  { %v526_v39 = vmax.f32 %v329_v33, 0.0  ;;  %v332_v40 = vadd.f32 %v1338_v30, %v331_v37  ;;  %v1015_v41 = vpop.f32.mrb[3].mxu0  ;;  %v552_v42 = vmax.f32 %v433_v35, 0.0  ;;  %v436_v43 = vadd.f32 %v1338_v30, %v435_v38  ;;  %v1067_v44 = vpop.f32.mrb[3].mxu1 }
  0xe6   :  { %v929_v45 = vpack.c.bf16 %v526_v39, %v526_v39  ;;  %v527_v46 = vmax.f32 %v332_v40, 0.0  ;;  %v955_v47 = vpack.c.bf16 %v552_v42, %v552_v42  ;;  %v553_v48 = vmax.f32 %v436_v43, 0.0 }
  0xe8   :  { %773 = vst.msk [vmem:[%s1588_s3] sm:$0xf] %vm772_vm3, %v929_v45  ;;  %v930_v49 = vpack.c.bf16 %v527_v46, %v527_v46  ;;  %799 = vst.msk [vmem:[%s1588_s3 + $0x68] sm:$0xf] %vm772_vm3, %v955_v47  ;;  %v956_v50 = vpack.c.bf16 %v553_v48, %v553_v48 }
  0xe9   :  { %v336_v51 = vpop.f32.mrb[4].mxu0  ;;  %v440_v52 = vpop.f32.mrb[4].mxu1 }
  0xea   :  { %774 = vst.msk [vmem:[%s1588_s3 + $0x4] sm:$0xf] %vm772_vm3, %v930_v49  ;;  %v337_v53 = vadd.f32 %v1338_v30, %v336_v51  ;;  %v1018_v54 = vpop.f32.mrb[5].mxu0  ;;  %800 = vst.msk [vmem:[%s1588_s3 + $0x6c] sm:$0xf] %vm772_vm3, %v956_v50  ;;  %v441_v55 = vadd.f32 %v1338_v30, %v440_v52  ;;  %v1070_v56 = vpop.f32.mrb[5].mxu1 }
  0xeb   :  { %v339_v57 = vpop.f32.mrb[6].mxu0  ;;  %v443_v58 = vpop.f32.mrb[6].mxu1 }
  0xec   :  { %v528_v59 = vmax.f32 %v337_v53, 0.0  ;;  %v340_v60 = vadd.f32 %v1338_v30, %v339_v57  ;;  %v1019_v61 = vpop.f32.mrb[7].mxu0  ;;  %v554_v62 = vmax.f32 %v441_v55, 0.0  ;;  %v444_v63 = vadd.f32 %v1338_v30, %v443_v58  ;;  %v1071_v0 = vpop.f32.mrb[7].mxu1 }
  0xee   :  { %v931_v1 = vpack.c.bf16 %v528_v59, %v528_v59  ;;  %v529_v2 = vmax.f32 %v340_v60, 0.0  ;;  %v957_v3 = vpack.c.bf16 %v554_v62, %v554_v62  ;;  %v555_v4 = vmax.f32 %v444_v63, 0.0 }
  0xf0   :  { %775 = vst.msk [vmem:[%s1588_s3 + $0x8] sm:$0xf] %vm772_vm3, %v931_v1  ;;  %v932_v5 = vpack.c.bf16 %v529_v2, %v529_v2  ;;  %801 = vst.msk [vmem:[%s1588_s3 + $0x70] sm:$0xf] %vm772_vm3, %v957_v3  ;;  %v958_v6 = vpack.c.bf16 %v555_v4, %v555_v4 }
  0xf1   :  { %v344_v7 = vpop.f32.mrb[8].mxu0  ;;  %v448_v8 = vpop.f32.mrb[8].mxu1 }
  0xf2   :  { %776 = vst.msk [vmem:[%s1588_s3 + $0xc] sm:$0xf] %vm772_vm3, %v932_v5  ;;  %v345_v9 = vadd.f32 %v1338_v30, %v344_v7  ;;  %v1022_v10 = vpop.f32.mrb[9].mxu0  ;;  %802 = vst.msk [vmem:[%s1588_s3 + $0x74] sm:$0xf] %vm772_vm3, %v958_v6  ;;  %v449_v11 = vadd.f32 %v1338_v30, %v448_v8  ;;  %v1074_v12 = vpop.f32.mrb[9].mxu1 }
  0xf3   :  { %v347_v13 = vpop.f32.mrb[10].mxu0  ;;  %v451_v14 = vpop.f32.mrb[10].mxu1 }
  0xf4   :  { %v530_v15 = vmax.f32 %v345_v9, 0.0  ;;  %v348_v16 = vadd.f32 %v1338_v30, %v347_v13  ;;  %v1023_v17 = vpop.f32.mrb[11].mxu0  ;;  %v556_v18 = vmax.f32 %v449_v11, 0.0  ;;  %v452_v19 = vadd.f32 %v1338_v30, %v451_v14  ;;  %v1075_v20 = vpop.f32.mrb[11].mxu1 }
  0xf6   :  { %v933_v21 = vpack.c.bf16 %v530_v15, %v530_v15  ;;  %v531_v22 = vmax.f32 %v348_v16, 0.0  ;;  %v959_v23 = vpack.c.bf16 %v556_v18, %v556_v18  ;;  %v557_v24 = vmax.f32 %v452_v19, 0.0 }
  0xf8   :  { %777 = vst.msk [vmem:[%s1588_s3 + $0x10] sm:$0xf] %vm772_vm3, %v933_v21  ;;  %v934_v25 = vpack.c.bf16 %v531_v22, %v531_v22  ;;  %803 = vst.msk [vmem:[%s1588_s3 + $0x78] sm:$0xf] %vm772_vm3, %v959_v23  ;;  %v960_v26 = vpack.c.bf16 %v557_v24, %v557_v24 }
  0xf9   :  { %v352_v27 = vpop.f32.mrb[12].mxu0  ;;  %v456_v28 = vpop.f32.mrb[12].mxu1 }
  0xfa   :  { %778 = vst.msk [vmem:[%s1588_s3 + $0x14] sm:$0xf] %vm772_vm3, %v934_v25  ;;  %v353_v29 = vadd.f32 %v1338_v30, %v352_v27  ;;  %v1026_v31 = vpop.f32.mrb[13].mxu0  ;;  %804 = vst.msk [vmem:[%s1588_s3 + $0x7c] sm:$0xf] %vm772_vm3, %v960_v26  ;;  %v457_v32 = vadd.f32 %v1338_v30, %v456_v28  ;;  %v1078_v33 = vpop.f32.mrb[13].mxu1 }
  0xfb   :  { %v355_v34 = vpop.f32.mrb[14].mxu0  ;;  %v459_v35 = vpop.f32.mrb[14].mxu1 }
  0xfc   :  { %v532_v36 = vmax.f32 %v353_v29, 0.0  ;;  %v356_v37 = vadd.f32 %v1338_v30, %v355_v34  ;;  %v1027_v38 = vpop.f32.mrb[15].mxu0  ;;  %v558_v39 = vmax.f32 %v457_v32, 0.0  ;;  %v460_v40 = vadd.f32 %v1338_v30, %v459_v35  ;;  %v1079_v41 = vpop.f32.mrb[15].mxu1 }
  0xfe   :  { %v935_v42 = vpack.c.bf16 %v532_v36, %v532_v36  ;;  %v533_v43 = vmax.f32 %v356_v37, 0.0  ;;  %v961_v44 = vpack.c.bf16 %v558_v39, %v558_v39  ;;  %v559_v45 = vmax.f32 %v460_v40, 0.0 }
 0x100   :  { %779 = vst.msk [vmem:[%s1588_s3 + $0x18] sm:$0xf] %vm772_vm3, %v935_v42  ;;  %v936_v46 = vpack.c.bf16 %v533_v43, %v533_v43  ;;  %805 = vst.msk [vmem:[%s1588_s3 + $0x80] sm:$0xf] %vm772_vm3, %v961_v44  ;;  %v962_v47 = vpack.c.bf16 %v559_v45, %v559_v45 }
 0x101   :  { %v360_v48 = vpop.f32.mrb[16].mxu0  ;;  %v464_v49 = vpop.f32.mrb[16].mxu1 }
 0x102   :  { %780 = vst.msk [vmem:[%s1588_s3 + $0x1c] sm:$0xf] %vm772_vm3, %v936_v46  ;;  %v361_v50 = vadd.f32 %v1338_v30, %v360_v48  ;;  %v1030_v51 = vpop.f32.mrb[17].mxu0  ;;  %806 = vst.msk [vmem:[%s1588_s3 + $0x84] sm:$0xf] %vm772_vm3, %v962_v47  ;;  %v465_v52 = vadd.f32 %v1338_v30, %v464_v49  ;;  %v1082_v53 = vpop.f32.mrb[17].mxu1 }
 0x103   :  { %v363_v54 = vpop.f32.mrb[18].mxu0  ;;  %v467_v55 = vpop.f32.mrb[18].mxu1 }
 0x104   :  { %v534_v56 = vmax.f32 %v361_v50, 0.0  ;;  %v364_v57 = vadd.f32 %v1338_v30, %v363_v54  ;;  %v1031_v58 = vpop.f32.mrb[19].mxu0  ;;  %v560_v59 = vmax.f32 %v465_v52, 0.0  ;;  %v468_v60 = vadd.f32 %v1338_v30, %v467_v55  ;;  %v1083_v61 = vpop.f32.mrb[19].mxu1 }
 0x106   :  { %v937_v62 = vpack.c.bf16 %v534_v56, %v534_v56  ;;  %v535_v63 = vmax.f32 %v364_v57, 0.0  ;;  %v963_v0 = vpack.c.bf16 %v560_v59, %v560_v59  ;;  %v561_v1 = vmax.f32 %v468_v60, 0.0 }
 0x108   :  { %781 = vst.msk [vmem:[%s1588_s3 + $0x20] sm:$0xf] %vm772_vm3, %v937_v62  ;;  %v938_v2 = vpack.c.bf16 %v535_v63, %v535_v63  ;;  %807 = vst.msk [vmem:[%s1588_s3 + $0x88] sm:$0xf] %vm772_vm3, %v963_v0  ;;  %v964_v3 = vpack.c.bf16 %v561_v1, %v561_v1 }
 0x109   :  { %v368_v4 = vpop.f32.mrb[20].mxu0  ;;  %v472_v5 = vpop.f32.mrb[20].mxu1 }
 0x10a   :  { %782 = vst.msk [vmem:[%s1588_s3 + $0x24] sm:$0xf] %vm772_vm3, %v938_v2  ;;  %v369_v6 = vadd.f32 %v1338_v30, %v368_v4  ;;  %v1034_v7 = vpop.f32.mrb[21].mxu0  ;;  %808 = vst.msk [vmem:[%s1588_s3 + $0x8c] sm:$0xf] %vm772_vm3, %v964_v3  ;;  %v473_v8 = vadd.f32 %v1338_v30, %v472_v5  ;;  %v1086_v9 = vpop.f32.mrb[21].mxu1 }
 0x10b   :  { %v371_v10 = vpop.f32.mrb[22].mxu0  ;;  %v475_v11 = vpop.f32.mrb[22].mxu1 }
 0x10c   :  { %v536_v12 = vmax.f32 %v369_v6, 0.0  ;;  %v372_v13 = vadd.f32 %v1338_v30, %v371_v10  ;;  %v1035_v14 = vpop.f32.mrb[23].mxu0  ;;  %v562_v15 = vmax.f32 %v473_v8, 0.0  ;;  %v476_v16 = vadd.f32 %v1338_v30, %v475_v11  ;;  %v1087_v17 = vpop.f32.mrb[23].mxu1 }
 0x10e   :  { %v939_v18 = vpack.c.bf16 %v536_v12, %v536_v12  ;;  %v537_v19 = vmax.f32 %v372_v13, 0.0  ;;  %v965_v20 = vpack.c.bf16 %v562_v15, %v562_v15  ;;  %v563_v21 = vmax.f32 %v476_v16, 0.0 }
 0x110   :  { %783 = vst.msk [vmem:[%s1588_s3 + $0x28] sm:$0xf] %vm772_vm3, %v939_v18  ;;  %v940_v22 = vpack.c.bf16 %v537_v19, %v537_v19  ;;  %809 = vst.msk [vmem:[%s1588_s3 + $0x90] sm:$0xf] %vm772_vm3, %v965_v20  ;;  %v966_v23 = vpack.c.bf16 %v563_v21, %v563_v21 }
 0x111   :  { %v376_v24 = vpop.f32.mrb[24].mxu0  ;;  %v480_v25 = vpop.f32.mrb[24].mxu1 }
 0x112   :  { %784 = vst.msk [vmem:[%s1588_s3 + $0x2c] sm:$0xf] %vm772_vm3, %v940_v22  ;;  %v377_v26 = vadd.f32 %v1338_v30, %v376_v24  ;;  %v1038_v27 = vpop.f32.mrb[25].mxu0  ;;  %810 = vst.msk [vmem:[%s1588_s3 + $0x94] sm:$0xf] %vm772_vm3, %v966_v23  ;;  %v481_v28 = vadd.f32 %v1338_v30, %v480_v25  ;;  %v1090_v29 = vpop.f32.mrb[25].mxu1 }
 0x113   :  { %v379_v31 = vpop.f32.mrb[26].mxu0  ;;  %v483_v32 = vpop.f32.mrb[26].mxu1 }
 0x114   :  { %v538_v33 = vmax.f32 %v377_v26, 0.0  ;;  %v380_v34 = vadd.f32 %v1338_v30, %v379_v31  ;;  %v1039_v35 = vpop.f32.mrb[27].mxu0  ;;  %v564_v36 = vmax.f32 %v481_v28, 0.0  ;;  %v484_v37 = vadd.f32 %v1338_v30, %v483_v32  ;;  %v1091_v38 = vpop.f32.mrb[27].mxu1 }
 0x116   :  { %v941_v39 = vpack.c.bf16 %v538_v33, %v538_v33  ;;  %v539_v40 = vmax.f32 %v380_v34, 0.0  ;;  %v967_v41 = vpack.c.bf16 %v564_v36, %v564_v36  ;;  %v565_v42 = vmax.f32 %v484_v37, 0.0 }
 0x118   :  { %785 = vst.msk [vmem:[%s1588_s3 + $0x30] sm:$0xf] %vm772_vm3, %v941_v39  ;;  %v942_v43 = vpack.c.bf16 %v539_v40, %v539_v40  ;;  %811 = vst.msk [vmem:[%s1588_s3 + $0x98] sm:$0xf] %vm772_vm3, %v967_v41  ;;  %v968_v44 = vpack.c.bf16 %v565_v42, %v565_v42 }
 0x119   :  { %v384_v45 = vpop.f32.mrb[28].mxu0  ;;  %v488_v46 = vpop.f32.mrb[28].mxu1 }
 0x11a   :  { %786 = vst.msk [vmem:[%s1588_s3 + $0x34] sm:$0xf] %vm772_vm3, %v942_v43  ;;  %v385_v47 = vadd.f32 %v1338_v30, %v384_v45  ;;  %v1042_v48 = vpop.f32.mrb[29].mxu0  ;;  %812 = vst.msk [vmem:[%s1588_s3 + $0x9c] sm:$0xf] %vm772_vm3, %v968_v44  ;;  %v489_v49 = vadd.f32 %v1338_v30, %v488_v46  ;;  %v1094_v50 = vpop.f32.mrb[29].mxu1 }
 0x11b   :  { %v387_v51 = vpop.f32.mrb[30].mxu0  ;;  %v491_v52 = vpop.f32.mrb[30].mxu1 }
 0x11c   :  { %v540_v53 = vmax.f32 %v385_v47, 0.0  ;;  %v388_v54 = vadd.f32 %v1338_v30, %v387_v51  ;;  %v1043_v55 = vpop.f32.mrb[31].mxu0  ;;  %v566_v56 = vmax.f32 %v489_v49, 0.0  ;;  %v492_v57 = vadd.f32 %v1338_v30, %v491_v52  ;;  %v1095_v58 = vpop.f32.mrb[31].mxu1 }
 0x11e   :  { %v943_v59 = vpack.c.bf16 %v540_v53, %v540_v53  ;;  %v541_v60 = vmax.f32 %v388_v54, 0.0  ;;  %v969_v61 = vpack.c.bf16 %v566_v56, %v566_v56  ;;  %v567_v62 = vmax.f32 %v492_v57, 0.0 }
 0x120   :  { %787 = vst.msk [vmem:[%s1588_s3 + $0x38] sm:$0xf] %vm772_vm3, %v943_v59  ;;  %v944_v63 = vpack.c.bf16 %v541_v60, %v541_v60  ;;  %813 = vst.msk [vmem:[%s1588_s3 + $0xa0] sm:$0xf] %vm772_vm3, %v969_v61  ;;  %v970_v0 = vpack.c.bf16 %v567_v62, %v567_v62 }
 0x121   :  { %v392_v1 = vpop.f32.mrb[32].mxu0  ;;  %v496_v2 = vpop.f32.mrb[32].mxu1 }
 0x122   :  { %788 = vst.msk [vmem:[%s1588_s3 + $0x3c] sm:$0xf] %vm772_vm3, %v944_v63  ;;  %v393_v3 = vadd.f32 %v1338_v30, %v392_v1  ;;  %v1046_v4 = vpop.f32.mrb[33].mxu0  ;;  %814 = vst.msk [vmem:[%s1588_s3 + $0xa4] sm:$0xf] %vm772_vm3, %v970_v0  ;;  %v497_v5 = vadd.f32 %v1338_v30, %v496_v2  ;;  %v1098_v6 = vpop.f32.mrb[33].mxu1 }
 0x123   :  { %v395_v7 = vpop.f32.mrb[34].mxu0  ;;  %v499_v8 = vpop.f32.mrb[34].mxu1 }
 0x124   :  { %v542_v9 = vmax.f32 %v393_v3, 0.0  ;;  %v396_v10 = vadd.f32 %v1338_v30, %v395_v7  ;;  %v1047_v11 = vpop.f32.mrb[35].mxu0  ;;  %v568_v12 = vmax.f32 %v497_v5, 0.0  ;;  %v500_v13 = vadd.f32 %v1338_v30, %v499_v8  ;;  %v1099_v14 = vpop.f32.mrb[35].mxu1 }
 0x126   :  { %v945_v15 = vpack.c.bf16 %v542_v9, %v542_v9  ;;  %v543_v16 = vmax.f32 %v396_v10, 0.0  ;;  %v971_v17 = vpack.c.bf16 %v568_v12, %v568_v12  ;;  %v569_v18 = vmax.f32 %v500_v13, 0.0 }
 0x128   :  { %789 = vst.msk [vmem:[%s1588_s3 + $0x40] sm:$0xf] %vm772_vm3, %v945_v15  ;;  %v946_v19 = vpack.c.bf16 %v543_v16, %v543_v16  ;;  %815 = vst.msk [vmem:[%s1588_s3 + $0xa8] sm:$0xf] %vm772_vm3, %v971_v17  ;;  %v972_v20 = vpack.c.bf16 %v569_v18, %v569_v18 }
 0x129   :  { %v400_v21 = vpop.f32.mrb[36].mxu0  ;;  %v504_v22 = vpop.f32.mrb[36].mxu1 }
 0x12a   :  { %790 = vst.msk [vmem:[%s1588_s3 + $0x44] sm:$0xf] %vm772_vm3, %v946_v19  ;;  %v401_v23 = vadd.f32 %v1338_v30, %v400_v21  ;;  %v1050_v24 = vpop.f32.mrb[37].mxu0  ;;  %816 = vst.msk [vmem:[%s1588_s3 + $0xac] sm:$0xf] %vm772_vm3, %v972_v20  ;;  %v505_v25 = vadd.f32 %v1338_v30, %v504_v22  ;;  %v1102_v26 = vpop.f32.mrb[37].mxu1 }
 0x12b   :  { %v403_v27 = vpop.f32.mrb[38].mxu0  ;;  %v507_v28 = vpop.f32.mrb[38].mxu1 }
 0x12c   :  { %v544_v29 = vmax.f32 %v401_v23, 0.0  ;;  %v404_v31 = vadd.f32 %v1338_v30, %v403_v27  ;;  %v1051_v32 = vpop.f32.mrb[39].mxu0  ;;  %v570_v33 = vmax.f32 %v505_v25, 0.0  ;;  %v508_v34 = vadd.f32 %v1338_v30, %v507_v28  ;;  %v1103_v35 = vpop.f32.mrb[39].mxu1 }
 0x12e   :  { %v947_v36 = vpack.c.bf16 %v544_v29, %v544_v29  ;;  %v545_v37 = vmax.f32 %v404_v31, 0.0  ;;  %v973_v38 = vpack.c.bf16 %v570_v33, %v570_v33  ;;  %v571_v39 = vmax.f32 %v508_v34, 0.0 }
 0x130   :  { %791 = vst.msk [vmem:[%s1588_s3 + $0x48] sm:$0xf] %vm772_vm3, %v947_v36  ;;  %v948_v40 = vpack.c.bf16 %v545_v37, %v545_v37  ;;  %817 = vst.msk [vmem:[%s1588_s3 + $0xb0] sm:$0xf] %vm772_vm3, %v973_v38  ;;  %v974_v41 = vpack.c.bf16 %v571_v39, %v571_v39 }
 0x131   :  { %v408_v42 = vpop.f32.mrb[40].mxu0  ;;  %v512_v43 = vpop.f32.mrb[40].mxu1 }
 0x132   :  { %792 = vst.msk [vmem:[%s1588_s3 + $0x4c] sm:$0xf] %vm772_vm3, %v948_v40  ;;  %v409_v44 = vadd.f32 %v1338_v30, %v408_v42  ;;  %v1054_v45 = vpop.f32.mrb[41].mxu0  ;;  %818 = vst.msk [vmem:[%s1588_s3 + $0xb4] sm:$0xf] %vm772_vm3, %v974_v41  ;;  %v513_v46 = vadd.f32 %v1338_v30, %v512_v43  ;;  %v1106_v47 = vpop.f32.mrb[41].mxu1 }
 0x133   :  { %v411_v48 = vpop.f32.mrb[42].mxu0  ;;  %v515_v49 = vpop.f32.mrb[42].mxu1 }
 0x134   :  { %v546_v50 = vmax.f32 %v409_v44, 0.0  ;;  %v412_v51 = vadd.f32 %v1338_v30, %v411_v48  ;;  %v1055_v52 = vpop.f32.mrb[43].mxu0  ;;  %v572_v53 = vmax.f32 %v513_v46, 0.0  ;;  %v516_v54 = vadd.f32 %v1338_v30, %v515_v49  ;;  %v1107_v55 = vpop.f32.mrb[43].mxu1 }
 0x136   :  { %v949_v56 = vpack.c.bf16 %v546_v50, %v546_v50  ;;  %v547_v57 = vmax.f32 %v412_v51, 0.0  ;;  %v975_v58 = vpack.c.bf16 %v572_v53, %v572_v53  ;;  %v573_v59 = vmax.f32 %v516_v54, 0.0 }
 0x138   :  { %793 = vst.msk [vmem:[%s1588_s3 + $0x50] sm:$0xf] %vm772_vm3, %v949_v56  ;;  %v950_v60 = vpack.c.bf16 %v547_v57, %v547_v57  ;;  %819 = vst.msk [vmem:[%s1588_s3 + $0xb8] sm:$0xf] %vm772_vm3, %v975_v58  ;;  %v976_v61 = vpack.c.bf16 %v573_v59, %v573_v59 }
 0x139   :  { %v416_v62 = vpop.f32.mrb[44].mxu0  ;;  %v520_v63 = vpop.f32.mrb[44].mxu1 }
 0x13a   :  { %794 = vst.msk [vmem:[%s1588_s3 + $0x54] sm:$0xf] %vm772_vm3, %v950_v60  ;;  %v417_v0 = vadd.f32 %v1338_v30, %v416_v62  ;;  %v1058_v1 = vpop.f32.mrb[45].mxu0  ;;  %820 = vst.msk [vmem:[%s1588_s3 + $0xbc] sm:$0xf] %vm772_vm3, %v976_v61  ;;  %v521_v2 = vadd.f32 %v1338_v30, %v520_v63  ;;  %v1110_v3 = vpop.f32.mrb[45].mxu1 }
 0x13b   :  { %v419_v4 = vpop.f32.mrb[46].mxu0  ;;  %v523_v5 = vpop.f32.mrb[46].mxu1 }
 0x13c   :  { %v548_v6 = vmax.f32 %v417_v0, 0.0  ;;  %v420_v7 = vadd.f32 %v1338_v30, %v419_v4  ;;  %v1059_v8 = vpop.f32.mrb[47].mxu0  ;;  %v574_v9 = vmax.f32 %v521_v2, 0.0  ;;  %v1111_v10 = vpop.f32.mrb[47].mxu1 }
 0x13e   :  { %v951_v11 = vpack.c.bf16 %v548_v6, %v548_v6  ;;  %v549_v12 = vmax.f32 %v420_v7, 0.0  ;;  %v977_v13 = vpack.c.bf16 %v574_v9, %v574_v9 }
 0x140   :  { %795 = vst.msk [vmem:[%s1588_s3 + $0x58] sm:$0xf] %vm772_vm3, %v951_v11  ;;  %v952_v14 = vpack.c.bf16 %v549_v12, %v549_v12  ;;  %821 = vst.msk [vmem:[%s1588_s3 + $0xc0] sm:$0xf] %vm772_vm3, %v977_v13 }
 0x141   :  { %v424_v15 = vpop.f32.mrb[48].mxu0 }
 0x142   :  { %796 = vst.msk [vmem:[%s1588_s3 + $0x5c] sm:$0xf] %vm772_vm3, %v952_v14  ;;  %v425_v16 = vadd.f32 %v1338_v30, %v424_v15  ;;  %v1062_v17 = vpop.f32.mrb[49].mxu0 }
 0x143   :  { %v427_v18 = vpop.f32.mrb[50].mxu0 }
 0x144   :  { %v550_v19 = vmax.f32 %v425_v16, 0.0  ;;  %v428_v20 = vadd.f32 %v1338_v30, %v427_v18  ;;  %v1063_v21 = vpop.f32.mrb[51].mxu0 }
 0x146   :  { %v953_v22 = vpack.c.bf16 %v550_v19, %v550_v19  ;;  %v551_v23 = vmax.f32 %v428_v20, 0.0 }
 0x148   :  { %797 = vst.msk [vmem:[%s1588_s3 + $0x60] sm:$0xf] %vm772_vm3, %v953_v22  ;;  %v954_v24 = vpack.c.bf16 %v551_v23, %v551_v23 }
 0x14a   :  { %798 = vst.msk [vmem:[%s1588_s3 + $0x64] sm:$0xf] %vm772_vm3, %v954_v24 }

// kernel: cnn_base_forward_split.5
= control target key start
LH: loop header
LB: loop body
LE: loop exit
PB: predicated region body
PF: predicated region fallthrough
CT: control target
= control target key end

     0   :  { %s14916_s0 = inlined_call_operand.vmem [shape: bf16[2,6272], index: 0, kind: input, shape index: {}]   ;;  %s14917_s1 = inlined_call_operand.vmem [shape: bf16[2,6272], index: 1, kind: input, shape index: {}]   ;;  %s14918_s2 = inlined_call_operand.vmem [shape: bf16[6272,32], index: 2, kind: input, shape index: {}]   ;;  %s14919_s3 = inlined_call_operand.vmem [shape: f32[1,32], index: 3, kind: input, shape index: {}]   ;;  %s14920_s4 = inlined_call_operand.vmem [shape: bf16[32,32], index: 4, kind: input, shape index: {}]   ;;  %s14921_s5 = inlined_call_operand.vmem [shape: f32[1,32], index: 5, kind: input, shape index: {}]   ;;  %s14922_s6 = inlined_call_operand.vmem [shape: bf16[6272,32], index: 6, kind: input, shape index: {}]   ;;  %s14923_s7 = inlined_call_operand.vmem [shape: f32[1,32], index: 7, kind: input, shape index: {}]   ;;  %s14924_s8 = inlined_call_operand.vmem [shape: bf16[32,32], index: 8, kind: input, shape index: {}]   ;;  %s14925_s9 = inlined_call_operand.vmem [shape: f32[1,32], index: 9, kind: input, shape index: {}]   ;;  %s14926_s10 = inlined_call_operand.vmem [shape: bf16[32,1], index: 10, kind: input, shape index: {}]   ;;  %s14927_s11 = inlined_call_operand.<no memory space> [shape: f32[1,1], index: 11, kind: input, shape index: {}]   ;;  %s14928_s12 = inlined_call_operand.hbm [shape: f32[2,32], index: 12, kind: output, shape index: {0}]   ;;  %s14929_s13 = inlined_call_operand.vmem [shape: f32[2,1], index: 13, kind: output, shape index: {1}]  }
   0x1   :  { %v19_v0 = vstv %s14927_s11 }
   0x2   :  { %20 = vst [vmem:[#allocation2] sm:$0x1] %v19_v0 }
   0x3   :  { %v11254_v1 = vld [vmem:[%s14918_s2 + $0x40] sm:$0xff]   ;;  %v11258_v5 = vld [vmem:[%s14918_s2 + $0x48] sm:$0xff]   ;;  %v11262_v9 = vld [vmem:[%s14918_s2 + $0x50] sm:$0xff]   ;;  %v856_v28 = vlaneseq  ;;  %v12080_v36 = vmov 1966171168   ;;  %vm12082_vm0 = vmmov 0  }
   0x4   :  { %v11255_v2 = vld [vmem:[%s14918_s2] sm:$0xff]   ;;  %10103 = vmatprep.subr.bf16.mxu0 %v11254_v1  ;;  %v11259_v6 = vld [vmem:[%s14918_s2 + $0x8] sm:$0xff]   ;;  %v11263_v10 = vld [vmem:[%s14918_s2 + $0x10] sm:$0xff]   ;;  %v854_v37 = vunpack.c.l.s4 %v12080_v36  ;;  %vm4586_vm1 = vcmask 261120  }
   0x5   :  { %v11256_v3 = vld [vmem:[%s14918_s2 + $0xc0] sm:$0xff]   ;;  %10104 = vmatpush3.bf16.msra.mxu0 %v11255_v2  ;;  %v11260_v7 = vld [vmem:[%s14918_s2 + $0xc8] sm:$0xff]   ;;  %v11264_v11 = vld [vmem:[%s14918_s2 + $0xd0] sm:$0xff]   ;;  %v857_v33 = vshrl.u32 %v856_v28, 7 }
   0x6   :  { %v11257_v4 = vld [vmem:[%s14918_s2 + $0x80] sm:$0xff]   ;;  %10125 = vmatprep.subr.bf16.mxu1 %v11256_v3  ;;  %10105 = vmatprep.subr.bf16.mxu0 %v11258_v5  ;;  %v11261_v8 = vld [vmem:[%s14918_s2 + $0x88] sm:$0xff]   ;;  %v11265_v12 = vld [vmem:[%s14918_s2 + $0x90] sm:$0xff]   ;;  %v855_v40 = vunpack.c.0.s8 %v854_v37 }
   0x7   :  { %10126 = vmatpush3.bf16.msra.mxu1 %v11257_v4  ;;  %v11266_v13 = vld [vmem:[%s14918_s2 + $0x58] sm:$0xff]   ;;  %v11270_v17 = vld [vmem:[%s14918_s2 + $0x60] sm:$0xff]   ;;  %v11274_v21 = vld [vmem:[%s14918_s2 + $0x68] sm:$0xff]  }
   0x8   :  { %10127 = vmatprep.subr.bf16.mxu1 %v11260_v7  ;;  %v11267_v14 = vld [vmem:[%s14918_s2 + $0x18] sm:$0xff]   ;;  %v11271_v18 = vld [vmem:[%s14918_s2 + $0x20] sm:$0xff]   ;;  %v11275_v22 = vld [vmem:[%s14918_s2 + $0x28] sm:$0xff]   ;;  %v12262_v42 = vsub.s32 %v855_v40, %v857_v33 }
   0x9   :  { %10106 = vmatpush3.bf16.msra.mxu0 %v11259_v6  ;;  %v11268_v15 = vld [vmem:[%s14918_s2 + $0xd8] sm:$0xff]   ;;  %v11272_v19 = vld [vmem:[%s14918_s2 + $0xe0] sm:$0xff]   ;;  %v11276_v23 = vld [vmem:[%s14918_s2 + $0xe8] sm:$0xff]  }
   0xa   :  { %10107 = vmatprep.subr.bf16.mxu0 %v11262_v9  ;;  %v11269_v16 = vld [vmem:[%s14918_s2 + $0x98] sm:$0xff]   ;;  %v11273_v20 = vld [vmem:[%s14918_s2 + $0xa0] sm:$0xff]   ;;  %v11277_v24 = vld [vmem:[%s14918_s2 + $0xa8] sm:$0xff]  }
   0xb   :  { %10128 = vmatpush3.bf16.msra.mxu1 %v11261_v8  ;;  %v11278_v25 = vld [vmem:[%s14918_s2 + $0x70] sm:$0xff]   ;;  %v11282_v30 = vld [vmem:[%s14918_s2 + $0x78] sm:$0xff]   ;;  %v47_v34 = vld [vmem:[%s14916_s0] sm:$0xff] }
   0xc   :  { %10129 = vmatprep.subr.bf16.mxu1 %v11264_v11  ;;  %v11279_v26 = vld [vmem:[%s14918_s2 + $0x30] sm:$0xff]   ;;  %v11283_v31 = vld [vmem:[%s14918_s2 + $0x38] sm:$0xff]   ;;  %v11287_v38 = vld [vmem:[%s14918_s2 + $0x140] sm:$0xff]   ;;  %v852_v39 = vcombine.high %v47_v34, %v47_v34  ;;  %v859_v43 = vrot.slane %v47_v34, %v12262_v42 }
   0xd   :  { %10108 = vmatpush3.bf16.msra.mxu0 %v11263_v10  ;;  %v11280_v27 = vld [vmem:[%s14918_s2 + $0xf0] sm:$0xff]   ;;  %v11284_v32 = vld [vmem:[%s14918_s2 + $0xf8] sm:$0xff]   ;;  %v11289_v41 = vld [vmem:[%s14918_s2 + $0x1c0] sm:$0xff]  }
   0xe   :  { %10109 = vmatprep.subr.bf16.mxu0 %v11266_v13  ;;  %v11281_v29 = vld [vmem:[%s14918_s2 + $0xb0] sm:$0xff]   ;;  %v11286_v35 = vld [vmem:[%s14918_s2 + $0xb8] sm:$0xff]   ;;  %v12266_v44 = vrot.slane %v852_v39, %v12262_v42  ;;  %v867_v45 = vcombine.high %v859_v43, %v859_v43  ;;  %v875_v46 = vrot.slane %v859_v43, %v12262_v42  ;;  %v11288_v48 = vld [vmem:[%s14918_s2 + $0x100] sm:$0xff]  }
   0xf   :  { %10130 = vmatpush3.bf16.msra.mxu1 %v11265_v12  ;;  %v11290_v50 = vld [vmem:[%s14918_s2 + $0x180] sm:$0xff]   ;;  %v11291_v53 = vld [vmem:[%s14918_s2 + $0x148] sm:$0xff]   ;;  %v11295_v59 = vld [vmem:[%s14918_s2 + $0x150] sm:$0xff]  }
  0x10   :  { %10131 = vmatprep.subr.bf16.mxu1 %v11268_v15  ;;  %v868_v47 = vcombine.high %v12266_v44, %v12266_v44  ;;  %v889_v49 = vrot.slane %v867_v45, %v12262_v42  ;;  %v897_v52 = vcombine.high %v875_v46, %v875_v46  ;;  %v11292_v55 = vld [vmem:[%s14918_s2 + $0x108] sm:$0xff]   ;;  %v11296_v60 = vld [vmem:[%s14918_s2 + $0x110] sm:$0xff]   ;;  %v11299_v63 = vld [vmem:[%s14918_s2 + $0x158] sm:$0xff]  }
  0x11   :  { %10110 = vmatpush3.bf16.msra.mxu0 %v11267_v14  ;;  %v11293_v56 = vld [vmem:[%s14918_s2 + $0x1c8] sm:$0xff]   ;;  %v11297_v61 = vld [vmem:[%s14918_s2 + $0x1d0] sm:$0xff]   ;;  %v11300_v0 = vld [vmem:[%s14918_s2 + $0x118] sm:$0xff]  }
  0x12   :  { %10111 = vmatprep.subr.bf16.mxu0 %v11270_v17  ;;  %v896_v51 = vrot.slane %v868_v47, %v12262_v42  ;;  %3593 = vmatprep.mubr.bf16.mxu0 %v889_v49  ;;  %v899_v54 = vcombine.high %v889_v49, %v889_v49  ;;  %v11294_v58 = vld [vmem:[%s14918_s2 + $0x188] sm:$0xff]   ;;  %v11298_v62 = vld [vmem:[%s14918_s2 + $0x190] sm:$0xff]   ;;  %v11301_v1 = vld [vmem:[%s14918_s2 + $0x1d8] sm:$0xff]  }
  0x13   :  { %10132 = vmatpush3.bf16.msra.mxu1 %v11269_v16  ;;  %v11302_v2 = vld [vmem:[%s14918_s2 + $0x198] sm:$0xff]   ;;  %v11303_v3 = vld [vmem:[%s14918_s2 + $0x160] sm:$0xff]   ;;  %v11307_v7 = vld [vmem:[%s14918_s2 + $0x168] sm:$0xff]  }
  0x14   :  { %10133 = vmatprep.subr.bf16.mxu1 %v11272_v19  ;;  %v900_v57 = vcombine.high %v896_v51, %v896_v51  ;;  %3633 = vmatprep.mubr.bf16.mxu1 %v899_v54  ;;  %v11304_v4 = vld [vmem:[%s14918_s2 + $0x120] sm:$0xff]   ;;  %v11308_v8 = vld [vmem:[%s14918_s2 + $0x128] sm:$0xff]   ;;  %v11311_v11 = vld [vmem:[%s14918_s2 + $0x170] sm:$0xff]   ;;  %v882_v19 = vrot.slane %v12266_v44, %v12262_v42 }
  0x15   :  { %10112 = vmatpush3.bf16.msra.mxu0 %v11271_v18  ;;  %v11305_v5 = vld [vmem:[%s14918_s2 + $0x1e0] sm:$0xff]   ;;  %v11309_v9 = vld [vmem:[%s14918_s2 + $0x1e8] sm:$0xff]   ;;  %v11312_v12 = vld [vmem:[%s14918_s2 + $0x130] sm:$0xff]  }
  0x16   :  { %10113 = vmatprep.subr.bf16.mxu0 %v11274_v21  ;;  %v11306_v6 = vld [vmem:[%s14918_s2 + $0x1a0] sm:$0xff]   ;;  %v11310_v10 = vld [vmem:[%s14918_s2 + $0x1a8] sm:$0xff]   ;;  %v11313_v13 = vld [vmem:[%s14918_s2 + $0x1f0] sm:$0xff]  }
  0x17   :  { %10134 = vmatpush3.bf16.msra.mxu1 %v11273_v20  ;;  %v11314_v14 = vld [vmem:[%s14918_s2 + $0x1b0] sm:$0xff]   ;;  %v11315_v15 = vld [vmem:[%s14918_s2 + $0x178] sm:$0xff]   ;;  %v11319_v20 = vld [vmem:[%s14918_s2 + $0x240] sm:$0xff]  }
  0x18   :  { %10135 = vmatprep.subr.bf16.mxu1 %v11276_v23  ;;  %v11316_v16 = vld [vmem:[%s14918_s2 + $0x138] sm:$0xff]   ;;  %v11320_v21 = vld [vmem:[%s14918_s2 + $0x200] sm:$0xff]   ;;  %v11326_v28 = vld [vmem:[%s14918_s2 + $0x288] sm:$0xff]  }
  0x19   :  { %10114 = vmatpush3.bf16.msra.mxu0 %v11275_v22  ;;  %v11317_v17 = vld [vmem:[%s14918_s2 + $0x1f8] sm:$0xff]   ;;  %v11321_v22 = vld [vmem:[%s14918_s2 + $0x2c0] sm:$0xff]   ;;  %v11340_v43 = vld [vmem:[%s14918_s2 + $0x228] sm:$0xff]  }
  0x1a   :  { %10115 = vmatprep.subr.bf16.mxu0 %v11278_v25  ;;  %v11318_v18 = vld [vmem:[%s14918_s2 + $0x1b8] sm:$0xff]   ;;  %v11322_v23 = vld [vmem:[%s14918_s2 + $0x280] sm:$0xff]   ;;  %v11323_v25 = vld [vmem:[%s14918_s2 + $0x248] sm:$0xff]  }
  0x1b   :  { %10136 = vmatpush3.bf16.msra.mxu1 %v11277_v24  ;;  %v898_v24 = vcombine.high %v882_v19, %v882_v19  ;;  %v11331_v33 = vld [vmem:[%s14918_s2 + $0x258] sm:$0xff]   ;;  %v11335_v37 = vld [vmem:[%s14918_s2 + $0x260] sm:$0xff]   ;;  %v11341_v44 = vld [vmem:[%s14918_s2 + $0x2e8] sm:$0xff]  }
  0x1c   :  { %10137 = vmatprep.subr.bf16.mxu1 %v11280_v27  ;;  %v11325_v27 = vld [vmem:[%s14918_s2 + $0x2c8] sm:$0xff]   ;;  %v11332_v34 = vld [vmem:[%s14918_s2 + $0x218] sm:$0xff]   ;;  %v11337_v39 = vld [vmem:[%s14918_s2 + $0x2e0] sm:$0xff]  }
  0x1d   :  { %10116 = vmatpush3.bf16.msra.mxu0 %v11279_v26  ;;  %v11324_v26 = vld [vmem:[%s14918_s2 + $0x208] sm:$0xff]   ;;  %v11334_v36 = vld [vmem:[%s14918_s2 + $0x298] sm:$0xff]   ;;  %v11338_v40 = vld [vmem:[%s14918_s2 + $0x2a0] sm:$0xff]  }
  0x1e   :  { %10117 = vmatprep.subr.bf16.mxu0 %v11282_v30  ;;  %v11328_v30 = vld [vmem:[%s14918_s2 + $0x210] sm:$0xff]   ;;  %v11342_v45 = vld [vmem:[%s14918_s2 + $0x2a8] sm:$0xff]  }
  0x1f   :  { %10138 = vmatpush3.bf16.msra.mxu1 %v11281_v29  ;;  %v11327_v29 = vld [vmem:[%s14918_s2 + $0x250] sm:$0xff]   ;;  %v48_v47 = vld [vmem:[%s14916_s0 + $0x8] sm:$0xff] }
  0x20   :  { %10139 = vmatprep.subr.bf16.mxu1 %v11284_v32  ;;  %v11330_v32 = vld [vmem:[%s14918_s2 + $0x290] sm:$0xff]   ;;  %v908_v49 = vrot.slane %v48_v47, %v12262_v42 }
  0x21   :  { %10118 = vmatpush3.bf16.msra.mxu0 %v11283_v31  ;;  %v11329_v31 = vld [vmem:[%s14918_s2 + $0x2d0] sm:$0xff]  }
  0x22   :  { %10147 = vmatprep.subr.bf16.mxu0 %v11287_v38  ;;  %v11336_v38 = vld [vmem:[%s14918_s2 + $0x220] sm:$0xff]  }
  0x23   :  { %10140 = vmatpush3.bf16.msra.mxu1 %v11286_v35  ;;  %v11333_v35 = vld [vmem:[%s14918_s2 + $0x2d8] sm:$0xff]  }
  0x24   :  { %10169 = vmatprep.subr.bf16.mxu1 %v11289_v41  ;;  %3594 = vmatmul.mubr.bf16.vlgmr.msra.gmra.mrb[0].mxu0 %v875_v46  ;;  %v11339_v41 = vld [vmem:[%s14918_s2 + $0x268] sm:$0xff]   ;;  %v11343_v46 = vld [vmem:[%s14918_s2 + $0x270] sm:$0xff]  }
  0x25   :  { %10148 = vmatpush3.bf16.msra.mxu0 %v11288_v48  ;;  %3673 = vmatprep.mubr.bf16.mxu0 %v896_v51  ;;  %v11344_v48 = vld [vmem:[%s14918_s2 + $0x230] sm:$0xff]  }
  0x26   :  { %3634 = vmatmul.mubr.bf16.vlgmr.msra.gmra.mrb[0].mxu1 %v897_v52  ;;  %10149 = vmatprep.subr.bf16.mxu0 %v11291_v53  ;;  %v11345_v51 = vld [vmem:[%s14918_s2 + $0x2f0] sm:$0xff]   ;;  %v916_v53 = vcombine.high %v908_v49, %v908_v49 }
  0x27   :  { %10170 = vmatpush3.bf16.msra.mxu1 %v11290_v50  ;;  %3713 = vmatprep.mubr.bf16.mxu1 %v900_v57  ;;  %v901_v50 = vcombine.high %v48_v47, %v48_v47  ;;  %v11346_v52 = vld [vmem:[%s14918_s2 + $0x2b0] sm:$0xff]  }
  0x28   :  { %10171 = vmatprep.subr.bf16.mxu1 %v11293_v56  ;;  %v11348_v56 = vld [vmem:[%s14918_s2 + $0x238] sm:$0xff]   ;;  %v938_v57 = vrot.slane %v916_v53, %v12262_v42  ;;  %v11394_v47 = vld [vmem:[%s14918_s2 + $0x4d0] sm:$0xff]   ;;  %v11400_v53 = vld [vmem:[%s14918_s2 + $0x460] sm:$0xff]  }
  0x29   :  { %10150 = vmatpush3.bf16.msra.mxu0 %v11292_v55  ;;  %v12454_v54 = vrot.slane %v901_v50, %v12262_v42  ;;  %v11347_v55 = vld [vmem:[%s14918_s2 + $0x278] sm:$0xff]  }
  0x2a   :  { %10151 = vmatprep.subr.bf16.mxu0 %v11295_v59  ;;  %v11349_v59 = vld [vmem:[%s14918_s2 + $0x2f8] sm:$0xff]  }
  0x2b   :  { %10172 = vmatpush3.bf16.msra.mxu1 %v11294_v58  ;;  %v917_v58 = vcombine.high %v12454_v54, %v12454_v54  ;;  %v11397_v50 = vld [vmem:[%s14918_s2 + $0x418] sm:$0xff]  }
  0x2c   :  { %10173 = vmatprep.subr.bf16.mxu1 %v11297_v61  ;;  %v948_v61 = vcombine.high %v938_v57, %v938_v57 }
  0x2d   :  { %10152 = vmatpush3.bf16.msra.mxu0 %v11296_v60  ;;  %v11350_v60 = vld [vmem:[%s14918_s2 + $0x2b8] sm:$0xff]  }
  0x2e   :  { %10153 = vmatprep.subr.bf16.mxu0 %v11299_v63  ;;  %v11351_v63 = vld [vmem:[%s14918_s2 + $0x340] sm:$0xff]  }
  0x2f   :  { %10174 = vmatpush3.bf16.msra.mxu1 %v11298_v62  ;;  %v924_v62 = vrot.slane %v908_v49, %v12262_v42  ;;  %v11396_v49 = vld [vmem:[%s14918_s2 + $0x458] sm:$0xff]  }
  0x30   :  { %10175 = vmatprep.subr.bf16.mxu1 %v11301_v1  ;;  %v945_v1 = vrot.slane %v917_v58, %v12262_v42  ;;  %v11405_v58 = vld [vmem:[%s14918_s2 + $0x428] sm:$0xff]  }
  0x31   :  { %10154 = vmatpush3.bf16.msra.mxu0 %v11300_v0  ;;  %v11352_v0 = vld [vmem:[%s14918_s2 + $0x300] sm:$0xff]  }
  0x32   :  { %10155 = vmatprep.subr.bf16.mxu0 %v11303_v3  ;;  %v11354_v3 = vld [vmem:[%s14918_s2 + $0x380] sm:$0xff]  }
  0x33   :  { %10176 = vmatpush3.bf16.msra.mxu1 %v11302_v2  ;;  %v11353_v2 = vld [vmem:[%s14918_s2 + $0x3c0] sm:$0xff]  }
  0x34   :  { %10177 = vmatprep.subr.bf16.mxu1 %v11305_v5  ;;  %v11355_v5 = vld [vmem:[%s14918_s2 + $0x348] sm:$0xff]  }
  0x35   :  { %10156 = vmatpush3.bf16.msra.mxu0 %v11304_v4  ;;  %v946_v4 = vcombine.high %v924_v62, %v924_v62 }
  0x36   :  { %10157 = vmatprep.subr.bf16.mxu0 %v11307_v7  ;;  %v949_v7 = vcombine.high %v945_v1, %v945_v1 }
  0x37   :  { %10178 = vmatpush3.bf16.msra.mxu1 %v11306_v6  ;;  %v11356_v6 = vld [vmem:[%s14918_s2 + $0x308] sm:$0xff]  }
  0x38   :  { %10179 = vmatprep.subr.bf16.mxu1 %v11309_v9  ;;  %v11358_v9 = vld [vmem:[%s14918_s2 + $0x388] sm:$0xff]  }
  0x39   :  { %10158 = vmatpush3.bf16.msra.mxu0 %v11308_v8  ;;  %v11357_v8 = vld [vmem:[%s14918_s2 + $0x3c8] sm:$0xff]  }
  0x3a   :  { %10159 = vmatprep.subr.bf16.mxu0 %v11311_v11  ;;  %v11360_v11 = vld [vmem:[%s14918_s2 + $0x310] sm:$0xff]  }
  0x3b   :  { %10180 = vmatpush3.bf16.msra.mxu1 %v11310_v10  ;;  %v11359_v10 = vld [vmem:[%s14918_s2 + $0x350] sm:$0xff]  }
  0x3c   :  { %10181 = vmatprep.subr.bf16.mxu1 %v11313_v13  ;;  %v11362_v13 = vld [vmem:[%s14918_s2 + $0x390] sm:$0xff]  }
  0x3d   :  { %10160 = vmatpush3.bf16.msra.mxu0 %v11312_v12  ;;  %v11361_v12 = vld [vmem:[%s14918_s2 + $0x3d0] sm:$0xff]  }
  0x3e   :  { %10161 = vmatprep.subr.bf16.mxu0 %v11315_v15  ;;  %v11364_v15 = vld [vmem:[%s14918_s2 + $0x318] sm:$0xff]  }
  0x3f   :  { %10182 = vmatpush3.bf16.msra.mxu1 %v11314_v14  ;;  %v11363_v14 = vld [vmem:[%s14918_s2 + $0x358] sm:$0xff]  }
  0x40   :  { %10183 = vmatprep.subr.bf16.mxu1 %v11317_v17  ;;  %v11366_v17 = vld [vmem:[%s14918_s2 + $0x398] sm:$0xff]  }
  0x41   :  { %10162 = vmatpush3.bf16.msra.mxu0 %v11316_v16  ;;  %v11365_v16 = vld [vmem:[%s14918_s2 + $0x3d8] sm:$0xff]  }
  0x42   :  { %10191 = vmatprep.subr.bf16.mxu0 %v11319_v20  ;;  %v11369_v20 = vld [vmem:[%s14918_s2 + $0x3e0] sm:$0xff]  }
  0x43   :  { %10184 = vmatpush3.bf16.msra.mxu1 %v11318_v18  ;;  %v11367_v18 = vld [vmem:[%s14918_s2 + $0x360] sm:$0xff]  }
  0x44   :  { %3674 = vmatmul.mubr.bf16.vlgmr.msra.gmra.mrb[4].mxu0 %v882_v19  ;;  %10213 = vmatprep.subr.bf16.mxu1 %v11321_v22  ;;  %v11368_v19 = vld [vmem:[%s14918_s2 + $0x320] sm:$0xff]   ;;  %v11371_v22 = vld [vmem:[%s14918_s2 + $0x368] sm:$0xff]  }
  0x45   :  { %10192 = vmatpush3.bf16.msra.mxu0 %v11320_v21  ;;  %3753 = vmatprep.mubr.bf16.mxu0 %v938_v57  ;;  %v11370_v21 = vld [vmem:[%s14918_s2 + $0x3a0] sm:$0xff]   ;;  %v11404_v57 = vld [vmem:[%s14918_s2 + $0x468] sm:$0xff]  }
  0x46   :  { %3714 = vmatmul.mubr.bf16.vlgmr.msra.gmra.mrb[4].mxu1 %v898_v24  ;;  %10193 = vmatprep.subr.bf16.mxu0 %v11323_v25  ;;  %v11373_v24 = vld [vmem:[%s14918_s2 + $0x3e8] sm:$0xff]  }
  0x47   :  { %10214 = vmatpush3.bf16.msra.mxu1 %v11322_v23  ;;  %3793 = vmatprep.mubr.bf16.mxu1 %v948_v61  ;;  %v11372_v23 = vld [vmem:[%s14918_s2 + $0x328] sm:$0xff]   ;;  %v11408_v61 = vld [vmem:[%s14918_s2 + $0x470] sm:$0xff]  }
  0x48   :  { %10215 = vmatprep.subr.bf16.mxu1 %v11325_v27  ;;  %v11374_v25 = vld [vmem:[%s14918_s2 + $0x3a8] sm:$0xff]   ;;  %v11376_v27 = vld [vmem:[%s14918_s2 + $0x330] sm:$0xff]  }
  0x49   :  { %10194 = vmatpush3.bf16.msra.mxu0 %v11324_v26  ;;  %v11375_v26 = vld [vmem:[%s14918_s2 + $0x370] sm:$0xff]  }
  0x4a   :  { %10195 = vmatprep.subr.bf16.mxu0 %v11327_v29  ;;  %v11378_v29 = vld [vmem:[%s14918_s2 + $0x3b0] sm:$0xff]  }
  0x4b   :  { %10216 = vmatpush3.bf16.msra.mxu1 %v11326_v28  ;;  %v11377_v28 = vld [vmem:[%s14918_s2 + $0x3f0] sm:$0xff]  }
  0x4c   :  { %10217 = vmatprep.subr.bf16.mxu1 %v11329_v31  ;;  %v11380_v31 = vld [vmem:[%s14918_s2 + $0x338] sm:$0xff]  }
  0x4d   :  { %10196 = vmatpush3.bf16.msra.mxu0 %v11328_v30  ;;  %v11379_v30 = vld [vmem:[%s14918_s2 + $0x378] sm:$0xff]  }
  0x4e   :  { %10197 = vmatprep.subr.bf16.mxu0 %v11331_v33  ;;  %v11383_v33 = vld [vmem:[%s14918_s2 + $0x3b8] sm:$0xff]  }
  0x4f   :  { %10218 = vmatpush3.bf16.msra.mxu1 %v11330_v32  ;;  %v11381_v32 = vld [vmem:[%s14918_s2 + $0x3f8] sm:$0xff]  }
  0x50   :  { %10219 = vmatprep.subr.bf16.mxu1 %v11333_v35  ;;  %v11384_v35 = vld [vmem:[%s14918_s2 + $0x440] sm:$0xff]  }
  0x51   :  { %10198 = vmatpush3.bf16.msra.mxu0 %v11332_v34  ;;  %v931_v34 = vrot.slane %v12454_v54, %v12262_v42  ;;  %v11401_v54 = vld [vmem:[%s14918_s2 + $0x420] sm:$0xff]  }
  0x52   :  { %10199 = vmatprep.subr.bf16.mxu0 %v11335_v37  ;;  %v11386_v37 = vld [vmem:[%s14918_s2 + $0x4c0] sm:$0xff]  }
  0x53   :  { %10220 = vmatpush3.bf16.msra.mxu1 %v11334_v36  ;;  %v11385_v36 = vld [vmem:[%s14918_s2 + $0x400] sm:$0xff]  }
  0x54   :  { %10221 = vmatprep.subr.bf16.mxu1 %v11337_v39  ;;  %v947_v39 = vcombine.high %v931_v34, %v931_v34 }
  0x55   :  { %10200 = vmatpush3.bf16.msra.mxu0 %v11336_v38  ;;  %v11387_v38 = vld [vmem:[%s14918_s2 + $0x480] sm:$0xff]  }
  0x56   :  { %10201 = vmatprep.subr.bf16.mxu0 %v11339_v41  ;;  %v11389_v41 = vld [vmem:[%s14918_s2 + $0x408] sm:$0xff]  }
  0x57   :  { %10222 = vmatpush3.bf16.msra.mxu1 %v11338_v40  ;;  %v11388_v40 = vld [vmem:[%s14918_s2 + $0x448] sm:$0xff]  }
  0x58   :  { %10223 = vmatprep.subr.bf16.mxu1 %v11341_v44  ;;  %v11391_v44 = vld [vmem:[%s14918_s2 + $0x488] sm:$0xff]  }
  0x59   :  { %10202 = vmatpush3.bf16.msra.mxu0 %v11340_v43  ;;  %v11390_v43 = vld [vmem:[%s14918_s2 + $0x4c8] sm:$0xff]  }
  0x5a   :  { %10203 = vmatprep.subr.bf16.mxu0 %v11343_v46  ;;  %v11393_v46 = vld [vmem:[%s14918_s2 + $0x410] sm:$0xff]  }
  0x5b   :  { %10224 = vmatpush3.bf16.msra.mxu1 %v11342_v45  ;;  %v11392_v45 = vld [vmem:[%s14918_s2 + $0x450] sm:$0xff]  }
  0x5c   :  { %10225 = vmatprep.subr.bf16.mxu1 %v11345_v51  ;;  %v11398_v51 = vld [vmem:[%s14918_s2 + $0x4d8] sm:$0xff]  }
  0x5d   :  { %10204 = vmatpush3.bf16.msra.mxu0 %v11344_v48  ;;  %v11395_v48 = vld [vmem:[%s14918_s2 + $0x490] sm:$0xff]  }
  0x5e   :  { %10205 = vmatprep.subr.bf16.mxu0 %v11347_v55  ;;  %v11402_v55 = vld [vmem:[%s14918_s2 + $0x4e0] sm:$0xff]  }
  0x5f   :  { %10226 = vmatpush3.bf16.msra.mxu1 %v11346_v52  ;;  %v11399_v52 = vld [vmem:[%s14918_s2 + $0x498] sm:$0xff]  }
  0x60   :  { %10227 = vmatprep.subr.bf16.mxu1 %v11349_v59  ;;  %v11406_v59 = vld [vmem:[%s14918_s2 + $0x4e8] sm:$0xff]  }
  0x61   :  { %10206 = vmatpush3.bf16.msra.mxu0 %v11348_v56  ;;  %v11403_v56 = vld [vmem:[%s14918_s2 + $0x4a0] sm:$0xff]  }
  0x62   :  { %10235 = vmatprep.subr.bf16.mxu0 %v11351_v63  ;;  %v11409_v63 = vld [vmem:[%s14918_s2 + $0x430] sm:$0xff]  }
  0x63   :  { %10228 = vmatpush3.bf16.msra.mxu1 %v11350_v60  ;;  %v11407_v60 = vld [vmem:[%s14918_s2 + $0x4a8] sm:$0xff]  }
  0x64   :  { %3754 = vmatmul.mubr.bf16.vlgmr.msra.gmra.mrb[8].mxu0 %v924_v62  ;;  %10257 = vmatprep.subr.bf16.mxu1 %v11353_v2  ;;  %v49_v62 = vld [vmem:[%s14916_s0 + $0x10] sm:$0xff] }
  0x65   :  { %10236 = vmatpush3.bf16.msra.mxu0 %v11352_v0  ;;  %3833 = vmatprep.mubr.bf16.mxu0 %v945_v1  ;;  %v957_v0 = vrot.slane %v49_v62, %v12262_v42  ;;  %v950_v1 = vcombine.high %v49_v62, %v49_v62  ;;  %v11410_v2 = vld [vmem:[%s14918_s2 + $0x4f0] sm:$0xff]  }
  0x66   :  { %3794 = vmatmul.mubr.bf16.vlgmr.msra.gmra.mrb[8].mxu1 %v946_v4  ;;  %10237 = vmatprep.subr.bf16.mxu0 %v11355_v5  ;;  %v11459_v62 = vld [vmem:[%s14918_s2 + $0x6d0] sm:$0xff]  }
  0x67   :  { %10258 = vmatpush3.bf16.msra.mxu1 %v11354_v3  ;;  %3873 = vmatprep.mubr.bf16.mxu1 %v949_v7  ;;  %v11411_v3 = vld [vmem:[%s14918_s2 + $0x4b0] sm:$0xff]   ;;  %v965_v4 = vcombine.high %v957_v0, %v957_v0  ;;  %v12660_v5 = vrot.slane %v950_v1, %v12262_v42  ;;  %v11413_v7 = vld [vmem:[%s14918_s2 + $0x438] sm:$0xff]  }
  0x68   :  { %10259 = vmatprep.subr.bf16.mxu1 %v11357_v8  ;;  %v11462_v1 = vld [vmem:[%s14918_s2 + $0x618] sm:$0xff]  }
  0x69   :  { %10238 = vmatpush3.bf16.msra.mxu0 %v11356_v6  ;;  %v11412_v6 = vld [vmem:[%s14918_s2 + $0x478] sm:$0xff]   ;;  %v987_v8 = vrot.slane %v965_v4, %v12262_v42  ;;  %v11465_v4 = vld [vmem:[%s14918_s2 + $0x660] sm:$0xff]  }
  0x6a   :  { %10239 = vmatprep.subr.bf16.mxu0 %v11359_v10  ;;  %v11414_v10 = vld [vmem:[%s14918_s2 + $0x4f8] sm:$0xff]  }
  0x6b   :  { %10260 = vmatpush3.bf16.msra.mxu1 %v11358_v9  ;;  %v966_v9 = vcombine.high %v12660_v5, %v12660_v5 }
  0x6c   :  { %10261 = vmatprep.subr.bf16.mxu1 %v11361_v12  ;;  %v997_v12 = vcombine.high %v987_v8, %v987_v8 }
  0x6d   :  { %10240 = vmatpush3.bf16.msra.mxu0 %v11360_v11  ;;  %v11415_v11 = vld [vmem:[%s14918_s2 + $0x4b8] sm:$0xff]  }
  0x6e   :  { %10241 = vmatprep.subr.bf16.mxu0 %v11363_v14  ;;  %v11416_v14 = vld [vmem:[%s14918_s2 + $0x540] sm:$0xff]  }
  0x6f   :  { %10262 = vmatpush3.bf16.msra.mxu1 %v11362_v13  ;;  %v973_v13 = vrot.slane %v957_v0, %v12262_v42  ;;  %v11461_v0 = vld [vmem:[%s14918_s2 + $0x658] sm:$0xff]  }
  0x70   :  { %10263 = vmatprep.subr.bf16.mxu1 %v11365_v16  ;;  %v994_v16 = vrot.slane %v966_v9, %v12262_v42  ;;  %v11470_v9 = vld [vmem:[%s14918_s2 + $0x628] sm:$0xff]  }
  0x71   :  { %10242 = vmatpush3.bf16.msra.mxu0 %v11364_v15  ;;  %v11417_v15 = vld [vmem:[%s14918_s2 + $0x500] sm:$0xff]  }
  0x72   :  { %10243 = vmatprep.subr.bf16.mxu0 %v11367_v18  ;;  %v11419_v18 = vld [vmem:[%s14918_s2 + $0x580] sm:$0xff]  }
  0x73   :  { %10264 = vmatpush3.bf16.msra.mxu1 %v11366_v17  ;;  %v11418_v17 = vld [vmem:[%s14918_s2 + $0x5c0] sm:$0xff]  }
  0x74   :  { %10265 = vmatprep.subr.bf16.mxu1 %v11369_v20  ;;  %v11420_v20 = vld [vmem:[%s14918_s2 + $0x548] sm:$0xff]  }
  0x75   :  { %10244 = vmatpush3.bf16.msra.mxu0 %v11368_v19  ;;  %v995_v19 = vcombine.high %v973_v13, %v973_v13 }
  0x76   :  { %10245 = vmatprep.subr.bf16.mxu0 %v11371_v22  ;;  %v998_v22 = vcombine.high %v994_v16, %v994_v16 }
  0x77   :  { %10266 = vmatpush3.bf16.msra.mxu1 %v11370_v21  ;;  %v11421_v21 = vld [vmem:[%s14918_s2 + $0x508] sm:$0xff]  }
  0x78   :  { %10267 = vmatprep.subr.bf16.mxu1 %v11373_v24  ;;  %v11423_v24 = vld [vmem:[%s14918_s2 + $0x588] sm:$0xff]  }
  0x79   :  { %10246 = vmatpush3.bf16.msra.mxu0 %v11372_v23  ;;  %v11422_v23 = vld [vmem:[%s14918_s2 + $0x5c8] sm:$0xff]  }
  0x7a   :  { %10247 = vmatprep.subr.bf16.mxu0 %v11375_v26  ;;  %v11425_v26 = vld [vmem:[%s14918_s2 + $0x510] sm:$0xff]  }
  0x7b   :  { %10268 = vmatpush3.bf16.msra.mxu1 %v11374_v25  ;;  %v11424_v25 = vld [vmem:[%s14918_s2 + $0x550] sm:$0xff]  }
  0x7c   :  { %10269 = vmatprep.subr.bf16.mxu1 %v11377_v28  ;;  %v11427_v28 = vld [vmem:[%s14918_s2 + $0x590] sm:$0xff]  }
  0x7d   :  { %10248 = vmatpush3.bf16.msra.mxu0 %v11376_v27  ;;  %v11426_v27 = vld [vmem:[%s14918_s2 + $0x5d0] sm:$0xff]  }
  0x7e   :  { %10249 = vmatprep.subr.bf16.mxu0 %v11379_v30  ;;  %v11429_v30 = vld [vmem:[%s14918_s2 + $0x518] sm:$0xff]  }
  0x7f   :  { %10270 = vmatpush3.bf16.msra.mxu1 %v11378_v29  ;;  %v11428_v29 = vld [vmem:[%s14918_s2 + $0x558] sm:$0xff]  }
  0x80   :  { %10271 = vmatprep.subr.bf16.mxu1 %v11381_v32  ;;  %v11431_v32 = vld [vmem:[%s14918_s2 + $0x598] sm:$0xff]  }
  0x81   :  { %10250 = vmatpush3.bf16.msra.mxu0 %v11380_v31  ;;  %v11430_v31 = vld [vmem:[%s14918_s2 + $0x5d8] sm:$0xff]  }
  0x82   :  { %10279 = vmatprep.subr.bf16.mxu0 %v11384_v35  ;;  %v11434_v35 = vld [vmem:[%s14918_s2 + $0x5e0] sm:$0xff]  }
  0x83   :  { %10272 = vmatpush3.bf16.msra.mxu1 %v11383_v33  ;;  %v11432_v33 = vld [vmem:[%s14918_s2 + $0x560] sm:$0xff]  }
  0x84   :  { %3834 = vmatmul.mubr.bf16.vlgmr.msra.gmra.mrb[12].mxu0 %v931_v34  ;;  %10301 = vmatprep.subr.bf16.mxu1 %v11386_v37  ;;  %v11433_v34 = vld [vmem:[%s14918_s2 + $0x520] sm:$0xff]   ;;  %v11436_v37 = vld [vmem:[%s14918_s2 + $0x568] sm:$0xff]  }
  0x85   :  { %10280 = vmatpush3.bf16.msra.mxu0 %v11385_v36  ;;  %3913 = vmatprep.mubr.bf16.mxu0 %v987_v8  ;;  %v11435_v36 = vld [vmem:[%s14918_s2 + $0x5a0] sm:$0xff]   ;;  %v11469_v8 = vld [vmem:[%s14918_s2 + $0x668] sm:$0xff]  }
  0x86   :  { %3874 = vmatmul.mubr.bf16.vlgmr.msra.gmra.mrb[12].mxu1 %v947_v39  ;;  %10281 = vmatprep.subr.bf16.mxu0 %v11388_v40  ;;  %v11438_v39 = vld [vmem:[%s14918_s2 + $0x5e8] sm:$0xff]  }
  0x87   :  { %10302 = vmatpush3.bf16.msra.mxu1 %v11387_v38  ;;  %3953 = vmatprep.mubr.bf16.mxu1 %v997_v12  ;;  %v11437_v38 = vld [vmem:[%s14918_s2 + $0x528] sm:$0xff]   ;;  %v11473_v12 = vld [vmem:[%s14918_s2 + $0x670] sm:$0xff]  }
  0x88   :  { %10303 = vmatprep.subr.bf16.mxu1 %v11390_v43  ;;  %v11439_v40 = vld [vmem:[%s14918_s2 + $0x5a8] sm:$0xff]   ;;  %v11441_v43 = vld [vmem:[%s14918_s2 + $0x530] sm:$0xff]  }
  0x89   :  { %10282 = vmatpush3.bf16.msra.mxu0 %v11389_v41  ;;  %v11440_v41 = vld [vmem:[%s14918_s2 + $0x570] sm:$0xff]  }
  0x8a   :  { %10283 = vmatprep.subr.bf16.mxu0 %v11392_v45  ;;  %v11443_v45 = vld [vmem:[%s14918_s2 + $0x5b0] sm:$0xff]  }
  0x8b   :  { %10304 = vmatpush3.bf16.msra.mxu1 %v11391_v44  ;;  %v11442_v44 = vld [vmem:[%s14918_s2 + $0x5f0] sm:$0xff]  }
  0x8c   :  { %10305 = vmatprep.subr.bf16.mxu1 %v11394_v47  ;;  %v11445_v47 = vld [vmem:[%s14918_s2 + $0x538] sm:$0xff]  }
  0x8d   :  { %10284 = vmatpush3.bf16.msra.mxu0 %v11393_v46  ;;  %v11444_v46 = vld [vmem:[%s14918_s2 + $0x578] sm:$0xff]  }
  0x8e   :  { %10285 = vmatprep.subr.bf16.mxu0 %v11396_v49  ;;  %v11448_v49 = vld [vmem:[%s14918_s2 + $0x5b8] sm:$0xff]  }
  0x8f   :  { %10306 = vmatpush3.bf16.msra.mxu1 %v11395_v48  ;;  %v11446_v48 = vld [vmem:[%s14918_s2 + $0x5f8] sm:$0xff]  }
  0x90   :  { %10307 = vmatprep.subr.bf16.mxu1 %v11398_v51  ;;  %v11449_v51 = vld [vmem:[%s14918_s2 + $0x640] sm:$0xff]  }
  0x91   :  { %10286 = vmatpush3.bf16.msra.mxu0 %v11397_v50  ;;  %v980_v50 = vrot.slane %v12660_v5, %v12262_v42  ;;  %v11466_v5 = vld [vmem:[%s14918_s2 + $0x620] sm:$0xff]  }
  0x92   :  { %10287 = vmatprep.subr.bf16.mxu0 %v11400_v53  ;;  %v11451_v53 = vld [vmem:[%s14918_s2 + $0x6c0] sm:$0xff]  }
  0x93   :  { %10308 = vmatpush3.bf16.msra.mxu1 %v11399_v52  ;;  %v11450_v52 = vld [vmem:[%s14918_s2 + $0x600] sm:$0xff]  }
  0x94   :  { %10309 = vmatprep.subr.bf16.mxu1 %v11402_v55  ;;  %v996_v55 = vcombine.high %v980_v50, %v980_v50 }
  0x95   :  { %10288 = vmatpush3.bf16.msra.mxu0 %v11401_v54  ;;  %v11452_v54 = vld [vmem:[%s14918_s2 + $0x680] sm:$0xff]  }
  0x96   :  { %10289 = vmatprep.subr.bf16.mxu0 %v11404_v57  ;;  %v11454_v57 = vld [vmem:[%s14918_s2 + $0x608] sm:$0xff]  }
  0x97   :  { %10310 = vmatpush3.bf16.msra.mxu1 %v11403_v56  ;;  %v11453_v56 = vld [vmem:[%s14918_s2 + $0x648] sm:$0xff]  }
  0x98   :  { %10311 = vmatprep.subr.bf16.mxu1 %v11406_v59  ;;  %v11456_v59 = vld [vmem:[%s14918_s2 + $0x688] sm:$0xff]  }
  0x99   :  { %10290 = vmatpush3.bf16.msra.mxu0 %v11405_v58  ;;  %v11455_v58 = vld [vmem:[%s14918_s2 + $0x6c8] sm:$0xff]  }
  0x9a   :  { %10291 = vmatprep.subr.bf16.mxu0 %v11408_v61  ;;  %v11458_v61 = vld [vmem:[%s14918_s2 + $0x610] sm:$0xff]  }
  0x9b   :  { %10312 = vmatpush3.bf16.msra.mxu1 %v11407_v60  ;;  %v11457_v60 = vld [vmem:[%s14918_s2 + $0x650] sm:$0xff]  }
  0x9c   :  { %10313 = vmatprep.subr.bf16.mxu1 %v11410_v2  ;;  %v11463_v2 = vld [vmem:[%s14918_s2 + $0x6d8] sm:$0xff]  }
  0x9d   :  { %10292 = vmatpush3.bf16.msra.mxu0 %v11409_v63  ;;  %v11460_v63 = vld [vmem:[%s14918_s2 + $0x690] sm:$0xff]  }
  0x9e   :  { %10293 = vmatprep.subr.bf16.mxu0 %v11412_v6  ;;  %v11467_v6 = vld [vmem:[%s14918_s2 + $0x6e0] sm:$0xff]  }
  0x9f   :  { %10314 = vmatpush3.bf16.msra.mxu1 %v11411_v3  ;;  %v11464_v3 = vld [vmem:[%s14918_s2 + $0x698] sm:$0xff]  }
  0xa0   :  { %10315 = vmatprep.subr.bf16.mxu1 %v11414_v10  ;;  %v11471_v10 = vld [vmem:[%s14918_s2 + $0x6e8] sm:$0xff]  }
  0xa1   :  { %10294 = vmatpush3.bf16.msra.mxu0 %v11413_v7  ;;  %v11468_v7 = vld [vmem:[%s14918_s2 + $0x6a0] sm:$0xff]  }
  0xa2   :  { %10323 = vmatprep.subr.bf16.mxu0 %v11416_v14  ;;  %v11475_v14 = vld [vmem:[%s14918_s2 + $0x6f0] sm:$0xff]  }
  0xa3   :  { %10316 = vmatpush3.bf16.msra.mxu1 %v11415_v11  ;;  %v11472_v11 = vld [vmem:[%s14918_s2 + $0x6a8] sm:$0xff]  }
  0xa4   :  { %3914 = vmatmul.mubr.bf16.vlgmr.msra.gmra.mrb[16].mxu0 %v973_v13  ;;  %10345 = vmatprep.subr.bf16.mxu1 %v11418_v17  ;;  %v50_v13 = vld [vmem:[%s14916_s0 + $0x18] sm:$0xff]  ;;  %v11474_v17 = vld [vmem:[%s14918_s2 + $0x630] sm:$0xff]  }
  0xa5   :  { %10324 = vmatpush3.bf16.msra.mxu0 %v11417_v15  ;;  %3993 = vmatprep.mubr.bf16.mxu0 %v994_v16  ;;  %v1006_v15 = vrot.slane %v50_v13, %v12262_v42  ;;  %v999_v16 = vcombine.high %v50_v13, %v50_v13  ;;  %v11513_v13 = vld [vmem:[%s14918_s2 + $0x7b8] sm:$0xff]  }
  0xa6   :  { %3954 = vmatmul.mubr.bf16.vlgmr.msra.gmra.mrb[16].mxu1 %v995_v19  ;;  %10325 = vmatprep.subr.bf16.mxu0 %v11420_v20 }
  0xa7   :  { %10346 = vmatpush3.bf16.msra.mxu1 %v11419_v18  ;;  %4033 = vmatprep.mubr.bf16.mxu1 %v998_v22  ;;  %v11477_v18 = vld [vmem:[%s14918_s2 + $0x678] sm:$0xff]   ;;  %v1014_v19 = vcombine.high %v1006_v15, %v1006_v15  ;;  %v12866_v20 = vrot.slane %v999_v16, %v12262_v42  ;;  %v11515_v16 = vld [vmem:[%s14918_s2 + $0x800] sm:$0xff]  }
  0xa8   :  { %10347 = vmatprep.subr.bf16.mxu1 %v11422_v23  ;;  %v11479_v22 = vld [vmem:[%s14918_s2 + $0x6f8] sm:$0xff]  }
  0xa9   :  { %10326 = vmatpush3.bf16.msra.mxu0 %v11421_v21  ;;  %v11476_v21 = vld [vmem:[%s14918_s2 + $0x6b0] sm:$0xff]   ;;  %v1036_v23 = vrot.slane %v1014_v19, %v12262_v42 }
  0xaa   :  { %10327 = vmatprep.subr.bf16.mxu0 %v11424_v25  ;;  %v11478_v25 = vld [vmem:[%s14918_s2 + $0x638] sm:$0xff]  }
  0xab   :  { %10348 = vmatpush3.bf16.msra.mxu1 %v11423_v24  ;;  %v1015_v24 = vcombine.high %v12866_v20, %v12866_v20 }
  0xac   :  { %10349 = vmatprep.subr.bf16.mxu1 %v11426_v27  ;;  %v11481_v27 = vld [vmem:[%s14918_s2 + $0x740] sm:$0xff]  }
  0xad   :  { %10328 = vmatpush3.bf16.msra.mxu0 %v11425_v26  ;;  %v1022_v26 = vrot.slane %v1006_v15, %v12262_v42  ;;  %v11514_v15 = vld [vmem:[%s14918_s2 + $0x840] sm:$0xff]  }
  0xae   :  { %10329 = vmatprep.subr.bf16.mxu0 %v11428_v29  ;;  %v11480_v29 = vld [vmem:[%s14918_s2 + $0x6b8] sm:$0xff]  }
  0xaf   :  { %10350 = vmatpush3.bf16.msra.mxu1 %v11427_v28  ;;  %v1046_v28 = vcombine.high %v1036_v23, %v1036_v23 }
  0xb0   :  { %10351 = vmatprep.subr.bf16.mxu1 %v11430_v31  ;;  %v11483_v31 = vld [vmem:[%s14918_s2 + $0x7c0] sm:$0xff]  }
  0xb1   :  { %10330 = vmatpush3.bf16.msra.mxu0 %v11429_v30  ;;  %v1043_v30 = vrot.slane %v1015_v24, %v12262_v42  ;;  %v11522_v24 = vld [vmem:[%s14918_s2 + $0x850] sm:$0xff]  }
  0xb2   :  { %10331 = vmatprep.subr.bf16.mxu0 %v11432_v33  ;;  %v1044_v33 = vcombine.high %v1022_v26, %v1022_v26 }
  0xb3   :  { %10352 = vmatpush3.bf16.msra.mxu1 %v11431_v32  ;;  %v11482_v32 = vld [vmem:[%s14918_s2 + $0x700] sm:$0xff]  }
  0xb4   :  { %10353 = vmatprep.subr.bf16.mxu1 %v11434_v35  ;;  %v11484_v35 = vld [vmem:[%s14918_s2 + $0x780] sm:$0xff]  }
  0xb5   :  { %10332 = vmatpush3.bf16.msra.mxu0 %v11433_v34  ;;  %v11485_v34 = vld [vmem:[%s14918_s2 + $0x748] sm:$0xff]  }
  0xb6   :  { %10333 = vmatprep.subr.bf16.mxu0 %v11436_v37  ;;  %v11487_v37 = vld [vmem:[%s14918_s2 + $0x7c8] sm:$0xff]  }
  0xb7   :  { %10354 = vmatpush3.bf16.msra.mxu1 %v11435_v36  ;;  %v1047_v36 = vcombine.high %v1043_v30, %v1043_v30 }
  0xb8   :  { %10355 = vmatprep.subr.bf16.mxu1 %v11438_v39  ;;  %v11489_v39 = vld [vmem:[%s14918_s2 + $0x750] sm:$0xff]  }
  0xb9   :  { %10334 = vmatpush3.bf16.msra.mxu0 %v11437_v38  ;;  %v11486_v38 = vld [vmem:[%s14918_s2 + $0x708] sm:$0xff]  }
  0xba   :  { %10335 = vmatprep.subr.bf16.mxu0 %v11440_v41  ;;  %v11491_v41 = vld [vmem:[%s14918_s2 + $0x7d0] sm:$0xff]  }
  0xbb   :  { %10356 = vmatpush3.bf16.msra.mxu1 %v11439_v40  ;;  %v11488_v40 = vld [vmem:[%s14918_s2 + $0x788] sm:$0xff]  }
  0xbc   :  { %10357 = vmatprep.subr.bf16.mxu1 %v11442_v44  ;;  %v11493_v44 = vld [vmem:[%s14918_s2 + $0x758] sm:$0xff]  }
  0xbd   :  { %10336 = vmatpush3.bf16.msra.mxu0 %v11441_v43  ;;  %v11490_v43 = vld [vmem:[%s14918_s2 + $0x710] sm:$0xff]  }
  0xbe   :  { %10337 = vmatprep.subr.bf16.mxu0 %v11444_v46  ;;  %v11494_v46 = vld [vmem:[%s14918_s2 + $0x718] sm:$0xff]  }
  0xbf   :  { %10358 = vmatpush3.bf16.msra.mxu1 %v11443_v45  ;;  %v11492_v45 = vld [vmem:[%s14918_s2 + $0x790] sm:$0xff]  }
  0xc0   :  { %10359 = vmatprep.subr.bf16.mxu1 %v11446_v48  ;;  %v11496_v48 = vld [vmem:[%s14918_s2 + $0x798] sm:$0xff]  }
  0xc1   :  { %10338 = vmatpush3.bf16.msra.mxu0 %v11445_v47  ;;  %v11495_v47 = vld [vmem:[%s14918_s2 + $0x7d8] sm:$0xff]  }
  0xc2   :  { %10367 = vmatprep.subr.bf16.mxu0 %v11449_v51  ;;  %v11499_v51 = vld [vmem:[%s14918_s2 + $0x7e0] sm:$0xff]  }
  0xc3   :  { %10360 = vmatpush3.bf16.msra.mxu1 %v11448_v49  ;;  %v11497_v49 = vld [vmem:[%s14918_s2 + $0x760] sm:$0xff]  }
  0xc4   :  { %3994 = vmatmul.mubr.bf16.vlgmr.msra.gmra.mrb[20].mxu0 %v980_v50  ;;  %10389 = vmatprep.subr.bf16.mxu1 %v11451_v53  ;;  %v11498_v50 = vld [vmem:[%s14918_s2 + $0x720] sm:$0xff]   ;;  %v11501_v53 = vld [vmem:[%s14918_s2 + $0x768] sm:$0xff]  }
  0xc5   :  { %10368 = vmatpush3.bf16.msra.mxu0 %v11450_v52  ;;  %4073 = vmatprep.mubr.bf16.mxu0 %v1036_v23  ;;  %v11500_v52 = vld [vmem:[%s14918_s2 + $0x7a0] sm:$0xff]   ;;  %v11521_v23 = vld [vmem:[%s14918_s2 + $0x888] sm:$0xff]  }
  0xc6   :  { %4034 = vmatmul.mubr.bf16.vlgmr.msra.gmra.mrb[20].mxu1 %v996_v55  ;;  %10369 = vmatprep.subr.bf16.mxu0 %v11453_v56  ;;  %v11503_v55 = vld [vmem:[%s14918_s2 + $0x7e8] sm:$0xff]  }
  0xc7   :  { %10390 = vmatpush3.bf16.msra.mxu1 %v11452_v54  ;;  %4113 = vmatprep.mubr.bf16.mxu1 %v1046_v28  ;;  %v11502_v54 = vld [vmem:[%s14918_s2 + $0x728] sm:$0xff]   ;;  %v11526_v28 = vld [vmem:[%s14918_s2 + $0x858] sm:$0xff]  }
  0xc8   :  { %10391 = vmatprep.subr.bf16.mxu1 %v11455_v58  ;;  %v11504_v56 = vld [vmem:[%s14918_s2 + $0x7a8] sm:$0xff]   ;;  %v11505_v58 = vld [vmem:[%s14918_s2 + $0x770] sm:$0xff]  }
  0xc9   :  { %10370 = vmatpush3.bf16.msra.mxu0 %v11454_v57  ;;  %v9303_v57 = vld [vmem:[%s14919_s3] ss:$0 sm:$0xff] }
  0xca   :  { %10371 = vmatprep.subr.bf16.mxu0 %v11457_v60  ;;  %v11506_v60 = vld [vmem:[%s14918_s2 + $0x730] sm:$0xff]  }
  0xcb   :  { %10392 = vmatpush3.bf16.msra.mxu1 %v11456_v59 }
  0xcc   :  { %10393 = vmatprep.subr.bf16.mxu1 %v11459_v62  ;;  %v11507_v62 = vld [vmem:[%s14918_s2 + $0x7f0] sm:$0xff]  }
  0xcd   :  { %10372 = vmatpush3.bf16.msra.mxu0 %v11458_v61 }
  0xce   :  { %10373 = vmatprep.subr.bf16.mxu0 %v11461_v0 }
  0xcf   :  { %10394 = vmatpush3.bf16.msra.mxu1 %v11460_v63 }
  0xd0   :  { %10395 = vmatprep.subr.bf16.mxu1 %v11463_v2  ;;  %v11508_v2 = vld [vmem:[%s14918_s2 + $0x7b0] sm:$0xff]  }
  0xd1   :  { %10374 = vmatpush3.bf16.msra.mxu0 %v11462_v1 }
  0xd2   :  { %10375 = vmatprep.subr.bf16.mxu0 %v11465_v4 }
  0xd3   :  { %10396 = vmatpush3.bf16.msra.mxu1 %v11464_v3  ;;  %v11509_v3 = vld [vmem:[%s14918_s2 + $0x778] sm:$0xff]  }
  0xd4   :  { %10397 = vmatprep.subr.bf16.mxu1 %v11467_v6 }
  0xd5   :  { %10376 = vmatpush3.bf16.msra.mxu0 %v11466_v5 }
  0xd6   :  { %10377 = vmatprep.subr.bf16.mxu0 %v11469_v8  ;;  %v11510_v8 = vld [vmem:[%s14918_s2 + $0x738] sm:$0xff]  }
  0xd7   :  { %10398 = vmatpush3.bf16.msra.mxu1 %v11468_v7 }
  0xd8   :  { %10399 = vmatprep.subr.bf16.mxu1 %v11471_v10  ;;  %v11511_v10 = vld [vmem:[%s14918_s2 + $0x7f8] sm:$0xff]  }
  0xd9   :  { %10378 = vmatpush3.bf16.msra.mxu0 %v11470_v9 }
  0xda   :  { %10379 = vmatprep.subr.bf16.mxu0 %v11473_v12 }
  0xdb   :  { %10400 = vmatpush3.bf16.msra.mxu1 %v11472_v11 }
  0xdc   :  { %10401 = vmatprep.subr.bf16.mxu1 %v11475_v14  ;;  %v1029_v14 = vrot.slane %v12866_v20, %v12262_v42  ;;  %v11518_v20 = vld [vmem:[%s14918_s2 + $0x848] sm:$0xff]  }
  0xdd   :  { %10380 = vmatpush3.bf16.msra.mxu0 %v11474_v17  ;;  %v11516_v17 = vld [vmem:[%s14918_s2 + $0x8c0] sm:$0xff]  }
  0xde   :  { %10381 = vmatprep.subr.bf16.mxu0 %v11477_v18  ;;  %v11517_v18 = vld [vmem:[%s14918_s2 + $0x880] sm:$0xff]   ;;  %v1045_v19 = vcombine.high %v1029_v14, %v1029_v14 }
  0xdf   :  { %10402 = vmatpush3.bf16.msra.mxu1 %v11476_v21  ;;  %v11519_v21 = vld [vmem:[%s14918_s2 + $0x808] sm:$0xff]  }
  0xe0   :  { %10403 = vmatprep.subr.bf16.mxu1 %v11479_v22  ;;  %v11520_v22 = vld [vmem:[%s14918_s2 + $0x8c8] sm:$0xff]  }
  0xe1   :  { %10382 = vmatpush3.bf16.msra.mxu0 %v11478_v25  ;;  %v11523_v25 = vld [vmem:[%s14918_s2 + $0x810] sm:$0xff]  }
  0xe2   :  { %10411 = vmatprep.subr.bf16.mxu0 %v11481_v27  ;;  %v11525_v27 = vld [vmem:[%s14918_s2 + $0x890] sm:$0xff]  }
  0xe3   :  { %10404 = vmatpush3.bf16.msra.mxu1 %v11480_v29  ;;  %v11527_v29 = vld [vmem:[%s14918_s2 + $0x818] sm:$0xff]  }
  0xe4   :  { %4074 = vmatmul.mubr.bf16.vlgmr.msra.gmra.mrb[24].mxu0 %v1022_v26  ;;  %10433 = vmatprep.subr.bf16.mxu1 %v11483_v31  ;;  %v11524_v26 = vld [vmem:[%s14918_s2 + $0x8d0] sm:$0xff]   ;;  %v11529_v31 = vld [vmem:[%s14918_s2 + $0x898] sm:$0xff]  }
  0xe5   :  { %10412 = vmatpush3.bf16.msra.mxu0 %v11482_v32  ;;  %4153 = vmatprep.mubr.bf16.mxu0 %v1043_v30  ;;  %v11528_v30 = vld [vmem:[%s14918_s2 + $0x8d8] sm:$0xff]   ;;  %v11530_v32 = vld [vmem:[%s14918_s2 + $0x860] sm:$0xff]  }
  0xe6   :  { %4114 = vmatmul.mubr.bf16.vlgmr.msra.gmra.mrb[24].mxu1 %v1044_v33  ;;  %10413 = vmatprep.subr.bf16.mxu0 %v11485_v34  ;;  %v11531_v33 = vld [vmem:[%s14918_s2 + $0x820] sm:$0xff]  }
  0xe7   :  { %10434 = vmatpush3.bf16.msra.mxu1 %v11484_v35  ;;  %4193 = vmatprep.mubr.bf16.mxu1 %v1047_v36  ;;  %v11532_v34 = vld [vmem:[%s14918_s2 + $0x8e0] sm:$0xff]   ;;  %v11534_v36 = vld [vmem:[%s14918_s2 + $0x868] sm:$0xff]  }
  0xe8   :  { %10435 = vmatprep.subr.bf16.mxu1 %v11487_v37  ;;  %v11533_v35 = vld [vmem:[%s14918_s2 + $0x8a0] sm:$0xff]   ;;  %v11535_v37 = vld [vmem:[%s14918_s2 + $0x828] sm:$0xff]  }
  0xe9   :  { %10414 = vmatpush3.bf16.msra.mxu0 %v11486_v38  ;;  %v11536_v38 = vld [vmem:[%s14918_s2 + $0x8e8] sm:$0xff]  }
  0xea   :  { %10415 = vmatprep.subr.bf16.mxu0 %v11489_v39  ;;  %v11537_v39 = vld [vmem:[%s14918_s2 + $0x8a8] sm:$0xff]  }
  0xeb   :  { %10436 = vmatpush3.bf16.msra.mxu1 %v11488_v40  ;;  %v11538_v40 = vld [vmem:[%s14918_s2 + $0x870] sm:$0xff]  }
  0xec   :  { %10437 = vmatprep.subr.bf16.mxu1 %v11491_v41 }
  0xed   :  { %10416 = vmatpush3.bf16.msra.mxu0 %v11490_v43  ;;  %v11539_v43 = vld [vmem:[%s14918_s2 + $0x830] sm:$0xff]  }
  0xee   :  { %10417 = vmatprep.subr.bf16.mxu0 %v11493_v44  ;;  %v11540_v44 = vld [vmem:[%s14918_s2 + $0x8f0] sm:$0xff]  }
  0xef   :  { %10438 = vmatpush3.bf16.msra.mxu1 %v11492_v45 }
  0xf0   :  { %10439 = vmatprep.subr.bf16.mxu1 %v11495_v47 }
  0xf1   :  { %10418 = vmatpush3.bf16.msra.mxu0 %v11494_v46  ;;  %v51_v46 = vld [vmem:[%s14916_s0 + $0x20] sm:$0xff] }
  0xf2   :  { %10419 = vmatprep.subr.bf16.mxu0 %v11497_v49 }
  0xf3   :  { %10440 = vmatpush3.bf16.msra.mxu1 %v11496_v48 }
  0xf4   :  { %10441 = vmatprep.subr.bf16.mxu1 %v11499_v51  ;;  %v11542_v51 = vld [vmem:[%s14918_s2 + $0x878] sm:$0xff]  }
  0xf5   :  { %10420 = vmatpush3.bf16.msra.mxu0 %v11498_v50  ;;  %v11541_v50 = vld [vmem:[%s14918_s2 + $0x8b0] sm:$0xff]  }
  0xf6   :  { %10421 = vmatprep.subr.bf16.mxu0 %v11501_v53  ;;  %v1048_v53 = vcombine.high %v51_v46, %v51_v46 }
  0xf7   :  { %v10119_v59 = vpop.f32.mrb[0].mxu0  ;;  %10442 = vmatpush3.bf16.msra.mxu1 %v11500_v52  ;;  %v1055_v52 = vrot.slane %v51_v46, %v12262_v42 }
  0xf8   :  { %v10120_v61 = vpop.f32.mrb[1].mxu0  ;;  %10443 = vmatprep.subr.bf16.mxu1 %v11503_v55 }
  0xf9   :  { %v10121_v63 = vadd.f32 %v10120_v61, %v10119_v59  ;;  %v10122_v0 = vpop.f32.mrb[2].mxu0  ;;  %v10141_v1 = vpop.f32.mrb[0].mxu1  ;;  %10422 = vmatpush3.bf16.msra.mxu0 %v11502_v54  ;;  %v1063_v59 = vcombine.high %v1055_v52, %v1055_v52  ;;  %v11544_v61 = vld [vmem:[%s14918_s2 + $0x8f8] sm:$0xff]  }
  0xfa   :  { %v10123_v4 = vpop.f32.mrb[3].mxu0  ;;  %v10142_v5 = vpop.f32.mrb[1].mxu1  ;;  %10423 = vmatprep.subr.bf16.mxu0 %v11505_v58  ;;  %v11543_v58 = vld [vmem:[%s14918_s2 + $0x838] sm:$0xff]  }
  0xfb   :  { %v3596_v6 = vadd.f32 %v10121_v63, %v9303_v57  ;;  %v10143_v7 = vadd.f32 %v10142_v5, %v10141_v1  ;;  %10444 = vmatpush3.bf16.msra.mxu1 %v11504_v56  ;;  %v10144_v9 = vpop.f32.mrb[2].mxu1  ;;  %v13087_v63 = vrot.slane %v1048_v53, %v12262_v42  ;;  %v1085_v1 = vrot.slane %v1063_v59, %v12262_v42  ;;  %v11546_v4 = vld [vmem:[%s14918_s2 + $0x940] sm:$0xff]   ;;  %v11578_v53 = vld [vmem:[%s14918_s2 + $0x9b8] sm:$0xff]  }
  0xfc   :  { %10445 = vmatprep.subr.bf16.mxu1 %v11507_v62  ;;  %v10145_v11 = vpop.f32.mrb[3].mxu1 }
  0xfd   :  { %v12981_v12 = vadd.f32 %v10143_v7, %v3596_v6  ;;  %10424 = vmatpush3.bf16.msra.mxu0 %v11506_v60  ;;  %v1064_v5 = vcombine.high %v13087_v63, %v13087_v63  ;;  %v1095_v6 = vcombine.high %v1085_v1, %v1085_v1  ;;  %v11547_v7 = vld [vmem:[%s14918_s2 + $0x900] sm:$0xff]  }
  0xfe   :  { %10425 = vmatprep.subr.bf16.mxu0 %v11509_v3  ;;  %v1071_v3 = vrot.slane %v1055_v52, %v12262_v42 }
  0xff   :  { %10446 = vmatpush3.bf16.msra.mxu1 %v11508_v2  ;;  %v11545_v2 = vld [vmem:[%s14918_s2 + $0x8b8] sm:$0xff]   ;;  %v1092_v9 = vrot.slane %v1064_v5, %v12262_v42 }
 0x100   :  { %10447 = vmatprep.subr.bf16.mxu1 %v11511_v10  ;;  %v11549_v10 = vld [vmem:[%s14918_s2 + $0x980] sm:$0xff]   ;;  %v1093_v11 = vcombine.high %v1071_v3, %v1071_v3  ;;  %v11592_v5 = vld [vmem:[%s14918_s2 + $0xa18] sm:$0xff]  }
 0x101   :  { %10426 = vmatpush3.bf16.msra.mxu0 %v11510_v8  ;;  %v11548_v8 = vld [vmem:[%s14918_s2 + $0x9c0] sm:$0xff]  }
 0x102   :  { %10455 = vmatprep.subr.bf16.mxu0 %v11514_v15  ;;  %v11552_v15 = vld [vmem:[%s14918_s2 + $0x9c8] sm:$0xff]  }
 0x103   :  { %10448 = vmatpush3.bf16.msra.mxu1 %v11513_v13  ;;  %v11551_v13 = vld [vmem:[%s14918_s2 + $0x908] sm:$0xff]  }
 0x104   :  { %4154 = vmatmul.mubr.bf16.vlgmr.msra.gmra.mrb[28].mxu0 %v1029_v14  ;;  %10477 = vmatprep.subr.bf16.mxu1 %v11516_v17  ;;  %v1096_v14 = vcombine.high %v1092_v9, %v1092_v9  ;;  %v11554_v17 = vld [vmem:[%s14918_s2 + $0x950] sm:$0xff]  }
 0x105   :  { %10456 = vmatpush3.bf16.msra.mxu0 %v11515_v16  ;;  %4233 = vmatprep.mubr.bf16.mxu0 %v1085_v1  ;;  %v11553_v16 = vld [vmem:[%s14918_s2 + $0x988] sm:$0xff]   ;;  %v11588_v1 = vld [vmem:[%s14918_s2 + $0xa10] sm:$0xff]  }
 0x106   :  { %4194 = vmatmul.mubr.bf16.vlgmr.msra.gmra.mrb[28].mxu1 %v1045_v19  ;;  %10457 = vmatprep.subr.bf16.mxu0 %v11518_v20  ;;  %v11556_v19 = vld [vmem:[%s14918_s2 + $0x9d0] sm:$0xff]  }
 0x107   :  { %10478 = vmatpush3.bf16.msra.mxu1 %v11517_v18  ;;  %4273 = vmatprep.mubr.bf16.mxu1 %v1095_v6  ;;  %v11555_v18 = vld [vmem:[%s14918_s2 + $0x910] sm:$0xff]   ;;  %v11593_v6 = vld [vmem:[%s14918_s2 + $0xad8] sm:$0xff]  }
 0x108   :  { %10479 = vmatprep.subr.bf16.mxu1 %v11520_v22  ;;  %v11557_v20 = vld [vmem:[%s14918_s2 + $0x990] sm:$0xff]   ;;  %v11559_v22 = vld [vmem:[%s14918_s2 + $0x918] sm:$0xff]  }
 0x109   :  { %10458 = vmatpush3.bf16.msra.mxu0 %v11519_v21  ;;  %v11558_v21 = vld [vmem:[%s14918_s2 + $0x958] sm:$0xff]  }
 0x10a   :  { %10459 = vmatprep.subr.bf16.mxu0 %v11522_v24  ;;  %v11561_v24 = vld [vmem:[%s14918_s2 + $0x998] sm:$0xff]  }
 0x10b   :  { %10480 = vmatpush3.bf16.msra.mxu1 %v11521_v23  ;;  %v11560_v23 = vld [vmem:[%s14918_s2 + $0x9d8] sm:$0xff]  }
 0x10c   :  { %10481 = vmatprep.subr.bf16.mxu1 %v11524_v26  ;;  %v11563_v26 = vld [vmem:[%s14918_s2 + $0x920] sm:$0xff]  }
 0x10d   :  { %10460 = vmatpush3.bf16.msra.mxu0 %v11523_v25  ;;  %v11562_v25 = vld [vmem:[%s14918_s2 + $0x960] sm:$0xff]  }
 0x10e   :  { %10461 = vmatprep.subr.bf16.mxu0 %v11526_v28  ;;  %v11565_v28 = vld [vmem:[%s14918_s2 + $0x9a0] sm:$0xff]  }
 0x10f   :  { %10482 = vmatpush3.bf16.msra.mxu1 %v11525_v27  ;;  %v11564_v27 = vld [vmem:[%s14918_s2 + $0x9e0] sm:$0xff]  }
 0x110   :  { %10483 = vmatprep.subr.bf16.mxu1 %v11528_v30  ;;  %v11567_v30 = vld [vmem:[%s14918_s2 + $0x928] sm:$0xff]  }
 0x111   :  { %10462 = vmatpush3.bf16.msra.mxu0 %v11527_v29  ;;  %v11566_v29 = vld [vmem:[%s14918_s2 + $0x968] sm:$0xff]  }
 0x112   :  { %10463 = vmatprep.subr.bf16.mxu0 %v11530_v32  ;;  %v11569_v32 = vld [vmem:[%s14918_s2 + $0x9a8] sm:$0xff]  }
 0x113   :  { %10484 = vmatpush3.bf16.msra.mxu1 %v11529_v31  ;;  %v11568_v31 = vld [vmem:[%s14918_s2 + $0x9e8] sm:$0xff]  }
 0x114   :  { %10485 = vmatprep.subr.bf16.mxu1 %v11532_v34 }
 0x115   :  { %10464 = vmatpush3.bf16.msra.mxu0 %v11531_v33  ;;  %v11570_v33 = vld [vmem:[%s14918_s2 + $0x970] sm:$0xff]  }
 0x116   :  { %10465 = vmatprep.subr.bf16.mxu0 %v11534_v36 }
 0x117   :  { %v10163_v41 = vpop.f32.mrb[4].mxu0  ;;  %10486 = vmatpush3.bf16.msra.mxu1 %v11533_v35  ;;  %v11571_v35 = vld [vmem:[%s14918_s2 + $0x930] sm:$0xff]  }
 0x118   :  { %v10164_v45 = vpop.f32.mrb[5].mxu0  ;;  %10487 = vmatprep.subr.bf16.mxu1 %v11536_v38 }
 0x119   :  { %v10165_v47 = vadd.f32 %v10164_v45, %v10163_v41  ;;  %v10166_v48 = vpop.f32.mrb[6].mxu0  ;;  %v10185_v49 = vpop.f32.mrb[4].mxu1  ;;  %10466 = vmatpush3.bf16.msra.mxu0 %v11535_v37  ;;  %v11572_v37 = vld [vmem:[%s14918_s2 + $0x9f0] sm:$0xff]  }
 0x11a   :  { %v10167_v54 = vpop.f32.mrb[7].mxu0  ;;  %v10186_v55 = vpop.f32.mrb[5].mxu1  ;;  %10467 = vmatprep.subr.bf16.mxu0 %v11538_v40  ;;  %v11573_v41 = vld [vmem:[%s14918_s2 + $0x9b0] sm:$0xff]   ;;  %v11575_v48 = vld [vmem:[%s14918_s2 + $0x938] sm:$0xff]  }
 0x11b   :  { %v3676_v56 = vadd.f32 %v10165_v47, %v12981_v12  ;;  %v10187_v57 = vadd.f32 %v10186_v55, %v10185_v49  ;;  %10488 = vmatpush3.bf16.msra.mxu1 %v11537_v39  ;;  %v10188_v60 = vpop.f32.mrb[6].mxu1  ;;  %v11550_v12 = vld [vmem:[%s14918_s2 + $0x948] sm:$0xff]   ;;  %v1078_v54 = vrot.slane %v13087_v63, %v12262_v42  ;;  %v11579_v55 = vld [vmem:[%s14918_s2 + $0xa40] sm:$0xff]  }
 0x11c   :  { %10489 = vmatprep.subr.bf16.mxu1 %v11540_v44  ;;  %v10189_v62 = vpop.f32.mrb[7].mxu1  ;;  %v11583_v60 = vld [vmem:[%s14918_s2 + $0xa48] sm:$0xff]  }
 0x11d   :  { %v13089_v0 = vadd.f32 %v10187_v57, %v3676_v56  ;;  %10468 = vmatpush3.bf16.msra.mxu0 %v11539_v43  ;;  %v11574_v43 = vld [vmem:[%s14918_s2 + $0x978] sm:$0xff]   ;;  %v11580_v56 = vld [vmem:[%s14918_s2 + $0xa00] sm:$0xff]   ;;  %v1094_v59 = vcombine.high %v1078_v54, %v1078_v54  ;;  %v11585_v62 = vld [vmem:[%s14918_s2 + $0xac8] sm:$0xff]  }
 0x11e   :  { %10469 = vmatprep.subr.bf16.mxu0 %v11542_v51  ;;  %v11581_v57 = vld [vmem:[%s14918_s2 + $0xac0] sm:$0xff]   ;;  %v11586_v63 = vld [vmem:[%s14918_s2 + $0xa88] sm:$0xff]  }
 0x11f   :  { %10490 = vmatpush3.bf16.msra.mxu1 %v11541_v50  ;;  %v11576_v50 = vld [vmem:[%s14918_s2 + $0x9f8] sm:$0xff]  }
 0x120   :  { %10491 = vmatprep.subr.bf16.mxu1 %v11544_v61  ;;  %v11584_v61 = vld [vmem:[%s14918_s2 + $0xa08] sm:$0xff]  }
 0x121   :  { %10470 = vmatpush3.bf16.msra.mxu0 %v11543_v58  ;;  %v11582_v58 = vld [vmem:[%s14918_s2 + $0xa80] sm:$0xff]  }
 0x122   :  { %10499 = vmatprep.subr.bf16.mxu0 %v11546_v4  ;;  %v11591_v4 = vld [vmem:[%s14918_s2 + $0xa58] sm:$0xff]  }
 0x123   :  { %10492 = vmatpush3.bf16.msra.mxu1 %v11545_v2  ;;  %v11589_v2 = vld [vmem:[%s14918_s2 + $0xad0] sm:$0xff]  }
 0x124   :  { %4234 = vmatmul.mubr.bf16.vlgmr.msra.gmra.mrb[32].mxu0 %v1071_v3  ;;  %10521 = vmatprep.subr.bf16.mxu1 %v11548_v8  ;;  %v11590_v3 = vld [vmem:[%s14918_s2 + $0xa90] sm:$0xff]   ;;  %v11595_v8 = vld [vmem:[%s14918_s2 + $0xa60] sm:$0xff]  }
 0x125   :  { %10500 = vmatpush3.bf16.msra.mxu0 %v11547_v7  ;;  %4313 = vmatprep.mubr.bf16.mxu0 %v1092_v9  ;;  %v11594_v7 = vld [vmem:[%s14918_s2 + $0xa98] sm:$0xff]   ;;  %v11596_v9 = vld [vmem:[%s14918_s2 + $0xa20] sm:$0xff]  }
 0x126   :  { %4274 = vmatmul.mubr.bf16.vlgmr.msra.gmra.mrb[32].mxu1 %v1093_v11  ;;  %10501 = vmatprep.subr.bf16.mxu0 %v11550_v12  ;;  %v11598_v11 = vld [vmem:[%s14918_s2 + $0xaa0] sm:$0xff]   ;;  %v11599_v12 = vld [vmem:[%s14918_s2 + $0xa68] sm:$0xff]  }
 0x127   :  { %10522 = vmatpush3.bf16.msra.mxu1 %v11549_v10  ;;  %4353 = vmatprep.mubr.bf16.mxu1 %v1096_v14  ;;  %v11597_v10 = vld [vmem:[%s14918_s2 + $0xae0] sm:$0xff]   ;;  %v11601_v14 = vld [vmem:[%s14918_s2 + $0xae8] sm:$0xff]  }
 0x128   :  { %10523 = vmatprep.subr.bf16.mxu1 %v11552_v15  ;;  %v11602_v15 = vld [vmem:[%s14918_s2 + $0xaa8] sm:$0xff]  }
 0x129   :  { %10502 = vmatpush3.bf16.msra.mxu0 %v11551_v13  ;;  %v11600_v13 = vld [vmem:[%s14918_s2 + $0xa28] sm:$0xff]  }
 0x12a   :  { %10503 = vmatprep.subr.bf16.mxu0 %v11554_v17 }
 0x12b   :  { %10524 = vmatpush3.bf16.msra.mxu1 %v11553_v16  ;;  %v11603_v16 = vld [vmem:[%s14918_s2 + $0xa70] sm:$0xff]  }
 0x12c   :  { %10525 = vmatprep.subr.bf16.mxu1 %v11556_v19 }
 0x12d   :  { %10504 = vmatpush3.bf16.msra.mxu0 %v11555_v18  ;;  %v11604_v18 = vld [vmem:[%s14918_s2 + $0xa30] sm:$0xff]  }
 0x12e   :  { %10505 = vmatprep.subr.bf16.mxu0 %v11558_v21 }
 0x12f   :  { %10526 = vmatpush3.bf16.msra.mxu1 %v11557_v20  ;;  %v11605_v20 = vld [vmem:[%s14918_s2 + $0xaf0] sm:$0xff]  }
 0x130   :  { %10527 = vmatprep.subr.bf16.mxu1 %v11560_v23 }
 0x131   :  { %10506 = vmatpush3.bf16.msra.mxu0 %v11559_v22 }
 0x132   :  { %10507 = vmatprep.subr.bf16.mxu0 %v11562_v25  ;;  %v52_v25 = vld [vmem:[%s14916_s0 + $0x28] sm:$0xff] }
 0x133   :  { %10528 = vmatpush3.bf16.msra.mxu1 %v11561_v24  ;;  %v11607_v24 = vld [vmem:[%s14918_s2 + $0xa78] sm:$0xff]  }
 0x134   :  { %10529 = vmatprep.subr.bf16.mxu1 %v11564_v27 }
 0x135   :  { %10508 = vmatpush3.bf16.msra.mxu0 %v11563_v26 }
 0x136   :  { %10509 = vmatprep.subr.bf16.mxu0 %v11566_v29  ;;  %v1097_v29 = vcombine.high %v52_v25, %v52_v25 }
 0x137   :  { %v10207_v34 = vpop.f32.mrb[8].mxu0  ;;  %10530 = vmatpush3.bf16.msra.mxu1 %v11565_v28  ;;  %v1104_v28 = vrot.slane %v52_v25, %v12262_v42 }
 0x138   :  { %v10208_v36 = vpop.f32.mrb[9].mxu0  ;;  %10531 = vmatprep.subr.bf16.mxu1 %v11568_v31 }
 0x139   :  { %v10209_v38 = vadd.f32 %v10208_v36, %v10207_v34  ;;  %v10210_v39 = vpop.f32.mrb[10].mxu0  ;;  %v10229_v40 = vpop.f32.mrb[8].mxu1  ;;  %10510 = vmatpush3.bf16.msra.mxu0 %v11567_v30  ;;  %v11609_v34 = vld [vmem:[%s14918_s2 + $0xaf8] sm:$0xff]  }
 0x13a   :  { %v10211_v44 = vpop.f32.mrb[11].mxu0  ;;  %v10230_v45 = vpop.f32.mrb[9].mxu1  ;;  %10511 = vmatprep.subr.bf16.mxu0 %v11570_v33  ;;  %v11608_v39 = vld [vmem:[%s14918_s2 + $0xa38] sm:$0xff]  }
 0x13b   :  { %v3756_v46 = vadd.f32 %v10209_v38, %v13089_v0  ;;  %v10231_v47 = vadd.f32 %v10230_v45, %v10229_v40  ;;  %10532 = vmatpush3.bf16.msra.mxu1 %v11569_v32  ;;  %v10232_v49 = vpop.f32.mrb[10].mxu1  ;;  %v11587_v0 = vld [vmem:[%s14918_s2 + $0xa50] sm:$0xff]   ;;  %v11610_v45 = vld [vmem:[%s14918_s2 + $0xab8] sm:$0xff]  }
 0x13c   :  { %10533 = vmatprep.subr.bf16.mxu1 %v11572_v37  ;;  %v10233_v51 = vpop.f32.mrb[11].mxu1  ;;  %v11606_v32 = vld [vmem:[%s14918_s2 + $0xab0] sm:$0xff]   ;;  %v13296_v37 = vrot.slane %v1097_v29, %v12262_v42  ;;  %v11612_v49 = vld [vmem:[%s14918_s2 + $0xb00] sm:$0xff]   ;;  %v11643_v29 = vld [vmem:[%s14918_s2 + $0xbb8] sm:$0xff]  }
 0x13d   :  { %v13193_v52 = vadd.f32 %v10231_v47, %v3756_v46  ;;  %10512 = vmatpush3.bf16.msra.mxu0 %v11571_v35  ;;  %v1112_v35 = vcombine.high %v1104_v28, %v1104_v28  ;;  %v11613_v47 = vld [vmem:[%s14918_s2 + $0xbc0] sm:$0xff]   ;;  %v11615_v51 = vld [vmem:[%s14918_s2 + $0xb48] sm:$0xff]  }
 0x13e   :  { %10513 = vmatprep.subr.bf16.mxu0 %v11574_v43  ;;  %v11611_v43 = vld [vmem:[%s14918_s2 + $0xb40] sm:$0xff]   ;;  %v1113_v44 = vcombine.high %v13296_v37, %v13296_v37 }
 0x13f   :  { %10534 = vmatpush3.bf16.msra.mxu1 %v11573_v41  ;;  %v1134_v40 = vrot.slane %v1112_v35, %v12262_v42  ;;  %v1120_v41 = vrot.slane %v1104_v28, %v12262_v42  ;;  %v1127_v28 = vrot.slane %v13296_v37, %v12262_v42  ;;  %v11647_v35 = vld [vmem:[%s14918_s2 + $0xc18] sm:$0xff]   ;;  %v11649_v37 = vld [vmem:[%s14918_s2 + $0xc28] sm:$0xff]  }
 0x140   :  { %10535 = vmatprep.subr.bf16.mxu1 %v11576_v50 }
 0x141   :  { %10514 = vmatpush3.bf16.msra.mxu0 %v11575_v48  ;;  %v1144_v46 = vcombine.high %v1134_v40, %v1134_v40  ;;  %v1141_v48 = vrot.slane %v1113_v44, %v12262_v42  ;;  %v1142_v50 = vcombine.high %v1120_v41, %v1120_v41 }
 0x142   :  { %10543 = vmatprep.subr.bf16.mxu0 %v11579_v55  ;;  %v11616_v55 = vld [vmem:[%s14918_s2 + $0xb08] sm:$0xff]  }
 0x143   :  { %10536 = vmatpush3.bf16.msra.mxu1 %v11578_v53  ;;  %v1145_v53 = vcombine.high %v1141_v48, %v1141_v48 }
 0x144   :  { %4314 = vmatmul.mubr.bf16.vlgmr.msra.gmra.mrb[36].mxu0 %v1078_v54  ;;  %10565 = vmatprep.subr.bf16.mxu1 %v11581_v57  ;;  %v11617_v54 = vld [vmem:[%s14918_s2 + $0xbc8] sm:$0xff]  }
 0x145   :  { %10544 = vmatpush3.bf16.msra.mxu0 %v11580_v56  ;;  %4393 = vmatprep.mubr.bf16.mxu0 %v1134_v40  ;;  %v11619_v56 = vld [vmem:[%s14918_s2 + $0xb50] sm:$0xff]   ;;  %v11618_v57 = vld [vmem:[%s14918_s2 + $0xb88] sm:$0xff]  }
 0x146   :  { %4354 = vmatmul.mubr.bf16.vlgmr.msra.gmra.mrb[36].mxu1 %v1094_v59  ;;  %10545 = vmatprep.subr.bf16.mxu0 %v11583_v60  ;;  %v11620_v59 = vld [vmem:[%s14918_s2 + $0xb10] sm:$0xff]   ;;  %v11623_v60 = vld [vmem:[%s14918_s2 + $0xb58] sm:$0xff]  }
 0x147   :  { %10566 = vmatpush3.bf16.msra.mxu1 %v11582_v58  ;;  %4433 = vmatprep.mubr.bf16.mxu1 %v1144_v46  ;;  %v11621_v58 = vld [vmem:[%s14918_s2 + $0xbd0] sm:$0xff]  }
 0x148   :  { %10567 = vmatprep.subr.bf16.mxu1 %v11585_v62  ;;  %v11625_v62 = vld [vmem:[%s14918_s2 + $0xbd8] sm:$0xff]   ;;  %v11650_v40 = vld [vmem:[%s14918_s2 + $0xc30] sm:$0xff]  }
 0x149   :  { %10546 = vmatpush3.bf16.msra.mxu0 %v11584_v61  ;;  %v11622_v61 = vld [vmem:[%s14918_s2 + $0xb90] sm:$0xff]  }
 0x14a   :  { %10547 = vmatprep.subr.bf16.mxu0 %v11587_v0  ;;  %v11627_v0 = vld [vmem:[%s14918_s2 + $0xb60] sm:$0xff]  }
 0x14b   :  { %10568 = vmatpush3.bf16.msra.mxu1 %v11586_v63  ;;  %v11624_v63 = vld [vmem:[%s14918_s2 + $0xb18] sm:$0xff]  }
 0x14c   :  { %10569 = vmatprep.subr.bf16.mxu1 %v11589_v2  ;;  %v11629_v2 = vld [vmem:[%s14918_s2 + $0xbe0] sm:$0xff]  }
 0x14d   :  { %10548 = vmatpush3.bf16.msra.mxu0 %v11588_v1  ;;  %v11626_v1 = vld [vmem:[%s14918_s2 + $0xb98] sm:$0xff]  }
 0x14e   :  { %10549 = vmatprep.subr.bf16.mxu0 %v11591_v4  ;;  %v11631_v4 = vld [vmem:[%s14918_s2 + $0xb68] sm:$0xff]  }
 0x14f   :  { %10570 = vmatpush3.bf16.msra.mxu1 %v11590_v3  ;;  %v11628_v3 = vld [vmem:[%s14918_s2 + $0xb20] sm:$0xff]  }
 0x150   :  { %10571 = vmatprep.subr.bf16.mxu1 %v11593_v6  ;;  %v11633_v6 = vld [vmem:[%s14918_s2 + $0xbe8] sm:$0xff]  }
 0x151   :  { %10550 = vmatpush3.bf16.msra.mxu0 %v11592_v5  ;;  %v11630_v5 = vld [vmem:[%s14918_s2 + $0xba0] sm:$0xff]  }
 0x152   :  { %10551 = vmatprep.subr.bf16.mxu0 %v11595_v8  ;;  %v11635_v8 = vld [vmem:[%s14918_s2 + $0xb70] sm:$0xff]  }
 0x153   :  { %10572 = vmatpush3.bf16.msra.mxu1 %v11594_v7  ;;  %v11632_v7 = vld [vmem:[%s14918_s2 + $0xb28] sm:$0xff]  }
 0x154   :  { %10573 = vmatprep.subr.bf16.mxu1 %v11597_v10  ;;  %v11634_v10 = vld [vmem:[%s14918_s2 + $0xba8] sm:$0xff]  }
 0x155   :  { %10552 = vmatpush3.bf16.msra.mxu0 %v11596_v9 }
 0x156   :  { %10553 = vmatprep.subr.bf16.mxu0 %v11599_v12  ;;  %v11637_v12 = vld [vmem:[%s14918_s2 + $0xbf0] sm:$0xff]  }
 0x157   :  { %v10251_v17 = vpop.f32.mrb[12].mxu0  ;;  %10574 = vmatpush3.bf16.msra.mxu1 %v11598_v11 }
 0x158   :  { %v10252_v19 = vpop.f32.mrb[13].mxu0  ;;  %10575 = vmatprep.subr.bf16.mxu1 %v11601_v14 }
 0x159   :  { %v10253_v21 = vadd.f32 %v10252_v19, %v10251_v17  ;;  %v10254_v22 = vpop.f32.mrb[14].mxu0  ;;  %v10273_v23 = vpop.f32.mrb[12].mxu1  ;;  %10554 = vmatpush3.bf16.msra.mxu0 %v11600_v13  ;;  %v11639_v17 = vld [vmem:[%s14918_s2 + $0xb78] sm:$0xff]  }
 0x15a   :  { %v10255_v26 = vpop.f32.mrb[15].mxu0  ;;  %v10274_v27 = vpop.f32.mrb[13].mxu1  ;;  %10555 = vmatprep.subr.bf16.mxu0 %v11603_v16  ;;  %v11636_v16 = vld [vmem:[%s14918_s2 + $0xb30] sm:$0xff]  }
 0x15b   :  { %v3836_v30 = vadd.f32 %v10253_v21, %v13193_v52  ;;  %v10275_v31 = vadd.f32 %v10274_v27, %v10273_v23  ;;  %10576 = vmatpush3.bf16.msra.mxu1 %v11602_v15  ;;  %v10276_v33 = vpop.f32.mrb[14].mxu1  ;;  %v11614_v52 = vld [vmem:[%s14918_s2 + $0xb80] sm:$0xff]   ;;  %v11638_v22 = vld [vmem:[%s14918_s2 + $0xbb0] sm:$0xff]   ;;  %v11640_v27 = vld [vmem:[%s14918_s2 + $0xb38] sm:$0xff]  }
 0x15c   :  { %10577 = vmatprep.subr.bf16.mxu1 %v11605_v20  ;;  %v10277_v36 = vpop.f32.mrb[15].mxu1  ;;  %v11645_v33 = vld [vmem:[%s14918_s2 + $0xc08] sm:$0xff]  }
 0x15d   :  { %v13298_v38 = vadd.f32 %v10275_v31, %v3836_v30  ;;  %10556 = vmatpush3.bf16.msra.mxu0 %v11604_v18  ;;  %v11644_v30 = vld [vmem:[%s14918_s2 + $0xc00] sm:$0xff]   ;;  %v12081_v31 = vmov 0.0  }
 0x15e   :  { %10557 = vmatprep.subr.bf16.mxu0 %v11607_v24  ;;  %v11641_v24 = vld [vmem:[%s14918_s2 + $0xbf8] sm:$0xff]   ;;  %v11648_v36 = vld [vmem:[%s14918_s2 + $0xc20] sm:$0xff]  }
 0x15f   :  { %10578 = vmatpush3.bf16.msra.mxu1 %v11606_v32  ;;  %v1143_v32 = vcombine.high %v1127_v28, %v1127_v28 }
 0x160   :  { %10579 = vmatprep.subr.bf16.mxu1 %v11609_v34  ;;  %v11646_v34 = vld [vmem:[%s14918_s2 + $0xc10] sm:$0xff]  }
 0x161   :  { %10558 = vmatpush3.bf16.msra.mxu0 %v11608_v39 }
 0x162   :  { %10587 = vmatprep.subr.bf16.mxu0 %v11611_v43 }
 0x163   :  { %10580 = vmatpush3.bf16.msra.mxu1 %v11610_v45 }
 0x164   :  { %4394 = vmatmul.mubr.bf16.vlgmr.msra.gmra.mrb[40].mxu0 %v1120_v41  ;;  %10609 = vmatprep.subr.bf16.mxu1 %v11613_v47 }
 0x165   :  { %10588 = vmatpush3.bf16.msra.mxu0 %v11612_v49  ;;  %4473 = vmatprep.mubr.bf16.mxu0 %v1141_v48  ;;  %v9304_v49 = vld.sshfl [vmem:[%s14916_s0 + $0x30] sm:$0x1 pattern:$0x75316420] }
 0x166   :  { %4434 = vmatmul.mubr.bf16.vlgmr.msra.gmra.mrb[40].mxu1 %v1142_v50  ;;  %10589 = vmatprep.subr.bf16.mxu0 %v11615_v51  ;;  %v11651_v51 = vld [vmem:[%s14918_s2 + $0xc38] sm:$0xff]  }
 0x167   :  { %10610 = vmatpush3.bf16.msra.mxu1 %v11614_v52  ;;  %4513 = vmatprep.mubr.bf16.mxu1 %v1145_v53 }
 0x168   :  { %10611 = vmatprep.subr.bf16.mxu1 %v11617_v54  ;;  %v1159_v54 = vrot.slane %v9304_v49, %v12262_v42 }
 0x169   :  { %10590 = vmatpush3.bf16.msra.mxu0 %v11616_v55 }
 0x16a   :  { %10591 = vmatprep.subr.bf16.mxu0 %v11619_v56 }
 0x16b   :  { %10612 = vmatpush3.bf16.msra.mxu1 %v11618_v57 }
 0x16c   :  { %10613 = vmatprep.subr.bf16.mxu1 %v11621_v58 }
 0x16d   :  { %10592 = vmatpush3.bf16.msra.mxu0 %v11620_v59 }
 0x16e   :  { %10593 = vmatprep.subr.bf16.mxu0 %v11623_v60 }
 0x16f   :  { %10614 = vmatpush3.bf16.msra.mxu1 %v11622_v61 }
 0x170   :  { %10615 = vmatprep.subr.bf16.mxu1 %v11625_v62 }
 0x171   :  { %10594 = vmatpush3.bf16.msra.mxu0 %v11624_v63 }
 0x172   :  { %10595 = vmatprep.subr.bf16.mxu0 %v11627_v0 }
 0x173   :  { %10616 = vmatpush3.bf16.msra.mxu1 %v11626_v1 }
 0x174   :  { %10617 = vmatprep.subr.bf16.mxu1 %v11629_v2 }
 0x175   :  { %10596 = vmatpush3.bf16.msra.mxu0 %v11628_v3 }
 0x176   :  { %10597 = vmatprep.subr.bf16.mxu0 %v11631_v4 }
 0x177   :  { %v10295_v9 = vpop.f32.mrb[16].mxu0  ;;  %10618 = vmatpush3.bf16.msra.mxu1 %v11630_v5 }
 0x178   :  { %v10296_v11 = vpop.f32.mrb[17].mxu0  ;;  %10619 = vmatprep.subr.bf16.mxu1 %v11633_v6 }
 0x179   :  { %v10297_v13 = vadd.f32 %v10296_v11, %v10295_v9  ;;  %v10298_v14 = vpop.f32.mrb[18].mxu0  ;;  %v10317_v15 = vpop.f32.mrb[16].mxu1  ;;  %10598 = vmatpush3.bf16.msra.mxu0 %v11632_v7 }
 0x17a   :  { %v10299_v18 = vpop.f32.mrb[19].mxu0  ;;  %v10318_v19 = vpop.f32.mrb[17].mxu1  ;;  %10599 = vmatprep.subr.bf16.mxu0 %v11635_v8  ;;  %v11652_v14 = vld [vmem:[%s14920_s4] sm:$0xff]  }
 0x17b   :  { %v3916_v20 = vadd.f32 %v10297_v13, %v13298_v38  ;;  %v10319_v21 = vadd.f32 %v10318_v19, %v10317_v15  ;;  %10620 = vmatpush3.bf16.msra.mxu1 %v11634_v10  ;;  %v10320_v23 = vpop.f32.mrb[18].mxu1  ;;  %v11653_v18 = vld [vmem:[%s14920_s4 + $0x8] sm:$0xff]  }
 0x17c   :  { %10621 = vmatprep.subr.bf16.mxu1 %v11637_v12  ;;  %v10321_v25 = vpop.f32.mrb[19].mxu1 }
 0x17d   :  { %v3956_v26 = vadd.f32 %v10319_v21, %v3916_v20  ;;  %10600 = vmatpush3.bf16.msra.mxu0 %v11636_v16 }
 0x17e   :  { %10601 = vmatprep.subr.bf16.mxu0 %v11639_v17 }
 0x17f   :  { %10622 = vmatpush3.bf16.msra.mxu1 %v11638_v22 }
 0x180   :  { %10623 = vmatprep.subr.bf16.mxu1 %v11641_v24 }
 0x181   :  { %10602 = vmatpush3.bf16.msra.mxu0 %v11640_v27  ;;  %v11654_v27 = vld [vmem:[%s14922_s6 + $0x40] sm:$0xff]  }
 0x182   :  { %11186 = vmatprep.subr.bf16.mxu0 %v12081_v31 }
 0x183   :  { %10624 = vmatpush3.bf16.msra.mxu1 %v11643_v29 }
 0x184   :  { %4474 = vmatmul.mubr.bf16.vlgmr.msra.gmra.mrb[44].mxu0 %v1127_v28  ;;  %11206 = vmatprep.subr.bf16.mxu1 %v12081_v31 }
 0x185   :  { %11187 = vmatpush3.bf16.msra.mxu0 %v11644_v30  ;;  %11202 = vmatprep.mubr.msk.bf16.mxu0 %vm12082_vm0, %v12081_v31  ;;  %v11656_v30 = vld [vmem:[%s14922_s6 + $0xc0] sm:$0xff]  }
 0x186   :  { %4514 = vmatmul.mubr.bf16.vlgmr.msra.gmra.mrb[44].mxu1 %v1143_v32  ;;  %11188 = vmatprep.subr.bf16.mxu0 %v12081_v31  ;;  %v11657_v32 = vld [vmem:[%s14922_s6 + $0x80] sm:$0xff]  }
 0x187   :  { %11210 = vmatprep.mubr.msk.bf16.mxu1 %vm12082_vm0, %v12081_v31  ;;  %11207 = vmatpush3.bf16.msra.mxu1 %v11652_v14  ;;  %v11709_v14 = vld [vmem:[%s14922_s6 + $0x1a8] sm:$0xff]  }
 0x188   :  { %11208 = vmatprep.subr.bf16.mxu1 %v12081_v31 }
 0x189   :  { %11189 = vmatpush3.bf16.msra.mxu0 %v11645_v33  ;;  %v11660_v33 = vld [vmem:[%s14922_s6 + $0xc8] sm:$0xff]  }
 0x18a   :  { %11190 = vmatprep.subr.bf16.mxu0 %v12081_v31 }
 0x18b   :  { %11209 = vmatpush3.bf16.msra.mxu1 %v11653_v18  ;;  %v11713_v18 = vld [vmem:[%s14922_s6 + $0x1b0] sm:$0xff]  }
 0x18c   :  { %10643 = vmatprep.subr.bf16.mxu1 %v11654_v27  ;;  %v11716_v27 = vld [vmem:[%s14922_s6 + $0x1f8] sm:$0xff]  }
 0x18d   :  { %11191 = vmatpush3.bf16.msra.mxu0 %v11646_v34  ;;  %v11661_v34 = vld [vmem:[%s14922_s6 + $0x88] sm:$0xff]  }
 0x18e   :  { %11192 = vmatprep.subr.bf16.mxu0 %v12081_v31 }
 0x191   :  { %11193 = vmatpush3.bf16.msra.mxu0 %v11647_v35  ;;  %v11664_v35 = vld [vmem:[%s14922_s6 + $0xd0] sm:$0xff]  }
 0x192   :  { %11194 = vmatprep.subr.bf16.mxu0 %v12081_v31 }
 0x195   :  { %11195 = vmatpush3.bf16.msra.mxu0 %v11648_v36  ;;  %v11665_v36 = vld [vmem:[%s14922_s6 + $0x90] sm:$0xff]  }
 0x196   :  { %11196 = vmatprep.subr.bf16.mxu0 %v12081_v31 }
 0x197   :  { %v10339_v38 = vpop.f32.mrb[20].mxu0 }
 0x198   :  { %v10340_v39 = vpop.f32.mrb[21].mxu0 }
 0x199   :  { %v10341_v41 = vadd.f32 %v10340_v39, %v10339_v38  ;;  %v10342_v43 = vpop.f32.mrb[22].mxu0  ;;  %v10361_v44 = vpop.f32.mrb[20].mxu1  ;;  %11197 = vmatpush3.bf16.msra.mxu0 %v11649_v37  ;;  %v11668_v37 = vld [vmem:[%s14922_s6 + $0xd8] sm:$0xff]   ;;  %v11672_v39 = vld [vmem:[%s14922_s6 + $0xe0] sm:$0xff]  }
 0x19a   :  { %v10343_v45 = vpop.f32.mrb[23].mxu0  ;;  %v10362_v46 = vpop.f32.mrb[21].mxu1  ;;  %11198 = vmatprep.subr.bf16.mxu0 %v12081_v31  ;;  %v11669_v38 = vld [vmem:[%s14922_s6 + $0x98] sm:$0xff]   ;;  %v11677_v43 = vld [vmem:[%s14922_s6 + $0xa8] sm:$0xff]  }
 0x19b   :  { %v3996_v47 = vadd.f32 %v10341_v41, %v3956_v26  ;;  %v10363_v48 = vadd.f32 %v10362_v46, %v10361_v44  ;;  %v10364_v50 = vpop.f32.mrb[22].mxu1  ;;  %v11676_v41 = vld [vmem:[%s14922_s6 + $0xe8] sm:$0xff]   ;;  %v11680_v44 = vld [vmem:[%s14922_s6 + $0xf0] sm:$0xff]   ;;  %v4633_v45 = vld [vmem:[%s14917_s1] sm:$0xff] }
 0x19c   :  { %v10365_v52 = vpop.f32.mrb[23].mxu1 }
 0x19d   :  { %v4036_v53 = vadd.f32 %v10363_v48, %v3996_v47  ;;  %11199 = vmatpush3.bf16.msra.mxu0 %v11650_v40  ;;  %v11673_v40 = vld [vmem:[%s14922_s6 + $0xa0] sm:$0xff]   ;;  %v11681_v47 = vld [vmem:[%s14922_s6 + $0xb0] sm:$0xff]   ;;  %v5445_v48 = vrot.slane %v4633_v45, %v12262_v42 }
 0x19e   :  { %11200 = vmatprep.subr.bf16.mxu0 %v12081_v31 }
 0x1a1   :  { %11201 = vmatpush3.bf16.msra.mxu0 %v11651_v51 }
 0x1a2   :  { %10665 = vmatprep.subr.bf16.mxu0 %v11656_v30 }
 0x1a4   :  { %11203 = vmatmul.mubr.bf16.vlgmr.msra.gmra.mrb[48].mxu0 %v1159_v54 }
 0x1a5   :  { %10666 = vmatpush3.bf16.msra.mxu0 %v11657_v32 }
 0x1a6   :  { %10667 = vmatprep.subr.bf16.mxu0 %v11660_v33  ;;  %v11718_v33 = vld [vmem:[%s14922_s6 + $0x1b8] sm:$0xff]  }
 0x1a9   :  { %10668 = vmatpush3.bf16.msra.mxu0 %v11661_v34 }
 0x1aa   :  { %10669 = vmatprep.subr.bf16.mxu0 %v11664_v35 }
 0x1ad   :  { %10670 = vmatpush3.bf16.msra.mxu0 %v11665_v36 }
 0x1ae   :  { %10671 = vmatprep.subr.bf16.mxu0 %v11668_v37 }
 0x1b1   :  { %10672 = vmatpush3.bf16.msra.mxu0 %v11669_v38 }
 0x1b2   :  { %10673 = vmatprep.subr.bf16.mxu0 %v11672_v39  ;;  %v11721_v39 = vld [vmem:[%s14922_s6 + $0x2c0] sm:$0xff]  }
 0x1b5   :  { %10674 = vmatpush3.bf16.msra.mxu0 %v11673_v40  ;;  %v11722_v40 = vld [vmem:[%s14922_s6 + $0x280] sm:$0xff]  }
 0x1b6   :  { %10675 = vmatprep.subr.bf16.mxu0 %v11676_v41  ;;  %v11725_v41 = vld [vmem:[%s14922_s6 + $0x2c8] sm:$0xff]  }
 0x1b7   :  { %v10383_v55 = vpop.f32.mrb[24].mxu0 }
 0x1b8   :  { %v10384_v56 = vpop.f32.mrb[25].mxu0 }
 0x1b9   :  { %v10385_v57 = vadd.f32 %v10384_v56, %v10383_v55  ;;  %v10386_v58 = vpop.f32.mrb[26].mxu0  ;;  %v10405_v59 = vpop.f32.mrb[24].mxu1  ;;  %10676 = vmatpush3.bf16.msra.mxu0 %v11677_v43  ;;  %v11684_v56 = vld [vmem:[%s14922_s6 + $0xf8] sm:$0xff]   ;;  %v11726_v43 = vld [vmem:[%s14922_s6 + $0x288] sm:$0xff]  }
 0x1ba   :  { %v10387_v60 = vpop.f32.mrb[27].mxu0  ;;  %v10406_v61 = vpop.f32.mrb[25].mxu1  ;;  %10677 = vmatprep.subr.bf16.mxu0 %v11680_v44  ;;  %v11729_v44 = vld [vmem:[%s14922_s6 + $0x2d0] sm:$0xff]  }
 0x1bb   :  { %v4076_v62 = vadd.f32 %v10385_v57, %v4036_v53  ;;  %v10407_v63 = vadd.f32 %v10406_v61, %v10405_v59  ;;  %v10408_v0 = vpop.f32.mrb[26].mxu1  ;;  %v5453_v53 = vcombine.high %v5445_v48, %v5445_v48  ;;  %v11685_v61 = vld [vmem:[%s14922_s6 + $0xb8] sm:$0xff]  }
 0x1bc   :  { %v10409_v1 = vpop.f32.mrb[27].mxu1 }
 0x1bd   :  { %v4116_v2 = vadd.f32 %v10407_v63, %v4076_v62  ;;  %10678 = vmatpush3.bf16.msra.mxu0 %v11681_v47  ;;  %v13511_v60 = vrot.slane %v5453_v53, %v12262_v42  ;;  %v13517_v62 = vrot.slane %v5445_v48, %v12262_v42  ;;  %v11734_v47 = vld [vmem:[%s14922_s6 + $0x298] sm:$0xff]   ;;  %v11737_v48 = vld [vmem:[%s14922_s6 + $0x2e0] sm:$0xff]   ;;  %v4634_v53 = vld [vmem:[%s14917_s1 + $0x8] sm:$0xff] }
 0x1be   :  { %10679 = vmatprep.subr.bf16.mxu0 %v11684_v56  ;;  %v5494_v56 = vrot.slane %v4634_v53, %v12262_v42 }
 0x1bf   :  { %v5485_v1 = vcombine.high %v13511_v60, %v13511_v60 }
 0x1c1   :  { %10680 = vmatpush3.bf16.msra.mxu0 %v11685_v61  ;;  %8219 = vmatprep.mubr.bf16.mxu0 %v5485_v1 }
 0x1d7   :  { %v10427_v3 = vpop.f32.mrb[28].mxu0 }
 0x1d8   :  { %v10428_v4 = vpop.f32.mrb[29].mxu0 }
 0x1d9   :  { %v10429_v5 = vadd.f32 %v10428_v4, %v10427_v3  ;;  %v10430_v6 = vpop.f32.mrb[30].mxu0  ;;  %v10449_v7 = vpop.f32.mrb[28].mxu1  ;;  %v11688_v3 = vld [vmem:[%s14922_s6 + $0x1c0] sm:$0xff]  }
 0x1da   :  { %v10431_v8 = vpop.f32.mrb[31].mxu0  ;;  %v10450_v9 = vpop.f32.mrb[29].mxu1  ;;  %v11689_v4 = vld [vmem:[%s14922_s6 + $0x180] sm:$0xff]   ;;  %10709 = vmatprep.subr.bf16.mxu0 %v11688_v3  ;;  %v11693_v6 = vld [vmem:[%s14922_s6 + $0x188] sm:$0xff]  }
 0x1db   :  { %v4156_v10 = vadd.f32 %v10429_v5, %v4116_v2  ;;  %v10451_v11 = vadd.f32 %v10450_v9, %v10449_v7  ;;  %v10452_v12 = vpop.f32.mrb[30].mxu1  ;;  %v5483_v2 = vcombine.high %v13517_v62, %v13517_v62  ;;  %v11692_v5 = vld [vmem:[%s14922_s6 + $0x1c8] sm:$0xff]   ;;  %v11696_v7 = vld [vmem:[%s14922_s6 + $0x1d0] sm:$0xff]   ;;  %v11700_v9 = vld [vmem:[%s14922_s6 + $0x1d8] sm:$0xff]  }
 0x1dc   :  { %v10453_v13 = vpop.f32.mrb[31].mxu1  ;;  %v11697_v8 = vld [vmem:[%s14922_s6 + $0x190] sm:$0xff]   ;;  %v11705_v12 = vld [vmem:[%s14922_s6 + $0x1a0] sm:$0xff]  }
 0x1dd   :  { %v4196_v15 = vadd.f32 %v10451_v11, %v4156_v10  ;;  %8220 = vmatmul.mubr.bf16.vlgmr.msra.gmra.mrb[52].mxu0 %v5483_v2  ;;  %v11701_v10 = vld [vmem:[%s14922_s6 + $0x198] sm:$0xff]   ;;  %v11704_v11 = vld [vmem:[%s14922_s6 + $0x1e0] sm:$0xff]   ;;  %v11708_v13 = vld [vmem:[%s14922_s6 + $0x1e8] sm:$0xff]  }
 0x1de   :  { %10710 = vmatpush3.bf16.msra.mxu0 %v11689_v4  ;;  %v11749_v2 = vld [vmem:[%s14922_s6 + $0x2f8] sm:$0xff]  }
 0x1df   :  { %10711 = vmatprep.subr.bf16.mxu0 %v11692_v5 }
 0x1e2   :  { %10712 = vmatpush3.bf16.msra.mxu0 %v11693_v6 }
 0x1e3   :  { %10713 = vmatprep.subr.bf16.mxu0 %v11696_v7  ;;  %v11750_v7 = vld [vmem:[%s14922_s6 + $0x2b8] sm:$0xff]  }
 0x1e6   :  { %10714 = vmatpush3.bf16.msra.mxu0 %v11697_v8  ;;  %v13638_v8 = vrot.slane %v5494_v56, %v12262_v42 }
 0x1e7   :  { %10715 = vmatprep.subr.bf16.mxu0 %v11700_v9 }
 0x1ea   :  { %10716 = vmatpush3.bf16.msra.mxu0 %v11701_v10 }
 0x1eb   :  { %10717 = vmatprep.subr.bf16.mxu0 %v11704_v11 }
 0x1ee   :  { %10718 = vmatpush3.bf16.msra.mxu0 %v11705_v12  ;;  %v5532_v12 = vcombine.high %v13638_v8, %v13638_v8 }
 0x1ef   :  { %10719 = vmatprep.subr.bf16.mxu0 %v11708_v13  ;;  %v11753_v13 = vld [vmem:[%s14922_s6 + $0x3c0] sm:$0xff]  }
 0x1f2   :  { %10720 = vmatpush3.bf16.msra.mxu0 %v11709_v14  ;;  %v11754_v14 = vld [vmem:[%s14922_s6 + $0x380] sm:$0xff]  }
 0x1f7   :  { %v10471_v16 = vpop.f32.mrb[32].mxu0 }
 0x1f8   :  { %v10472_v17 = vpop.f32.mrb[33].mxu0 }
 0x1f9   :  { %v10473_v19 = vadd.f32 %v10472_v17, %v10471_v16  ;;  %v10474_v20 = vpop.f32.mrb[34].mxu0  ;;  %v10493_v21 = vpop.f32.mrb[32].mxu1  ;;  %v11712_v16 = vld [vmem:[%s14922_s6 + $0x1f0] sm:$0xff]  }
 0x1fa   :  { %v10475_v22 = vpop.f32.mrb[35].mxu0  ;;  %v10494_v23 = vpop.f32.mrb[33].mxu1  ;;  %10721 = vmatprep.subr.bf16.mxu0 %v11712_v16  ;;  %v11758_v16 = vld [vmem:[%s14922_s6 + $0x388] sm:$0xff]  }
 0x1fb   :  { %v4236_v24 = vadd.f32 %v10473_v19, %v4196_v15  ;;  %v10495_v25 = vadd.f32 %v10494_v23, %v10493_v21  ;;  %v10496_v26 = vpop.f32.mrb[34].mxu1  ;;  %v5438_v15 = vcombine.high %v4633_v45, %v4633_v45  ;;  %10722 = vmatpush3.bf16.msra.mxu0 %v11713_v18  ;;  %v11730_v45 = vld [vmem:[%s14922_s6 + $0x290] sm:$0xff]  }
 0x1fc   :  { %v10497_v28 = vpop.f32.mrb[35].mxu1  ;;  %10723 = vmatprep.subr.bf16.mxu0 %v11716_v27  ;;  %v11762_v18 = vld [vmem:[%s14922_s6 + $0x390] sm:$0xff]  }
 0x1fd   :  { %v4276_v29 = vadd.f32 %v10495_v25, %v4236_v24  ;;  %v5452_v19 = vrot.slane %v5438_v15, %v12262_v42  ;;  %v11757_v15 = vld [vmem:[%s14922_s6 + $0x3c8] sm:$0xff]  }
 0x1ff   :  { %v5454_v24 = vcombine.high %v5452_v19, %v5452_v19  ;;  %v13576_v34 = vrot.slane %v5452_v19, %v12262_v42  ;;  %10724 = vmatpush3.bf16.msra.mxu0 %v11718_v33  ;;  %v11765_v19 = vld [vmem:[%s14922_s6 + $0x3d8] sm:$0xff]  }
 0x200   :  { %10753 = vmatprep.subr.bf16.mxu0 %v11721_v39  ;;  %v11655_v39 = vld [vmem:[%s14922_s6] sm:$0xff]  }
 0x201   :  { %v13570_v32 = vrot.slane %v5454_v24, %v12262_v42  ;;  %v5484_v38 = vcombine.high %v13576_v34, %v13576_v34  ;;  %v11774_v24 = vld [vmem:[%s14922_s6 + $0x3a8] sm:$0xff]  }
 0x203   :  { %v5486_v37 = vcombine.high %v13570_v32, %v13570_v32 }
 0x205   :  { %8299 = vmatprep.mubr.bf16.mxu0 %v5486_v37 }
 0x206   :  { %8300 = vmatmul.mubr.bf16.vlgmr.msra.gmra.mrb[56].mxu0 %v5484_v38 }
 0x207   :  { %10754 = vmatpush3.bf16.msra.mxu0 %v11722_v40  ;;  %v11781_v40 = vld [vmem:[%s14922_s6 + $0x3f8] sm:$0xff]  }
 0x208   :  { %10755 = vmatprep.subr.bf16.mxu0 %v11725_v41 }
 0x20b   :  { %10756 = vmatpush3.bf16.msra.mxu0 %v11726_v43  ;;  %v11783_v43 = vld [vmem:[%s14922_s6 + $0x3b8] sm:$0xff]  }
 0x20c   :  { %10757 = vmatprep.subr.bf16.mxu0 %v11729_v44 }
 0x20f   :  { %10758 = vmatpush3.bf16.msra.mxu0 %v11730_v45 }
 0x217   :  { %v10515_v46 = vpop.f32.mrb[36].mxu0 }
 0x218   :  { %v10516_v49 = vpop.f32.mrb[37].mxu0 }
 0x219   :  { %v10517_v50 = vadd.f32 %v10516_v49, %v10515_v46  ;;  %v10518_v51 = vpop.f32.mrb[38].mxu0  ;;  %v10537_v52 = vpop.f32.mrb[36].mxu1  ;;  %v11733_v46 = vld [vmem:[%s14922_s6 + $0x2d8] sm:$0xff]   ;;  %v11738_v49 = vld [vmem:[%s14922_s6 + $0x2a0] sm:$0xff]  }
 0x21a   :  { %v10519_v54 = vpop.f32.mrb[39].mxu0  ;;  %v10538_v55 = vpop.f32.mrb[37].mxu1  ;;  %10759 = vmatprep.subr.bf16.mxu0 %v11733_v46  ;;  %v11742_v51 = vld [vmem:[%s14922_s6 + $0x2a8] sm:$0xff]  }
 0x21b   :  { %v4316_v57 = vadd.f32 %v10517_v50, %v4276_v29  ;;  %v10539_v58 = vadd.f32 %v10538_v55, %v10537_v52  ;;  %v10540_v59 = vpop.f32.mrb[38].mxu1  ;;  %10760 = vmatpush3.bf16.msra.mxu0 %v11734_v47  ;;  %v11741_v50 = vld [vmem:[%s14922_s6 + $0x2e8] sm:$0xff]   ;;  %v11745_v52 = vld [vmem:[%s14922_s6 + $0x2f0] sm:$0xff]  }
 0x21c   :  { %v10541_v63 = vpop.f32.mrb[39].mxu1  ;;  %10761 = vmatprep.subr.bf16.mxu0 %v11737_v48  ;;  %v11746_v55 = vld [vmem:[%s14922_s6 + $0x2b0] sm:$0xff]   ;;  %v11658_v46 = vld [vmem:[%s14922_s6 + $0x48] sm:$0xff]  }
 0x21d   :  { %v4356_v0 = vadd.f32 %v10539_v58, %v4316_v57  ;;  %v5502_v63 = vcombine.high %v5494_v56, %v5494_v56  ;;  %v11794_v56 = vld [vmem:[%s14922_s6 + $0x4d0] sm:$0xff]  }
 0x21f   :  { %10762 = vmatpush3.bf16.msra.mxu0 %v11738_v49  ;;  %v13632_v6 = vrot.slane %v5502_v63, %v12262_v42  ;;  %v11786_v49 = vld [vmem:[%s14922_s6 + $0x4c0] sm:$0xff]  }
 0x220   :  { %10763 = vmatprep.subr.bf16.mxu0 %v11741_v50  ;;  %v11659_v50 = vld [vmem:[%s14922_s6 + $0x8] sm:$0xff]   ;;  %v11671_v63 = vld [vmem:[%s14922_s6 + $0x20] sm:$0xff]  }
 0x221   :  { %v5534_v11 = vcombine.high %v13632_v6, %v13632_v6 }
 0x223   :  { %10764 = vmatpush3.bf16.msra.mxu0 %v11742_v51  ;;  %8379 = vmatprep.mubr.bf16.mxu0 %v5534_v11  ;;  %v11787_v51 = vld [vmem:[%s14922_s6 + $0x480] sm:$0xff]   ;;  %v11682_v11 = vld [vmem:[%s14922_s6 + $0x78] sm:$0xff]  }
 0x224   :  { %10765 = vmatprep.subr.bf16.mxu0 %v11745_v52  ;;  %v11662_v52 = vld [vmem:[%s14922_s6 + $0x50] sm:$0xff]  }
 0x227   :  { %10766 = vmatpush3.bf16.msra.mxu0 %v11746_v55  ;;  %v11666_v55 = vld [vmem:[%s14922_s6 + $0x58] sm:$0xff]  }
 0x228   :  { %10767 = vmatprep.subr.bf16.mxu0 %v11749_v2  ;;  %v11802_v2 = vld [vmem:[%s14922_s6 + $0x4e0] sm:$0xff]  }
 0x22b   :  { %10768 = vmatpush3.bf16.msra.mxu0 %v11750_v7  ;;  %v11806_v7 = vld [vmem:[%s14922_s6 + $0x4e8] sm:$0xff]  }
 0x22c   :  { %10797 = vmatprep.subr.bf16.mxu0 %v11753_v13  ;;  %v13789_v13 = vld [vmem:[%s14917_s1 + $0x10] sm:$0xff] }
 0x22e   :  { %8380 = vmatmul.mubr.bf16.vlgmr.msra.gmra.mrb[60].mxu0 %v5532_v12  ;;  %v11810_v12 = vld [vmem:[%s14922_s6 + $0x4f0] sm:$0xff]  }
 0x22f   :  { %10798 = vmatpush3.bf16.msra.mxu0 %v11754_v14  ;;  %v11683_v14 = vld [vmem:[%s14922_s6 + $0x38] sm:$0xff]  }
 0x230   :  { %10799 = vmatprep.subr.bf16.mxu0 %v11757_v15  ;;  %v11811_v15 = vld [vmem:[%s14922_s6 + $0x4b0] sm:$0xff]  }
 0x233   :  { %10800 = vmatpush3.bf16.msra.mxu0 %v11758_v16  ;;  %v5543_v16 = vrot.slane %v13789_v13, %v12262_v42 }
 0x237   :  { %v10559_v17 = vpop.f32.mrb[40].mxu0 }
 0x238   :  { %v10560_v20 = vpop.f32.mrb[41].mxu0 }
 0x239   :  { %v10561_v21 = vadd.f32 %v10560_v20, %v10559_v17  ;;  %v10562_v22 = vpop.f32.mrb[42].mxu0  ;;  %v10581_v23 = vpop.f32.mrb[40].mxu1  ;;  %v11761_v17 = vld [vmem:[%s14922_s6 + $0x3d0] sm:$0xff]   ;;  %v11766_v20 = vld [vmem:[%s14922_s6 + $0x398] sm:$0xff]  }
 0x23a   :  { %v10563_v25 = vpop.f32.mrb[43].mxu0  ;;  %v10582_v26 = vpop.f32.mrb[41].mxu1  ;;  %10801 = vmatprep.subr.bf16.mxu0 %v11761_v17  ;;  %v11770_v22 = vld [vmem:[%s14922_s6 + $0x3a0] sm:$0xff]  }
 0x23b   :  { %v4396_v28 = vadd.f32 %v10561_v21, %v4356_v0  ;;  %v10583_v29 = vadd.f32 %v10582_v26, %v10581_v23  ;;  %v10584_v30 = vpop.f32.mrb[42].mxu1  ;;  %10802 = vmatpush3.bf16.msra.mxu0 %v11762_v18  ;;  %v11769_v21 = vld [vmem:[%s14922_s6 + $0x3e0] sm:$0xff]   ;;  %v11773_v23 = vld [vmem:[%s14922_s6 + $0x3e8] sm:$0xff]   ;;  %v5487_v25 = vcombine.high %v4634_v53, %v4634_v53  ;;  %v11777_v26 = vld [vmem:[%s14922_s6 + $0x3f0] sm:$0xff]  }
 0x23c   :  { %v10585_v35 = vpop.f32.mrb[43].mxu1  ;;  %10803 = vmatprep.subr.bf16.mxu0 %v11765_v19  ;;  %v11790_v53 = vld [vmem:[%s14922_s6 + $0x4c8] sm:$0xff]   ;;  %v11686_v17 = vld [vmem:[%s14922_s6 + $0x140] sm:$0xff]   ;;  %v5551_v19 = vcombine.high %v5543_v16, %v5543_v16 }
 0x23d   :  { %v4436_v36 = vadd.f32 %v10583_v29, %v4396_v28  ;;  %v11778_v28 = vld [vmem:[%s14922_s6 + $0x3b0] sm:$0xff]   ;;  %v5501_v29 = vrot.slane %v5487_v25, %v12262_v42  ;;  %v11687_v18 = vld [vmem:[%s14922_s6 + $0x100] sm:$0xff]  }
 0x23f   :  { %10804 = vmatpush3.bf16.msra.mxu0 %v11766_v20  ;;  %v13700_v44 = vrot.slane %v5501_v29, %v12262_v42  ;;  %v11814_v20 = vld [vmem:[%s14922_s6 + $0x4f8] sm:$0xff]  }
 0x240   :  { %10805 = vmatprep.subr.bf16.mxu0 %v11769_v21  ;;  %v13809_v21 = vrot.slane %v5551_v19, %v12262_v42  ;;  %v11863_v19 = vld [vmem:[%s14922_s6 + $0x6d8] sm:$0xff]  }
 0x241   :  { %v5533_v48 = vcombine.high %v13700_v44, %v13700_v44 }
 0x242   :  { %v5583_v25 = vcombine.high %v13809_v21, %v13809_v21 }
 0x243   :  { %10806 = vmatpush3.bf16.msra.mxu0 %v11770_v22  ;;  %v11815_v22 = vld [vmem:[%s14922_s6 + $0x4b8] sm:$0xff]  }
 0x244   :  { %10807 = vmatprep.subr.bf16.mxu0 %v11773_v23  ;;  %v13815_v23 = vrot.slane %v5543_v16, %v12262_v42  ;;  %v11732_v16 = vld [vmem:[%s14922_s6 + $0x218] sm:$0xff]  }
 0x247   :  { %10808 = vmatpush3.bf16.msra.mxu0 %v11774_v24  ;;  %v11690_v24 = vld [vmem:[%s14922_s6 + $0x148] sm:$0xff]  }
 0x248   :  { %10809 = vmatprep.subr.bf16.mxu0 %v11777_v26  ;;  %v5581_v26 = vcombine.high %v13815_v23, %v13815_v23 }
 0x24b   :  { %10810 = vmatpush3.bf16.msra.mxu0 %v11778_v28  ;;  %v11691_v28 = vld [vmem:[%s14922_s6 + $0x108] sm:$0xff]  }
 0x24c   :  { %10811 = vmatprep.subr.bf16.mxu0 %v11781_v40  ;;  %v11830_v40 = vld [vmem:[%s14922_s6 + $0x5d8] sm:$0xff]  }
 0x24f   :  { %10812 = vmatpush3.bf16.msra.mxu0 %v11783_v43  ;;  %v11703_v43 = vld [vmem:[%s14922_s6 + $0x120] sm:$0xff]  }
 0x250   :  { %10841 = vmatprep.subr.bf16.mxu0 %v11786_v49  ;;  %v11835_v49 = vld [vmem:[%s14922_s6 + $0x5a0] sm:$0xff]  }
 0x257   :  { %v10603_v54 = vpop.f32.mrb[44].mxu0 }
 0x258   :  { %v10604_v57 = vpop.f32.mrb[45].mxu0 }
 0x259   :  { %v10605_v58 = vadd.f32 %v10604_v57, %v10603_v54  ;;  %v10606_v59 = vpop.f32.mrb[46].mxu0  ;;  %v10625_v61 = vpop.f32.mrb[44].mxu1  ;;  %v11791_v54 = vld [vmem:[%s14922_s6 + $0x488] sm:$0xff]   ;;  %v11667_v57 = vld [vmem:[%s14922_s6 + $0x18] sm:$0xff]  }
 0x25a   :  { %v10607_v0 = vpop.f32.mrb[47].mxu0  ;;  %v10626_v1 = vpop.f32.mrb[45].mxu1  ;;  %v11670_v59 = vld [vmem:[%s14922_s6 + $0x60] sm:$0xff]  }
 0x25b   :  { %v4476_v3 = vadd.f32 %v10605_v58, %v4436_v36  ;;  %v10627_v4 = vadd.f32 %v10626_v1, %v10625_v61  ;;  %v10628_v5 = vpop.f32.mrb[46].mxu1  ;;  %v5503_v36 = vcombine.high %v5501_v29, %v5501_v29  ;;  %v11795_v58 = vld [vmem:[%s14922_s6 + $0x490] sm:$0xff]   ;;  %v11798_v61 = vld [vmem:[%s14922_s6 + $0x4d8] sm:$0xff]   ;;  %v11674_v1 = vld [vmem:[%s14922_s6 + $0x68] sm:$0xff]  }
 0x25c   :  { %v10629_v9 = vpop.f32.mrb[47].mxu1  ;;  %v11799_v0 = vld [vmem:[%s14922_s6 + $0x498] sm:$0xff]   ;;  %v11678_v5 = vld [vmem:[%s14922_s6 + $0x70] sm:$0xff]   ;;  %v11819_v29 = vld [vmem:[%s14922_s6 + $0x580] sm:$0xff]  }
 0x25d   :  { %v4516_v10 = vadd.f32 %v10627_v4, %v4476_v3  ;;  %v13694_v41 = vrot.slane %v5503_v36, %v12262_v42  ;;  %v11675_v3 = vld [vmem:[%s14922_s6 + $0x28] sm:$0xff]   ;;  %v11803_v4 = vld [vmem:[%s14922_s6 + $0x4a0] sm:$0xff]   ;;  %v11679_v9 = vld [vmem:[%s14922_s6 + $0x30] sm:$0xff]  }
 0x25e   :  { %v11826_v36 = vld [vmem:[%s14922_s6 + $0x5d0] sm:$0xff]  }
 0x25f   :  { %v5535_v47 = vcombine.high %v13694_v41, %v13694_v41 }
 0x261   :  { %8459 = vmatprep.mubr.bf16.mxu0 %v5535_v47  ;;  %v11834_v47 = vld [vmem:[%s14922_s6 + $0x5e0] sm:$0xff]  }
 0x262   :  { %8460 = vmatmul.mubr.bf16.vlgmr.msra.gmra.mrb[64].mxu0 %v5533_v48  ;;  %v11707_v48 = vld [vmem:[%s14922_s6 + $0x128] sm:$0xff]  }
 0x263   :  { %10842 = vmatpush3.bf16.msra.mxu0 %v11787_v51  ;;  %8539 = vmatprep.mubr.bf16.mxu0 %v5583_v25  ;;  %v11838_v51 = vld [vmem:[%s14922_s6 + $0x5e8] sm:$0xff]   ;;  %v11867_v25 = vld [vmem:[%s14922_s6 + $0x6e0] sm:$0xff]  }
 0x264   :  { %10843 = vmatprep.subr.bf16.mxu0 %v11790_v53  ;;  %v11839_v53 = vld [vmem:[%s14922_s6 + $0x5a8] sm:$0xff]  }
 0x267   :  { %10844 = vmatpush3.bf16.msra.mxu0 %v11791_v54  ;;  %v5536_v54 = vcombine.high %v13789_v13, %v13789_v13  ;;  %v11856_v13 = vld [vmem:[%s14922_s6 + $0x688] sm:$0xff]  }
 0x268   :  { %10845 = vmatprep.subr.bf16.mxu0 %v11794_v56  ;;  %v11715_v56 = vld [vmem:[%s14922_s6 + $0x138] sm:$0xff]  }
 0x26b   :  { %10846 = vmatpush3.bf16.msra.mxu0 %v11795_v58  ;;  %v5550_v58 = vrot.slane %v5536_v54, %v12262_v42  ;;  %v11887_v54 = vld [vmem:[%s14922_s6 + $0x7c8] sm:$0xff]  }
 0x26c   :  { %10847 = vmatprep.subr.bf16.mxu0 %v11798_v61  ;;  %v11720_v61 = vld [vmem:[%s14922_s6 + $0x200] sm:$0xff]  }
 0x26f   :  { %10848 = vmatpush3.bf16.msra.mxu0 %v11799_v0  ;;  %v11846_v0 = vld [vmem:[%s14922_s6 + $0x5f8] sm:$0xff]  }
 0x270   :  { %10849 = vmatprep.subr.bf16.mxu0 %v11802_v2  ;;  %v11848_v2 = vld [vmem:[%s14922_s6 + $0x5b8] sm:$0xff]  }
 0x273   :  { %10850 = vmatpush3.bf16.msra.mxu0 %v11803_v4  ;;  %v11723_v4 = vld [vmem:[%s14922_s6 + $0x248] sm:$0xff]  }
 0x274   :  { %10851 = vmatprep.subr.bf16.mxu0 %v11806_v7 }
 0x277   :  { %v4555_v27 = vpop.f32.mrb[48].mxu0 }
 0x278   :  { %v4556_v30 = vadd.f32 %v4555_v27, %v4516_v10  ;;  %v11204_v33 = vpop.f32.mrb[49].mxu0  ;;  %v11807_v10 = vld [vmem:[%s14922_s6 + $0x4a8] sm:$0xff]   ;;  %v11818_v27 = vld [vmem:[%s14922_s6 + $0x5c0] sm:$0xff]  }
 0x279   :  { %v4558_v35 = vpop.f32.mrb[50].mxu0  ;;  %10852 = vmatpush3.bf16.msra.mxu0 %v11807_v10  ;;  %v11823_v33 = vld [vmem:[%s14922_s6 + $0x588] sm:$0xff]  }
 0x27a   :  { %v4561_v37 = vmax.f32 %v4556_v30, 0.0  ;;  %v11205_v38 = vpop.f32.mrb[51].mxu0  ;;  %10853 = vmatprep.subr.bf16.mxu0 %v11810_v12  ;;  %v11822_v30 = vld [vmem:[%s14922_s6 + $0x5c8] sm:$0xff]   ;;  %v11698_v35 = vld [vmem:[%s14922_s6 + $0x158] sm:$0xff]  }
 0x27b   :  { %v11827_v38 = vld [vmem:[%s14922_s6 + $0x590] sm:$0xff]   ;;  %v11724_v10 = vld [vmem:[%s14922_s6 + $0x208] sm:$0xff]  }
 0x27c   :  { %v4562_v45 = vpack.c.bf16 %v4561_v37, %v4561_v37  ;;  %v11699_v37 = vld [vmem:[%s14922_s6 + $0x118] sm:$0xff]   ;;  %v11855_v12 = vld [vmem:[%s14922_s6 + $0x6c8] sm:$0xff]  }
 0x27d   :  { %10854 = vmatpush3.bf16.msra.mxu0 %v11811_v15  ;;  %v11859_v15 = vld [vmem:[%s14922_s6 + $0x6d0] sm:$0xff]  }
 0x27e   :  { %11211 = vmatmul.mubr.msk.bf16.vlgmr.msra.gmra.mrb[48].mxu1 %vm4586_vm1, %v4562_v45  ;;  %10855 = vmatprep.subr.bf16.mxu0 %v11814_v20  ;;  %v11831_v45 = vld [vmem:[%s14922_s6 + $0x598] sm:$0xff]   ;;  %v11736_v20 = vld [vmem:[%s14922_s6 + $0x220] sm:$0xff]  }
 0x27f   :  { %10644 = vmatpush3.bf16.msra.mxu1 %v11655_v39  ;;  %8179 = vmatprep.mubr.bf16.mxu1 %v13511_v60  ;;  %v11663_v60 = vld [vmem:[%s14922_s6 + $0x10] sm:$0xff]   ;;  %v11702_v39 = vld [vmem:[%s14922_s6 + $0x160] sm:$0xff]  }
 0x280   :  { %10645 = vmatprep.subr.bf16.mxu1 %v11658_v46  ;;  %v11706_v46 = vld [vmem:[%s14922_s6 + $0x168] sm:$0xff]  }
 0x281   :  { %10856 = vmatpush3.bf16.msra.mxu0 %v11815_v22  ;;  %v11864_v22 = vld [vmem:[%s14922_s6 + $0x698] sm:$0xff]  }
 0x282   :  { %10885 = vmatprep.subr.bf16.mxu0 %v11818_v27  ;;  %v11868_v27 = vld [vmem:[%s14922_s6 + $0x6a0] sm:$0xff]  }
 0x283   :  { %10646 = vmatpush3.bf16.msra.mxu1 %v11659_v50  ;;  %v11710_v50 = vld [vmem:[%s14922_s6 + $0x170] sm:$0xff]  }
 0x284   :  { %10647 = vmatprep.subr.bf16.mxu1 %v11662_v52  ;;  %8540 = vmatmul.mubr.bf16.vlgmr.msra.gmra.mrb[68].mxu0 %v5581_v26  ;;  %v11711_v52 = vld [vmem:[%s14922_s6 + $0x130] sm:$0xff]   ;;  %v11740_v26 = vld [vmem:[%s14922_s6 + $0x228] sm:$0xff]  }
 0x285   :  { %10886 = vmatpush3.bf16.msra.mxu0 %v11819_v29  ;;  %v11744_v29 = vld [vmem:[%s14922_s6 + $0x230] sm:$0xff]  }
 0x286   :  { %10887 = vmatprep.subr.bf16.mxu0 %v11822_v30  ;;  %v11872_v30 = vld [vmem:[%s14922_s6 + $0x6a8] sm:$0xff]  }
 0x287   :  { %10648 = vmatpush3.bf16.msra.mxu1 %v11663_v60  ;;  %v11714_v60 = vld [vmem:[%s14922_s6 + $0x178] sm:$0xff]  }
 0x288   :  { %10649 = vmatprep.subr.bf16.mxu1 %v11666_v55  ;;  %v11842_v55 = vld [vmem:[%s14922_s6 + $0x5f0] sm:$0xff]  }
 0x289   :  { %10888 = vmatpush3.bf16.msra.mxu0 %v11823_v33  ;;  %v11875_v33 = vld [vmem:[%s14922_s6 + $0x6f0] sm:$0xff]  }
 0x28a   :  { %10889 = vmatprep.subr.bf16.mxu0 %v11826_v36  ;;  %v11748_v36 = vld [vmem:[%s14922_s6 + $0x238] sm:$0xff]  }
 0x28b   :  { %10650 = vmatpush3.bf16.msra.mxu1 %v11667_v57  ;;  %v11843_v57 = vld [vmem:[%s14922_s6 + $0x5b0] sm:$0xff]  }
 0x28c   :  { %10651 = vmatprep.subr.bf16.mxu1 %v11670_v59  ;;  %v11719_v59 = vld [vmem:[%s14922_s6 + $0x240] sm:$0xff]  }
 0x28d   :  { %10890 = vmatpush3.bf16.msra.mxu0 %v11827_v38 }
 0x28e   :  { %10891 = vmatprep.subr.bf16.mxu0 %v11830_v40  ;;  %v11752_v40 = vld [vmem:[%s14922_s6 + $0x300] sm:$0xff]  }
 0x28f   :  { %10652 = vmatpush3.bf16.msra.mxu1 %v11671_v63  ;;  %v5552_v63 = vcombine.high %v5550_v58, %v5550_v58 }
 0x290   :  { %10653 = vmatprep.subr.bf16.mxu1 %v11674_v1 }
 0x291   :  { %10892 = vmatpush3.bf16.msra.mxu0 %v11831_v45  ;;  %v13920_v1 = vrot.slane %v5552_v63, %v12262_v42  ;;  %v11879_v45 = vld [vmem:[%s14922_s6 + $0x6f8] sm:$0xff]  }
 0x292   :  { %10893 = vmatprep.subr.bf16.mxu0 %v11834_v47  ;;  %v11880_v47 = vld [vmem:[%s14922_s6 + $0x6b8] sm:$0xff]  }
 0x293   :  { %10654 = vmatpush3.bf16.msra.mxu1 %v11675_v3  ;;  %v13926_v3 = vrot.slane %v5550_v58, %v12262_v42  ;;  %v11764_v58 = vld [vmem:[%s14922_s6 + $0x318] sm:$0xff]  }
 0x294   :  { %10655 = vmatprep.subr.bf16.mxu1 %v11678_v5  ;;  %v5584_v5 = vcombine.high %v13920_v1, %v13920_v1 }
 0x295   :  { %10894 = vmatpush3.bf16.msra.mxu0 %v11835_v49  ;;  %v5582_v7 = vcombine.high %v13926_v3, %v13926_v3  ;;  %v11755_v49 = vld [vmem:[%s14922_s6 + $0x348] sm:$0xff]  }
 0x296   :  { %10895 = vmatprep.subr.bf16.mxu0 %v11838_v51  ;;  %8619 = vmatprep.mubr.bf16.mxu0 %v5584_v5 }
 0x297   :  { %10656 = vmatpush3.bf16.msra.mxu1 %v11679_v9  ;;  %v11851_v9 = vld [vmem:[%s14922_s6 + $0x6c0] sm:$0xff]  }
 0x298   :  { %10657 = vmatprep.subr.bf16.mxu1 %v11682_v11  ;;  %v11852_v11 = vld [vmem:[%s14922_s6 + $0x680] sm:$0xff]  }
 0x299   :  { %10896 = vmatpush3.bf16.msra.mxu0 %v11839_v53  ;;  %v11756_v53 = vld [vmem:[%s14922_s6 + $0x308] sm:$0xff]  }
 0x29a   :  { %10897 = vmatprep.subr.bf16.mxu0 %v11842_v55  ;;  %v11888_v55 = vld [vmem:[%s14922_s6 + $0x788] sm:$0xff]  }
 0x29b   :  { %10658 = vmatpush3.bf16.msra.mxu1 %v11683_v14  ;;  %v11731_v14 = vld [vmem:[%s14922_s6 + $0x258] sm:$0xff]  }
 0x29c   :  { %10687 = vmatprep.subr.bf16.mxu1 %v11686_v17  ;;  %v11860_v17 = vld [vmem:[%s14922_s6 + $0x690] sm:$0xff]  }
 0x29d   :  { %10898 = vmatpush3.bf16.msra.mxu0 %v11843_v57  ;;  %v11891_v57 = vld [vmem:[%s14922_s6 + $0x7d0] sm:$0xff]  }
 0x29e   :  { %8180 = vmatmul.mubr.bf16.vlgmr.msra.gmra.mrb[52].mxu1 %v13517_v62  ;;  %v11694_v62 = vld [vmem:[%s14922_s6 + $0x150] sm:$0xff]   ;;  %10899 = vmatprep.subr.bf16.mxu0 %v11846_v0 }
 0x29f   :  { %10688 = vmatpush3.bf16.msra.mxu1 %v11687_v18  ;;  %8259 = vmatprep.mubr.bf16.mxu1 %v13570_v32  ;;  %v11695_v32 = vld [vmem:[%s14922_s6 + $0x110] sm:$0xff]   ;;  %v11735_v18 = vld [vmem:[%s14922_s6 + $0x260] sm:$0xff]  }
 0x2a0   :  { %10689 = vmatprep.subr.bf16.mxu1 %v11690_v24  ;;  %v11739_v24 = vld [vmem:[%s14922_s6 + $0x268] sm:$0xff]  }
 0x2a1   :  { %10900 = vmatpush3.bf16.msra.mxu0 %v11848_v2 }
 0x2a2   :  { %10929 = vmatprep.subr.bf16.mxu0 %v11851_v9 }
 0x2a3   :  { %10690 = vmatpush3.bf16.msra.mxu1 %v11691_v28  ;;  %v11743_v28 = vld [vmem:[%s14922_s6 + $0x270] sm:$0xff]  }
 0x2a4   :  { %10691 = vmatprep.subr.bf16.mxu1 %v11694_v62  ;;  %8620 = vmatmul.mubr.bf16.vlgmr.msra.gmra.mrb[72].mxu0 %v5582_v7  ;;  %v11871_v62 = vld [vmem:[%s14922_s6 + $0x6e8] sm:$0xff]  }
 0x2a5   :  { %10930 = vmatpush3.bf16.msra.mxu0 %v11852_v11 }
 0x2a6   :  { %10931 = vmatprep.subr.bf16.mxu0 %v11855_v12 }
 0x2a7   :  { %10692 = vmatpush3.bf16.msra.mxu1 %v11695_v32  ;;  %v11747_v32 = vld [vmem:[%s14922_s6 + $0x278] sm:$0xff]  }
 0x2a8   :  { %10693 = vmatprep.subr.bf16.mxu1 %v11698_v35  ;;  %v14015_v35 = vld [vmem:[%s14917_s1 + $0x18] sm:$0xff] }
 0x2a9   :  { %10932 = vmatpush3.bf16.msra.mxu0 %v11856_v13  ;;  %v5592_v38 = vrot.slane %v14015_v35, %v12262_v42 }
 0x2aa   :  { %10933 = vmatprep.subr.bf16.mxu0 %v11859_v15 }
 0x2ab   :  { %10694 = vmatpush3.bf16.msra.mxu1 %v11699_v37  ;;  %v11876_v37 = vld [vmem:[%s14922_s6 + $0x6b0] sm:$0xff]  }
 0x2ac   :  { %10695 = vmatprep.subr.bf16.mxu1 %v11702_v39  ;;  %v11751_v39 = vld [vmem:[%s14922_s6 + $0x340] sm:$0xff]  }
 0x2ad   :  { %10934 = vmatpush3.bf16.msra.mxu0 %v11860_v17 }
 0x2ae   :  { %10935 = vmatprep.subr.bf16.mxu0 %v11863_v19 }
 0x2af   :  { %10696 = vmatpush3.bf16.msra.mxu1 %v11703_v43  ;;  %v5600_v43 = vcombine.high %v5592_v38, %v5592_v38 }
 0x2b0   :  { %10697 = vmatprep.subr.bf16.mxu1 %v11706_v46 }
 0x2b1   :  { %10936 = vmatpush3.bf16.msra.mxu0 %v11864_v22  ;;  %v14035_v46 = vrot.slane %v5600_v43, %v12262_v42 }
 0x2b2   :  { %10937 = vmatprep.subr.bf16.mxu0 %v11867_v25 }
 0x2b3   :  { %10698 = vmatpush3.bf16.msra.mxu1 %v11707_v48  ;;  %v14041_v48 = vrot.slane %v5592_v38, %v12262_v42 }
 0x2b4   :  { %10699 = vmatprep.subr.bf16.mxu1 %v11710_v50  ;;  %v5632_v50 = vcombine.high %v14035_v46, %v14035_v46 }
 0x2b5   :  { %10938 = vmatpush3.bf16.msra.mxu0 %v11868_v27  ;;  %v5630_v51 = vcombine.high %v14041_v48, %v14041_v48 }
 0x2b6   :  { %10939 = vmatprep.subr.bf16.mxu0 %v11871_v62  ;;  %8699 = vmatprep.mubr.bf16.mxu0 %v5632_v50 }
 0x2b7   :  { %10700 = vmatpush3.bf16.msra.mxu1 %v11711_v52  ;;  %v11883_v52 = vld [vmem:[%s14922_s6 + $0x7c0] sm:$0xff]  }
 0x2b8   :  { %10701 = vmatprep.subr.bf16.mxu1 %v11714_v60  ;;  %v11884_v60 = vld [vmem:[%s14922_s6 + $0x780] sm:$0xff]  }
 0x2b9   :  { %10940 = vmatpush3.bf16.msra.mxu0 %v11872_v30 }
 0x2ba   :  { %10941 = vmatprep.subr.bf16.mxu0 %v11875_v33 }
 0x2bb   :  { %10702 = vmatpush3.bf16.msra.mxu1 %v11715_v56  ;;  %v11763_v56 = vld [vmem:[%s14922_s6 + $0x358] sm:$0xff]  }
 0x2bc   :  { %10731 = vmatprep.subr.bf16.mxu1 %v11719_v59  ;;  %v11892_v59 = vld [vmem:[%s14922_s6 + $0x790] sm:$0xff]  }
 0x2bd   :  { %10942 = vmatpush3.bf16.msra.mxu0 %v11876_v37 }
 0x2be   :  { %8260 = vmatmul.mubr.bf16.vlgmr.msra.gmra.mrb[56].mxu1 %v13576_v34  ;;  %v11727_v34 = vld [vmem:[%s14922_s6 + $0x250] sm:$0xff]   ;;  %10943 = vmatprep.subr.bf16.mxu0 %v11879_v45 }
 0x2bf   :  { %10732 = vmatpush3.bf16.msra.mxu1 %v11720_v61  ;;  %8339 = vmatprep.mubr.bf16.mxu1 %v13632_v6  ;;  %v11728_v6 = vld [vmem:[%s14922_s6 + $0x210] sm:$0xff]   ;;  %v11767_v61 = vld [vmem:[%s14922_s6 + $0x360] sm:$0xff]  }
 0x2c0   :  { %10733 = vmatprep.subr.bf16.mxu1 %v11723_v4 }
 0x2c1   :  { %10944 = vmatpush3.bf16.msra.mxu0 %v11880_v47 }
 0x2c2   :  { %10973 = vmatprep.subr.bf16.mxu0 %v11883_v52 }
 0x2c3   :  { %10734 = vmatpush3.bf16.msra.mxu1 %v11724_v10 }
 0x2c4   :  { %10735 = vmatprep.subr.bf16.mxu1 %v11727_v34  ;;  %8700 = vmatmul.mubr.bf16.vlgmr.msra.gmra.mrb[76].mxu0 %v5630_v51 }
 0x2c5   :  { %10974 = vmatpush3.bf16.msra.mxu0 %v11884_v60 }
 0x2c6   :  { %10975 = vmatprep.subr.bf16.mxu0 %v11887_v54 }
 0x2c7   :  { %10736 = vmatpush3.bf16.msra.mxu1 %v11728_v6 }
 0x2c8   :  { %10737 = vmatprep.subr.bf16.mxu1 %v11731_v14 }
 0x2c9   :  { %10976 = vmatpush3.bf16.msra.mxu0 %v11888_v55 }
 0x2ca   :  { %10977 = vmatprep.subr.bf16.mxu0 %v11891_v57 }
 0x2cb   :  { %10738 = vmatpush3.bf16.msra.mxu1 %v11732_v16 }
 0x2cc   :  { %10739 = vmatprep.subr.bf16.mxu1 %v11735_v18 }
 0x2cf   :  { %10740 = vmatpush3.bf16.msra.mxu1 %v11736_v20 }
 0x2d0   :  { %10741 = vmatprep.subr.bf16.mxu1 %v11739_v24 }
 0x2d3   :  { %10742 = vmatpush3.bf16.msra.mxu1 %v11740_v26 }
 0x2d4   :  { %10743 = vmatprep.subr.bf16.mxu1 %v11743_v28 }
 0x2d7   :  { %10744 = vmatpush3.bf16.msra.mxu1 %v11744_v29 }
 0x2d8   :  { %10745 = vmatprep.subr.bf16.mxu1 %v11747_v32 }
 0x2db   :  { %10746 = vmatpush3.bf16.msra.mxu1 %v11748_v36 }
 0x2dc   :  { %10775 = vmatprep.subr.bf16.mxu1 %v11751_v39 }
 0x2de   :  { %8340 = vmatmul.mubr.bf16.vlgmr.msra.gmra.mrb[60].mxu1 %v13638_v8  ;;  %v11759_v8 = vld [vmem:[%s14922_s6 + $0x350] sm:$0xff]  }
 0x2df   :  { %10776 = vmatpush3.bf16.msra.mxu1 %v11752_v40  ;;  %8419 = vmatprep.mubr.bf16.mxu1 %v13694_v41  ;;  %v11760_v41 = vld [vmem:[%s14922_s6 + $0x310] sm:$0xff]  }
 0x2e0   :  { %10777 = vmatprep.subr.bf16.mxu1 %v11755_v49 }
 0x2e3   :  { %10778 = vmatpush3.bf16.msra.mxu1 %v11756_v53 }
 0x2e4   :  { %10779 = vmatprep.subr.bf16.mxu1 %v11759_v8 }
 0x2e7   :  { %10780 = vmatpush3.bf16.msra.mxu1 %v11760_v41 }
 0x2e8   :  { %10781 = vmatprep.subr.bf16.mxu1 %v11763_v56 }
 0x2e9   :  { %21 = vsyncpa [#allocation4], 0  ;;  %10978 = vmatpush3.bf16.msra.mxu0 %v11892_v59  ;;  %v11895_v63 = vld [vmem:[%s14922_s6 + $0x7d8] sm:$0xff]   ;;  %v11768_v0 = vld [vmem:[%s14922_s6 + $0x320] sm:$0xff]   ;;  %v10681_v12 = vpop.f32.mrb[52].mxu0  ;;  %v5585_v16 = vcombine.high %v14015_v35, %v14015_v35  ;;  %vm4631_vm2 = vcmask 254976  }
 0x2ea   :  { %v11896_v2 = vld [vmem:[%s14922_s6 + $0x798] sm:$0xff]   ;;  %v11771_v4 = vld [vmem:[%s14922_s6 + $0x368] sm:$0xff]   ;;  %10979 = vmatprep.subr.bf16.mxu0 %v11895_v63  ;;  %v11899_v5 = vld [vmem:[%s14922_s6 + $0x7e0] sm:$0xff]   ;;  %v10682_v14 = vpop.f32.mrb[53].mxu0  ;;  %s12083_s20 = smov [#allocation3]  }
 0x2eb   :  { %10782 = vmatpush3.bf16.msra.mxu1 %v11764_v58  ;;  %v11772_v7 = vld [vmem:[%s14922_s6 + $0x328] sm:$0xff]   ;;  %v11900_v9 = vld [vmem:[%s14922_s6 + $0x7a0] sm:$0xff]   ;;  %v11775_v10 = vld [vmem:[%s14922_s6 + $0x370] sm:$0xff]   ;;  %v14124_v15 = vadd.f32 %v10682_v14, %v10681_v12  ;;  %v10684_v17 = vpop.f32.mrb[54].mxu0  ;;  %v5599_v24 = vrot.slane %v5585_v16, %v12262_v42  ;;  %s9291_s21 = sshll.u32 %s12083_s20, 4  ;;  %s9292_s21 = int_to_ptr.vmem [resolvable:$true] %s9291_s21 }
 0x2ec   :  { %10783 = vmatprep.subr.bf16.mxu1 %v11767_v61  ;;  %v11903_v11 = vld [vmem:[%s14922_s6 + $0x7e8] sm:$0xff]   ;;  %v11776_v34 = vld [vmem:[%s14922_s6 + $0x330] sm:$0xff]   ;;  %v11779_v13 = vld [vmem:[%s14922_s6 + $0x378] sm:$0xff]   ;;  %v10685_v19 = vpop.f32.mrb[55].mxu0  ;;  %s12056_s22 = scalar_lea.vmem %s9292_s21, 32  ;;  %p12061_p1 = scmp.lt.s32.totalorder %s9292_s21, %s9292_s21 }
 0x2ed   :  { %10980 = vmatpush3.bf16.msra.mxu0 %v11896_v2  ;;  %v11904_v6 = vld [vmem:[%s14922_s6 + $0x7a8] sm:$0xff]   ;;  %v11907_v18 = vld [vmem:[%s14922_s6 + $0x7f0] sm:$0xff]   ;;  %v11780_v20 = vld [vmem:[%s14922_s6 + $0x338] sm:$0xff]   ;;  %v5601_v26 = vcombine.high %v5599_v24, %v5599_v24  ;;  %v14154_v30 = vrot.slane %v5599_v24, %v12262_v42  ;;  %v10725_v58 = vpop.f32.mrb[56].mxu0  ;;  %p12057_p0 = scmp.ne.s32.totalorder %s9292_s21, %s12056_s22  ;;  %p12062_p2 = scmp.lt.s32.totalorder %s12056_s22, %s12056_s22 }
 0x2ee   :  { %10981 = vmatprep.subr.bf16.mxu0 %v11899_v5  ;;  %v11908_v22 = vld [vmem:[%s14922_s6 + $0x7b0] sm:$0xff]   ;;  %v11784_v25 = vld [vmem:[%s14922_s6 + $0x440] sm:$0xff]   ;;  %v11911_v27 = vld [vmem:[%s14922_s6 + $0x7f8] sm:$0xff]   ;;  %v10726_v63 = vpop.f32.mrb[57].mxu0 }
 0x2ef   :  { %10784 = vmatpush3.bf16.msra.mxu1 %v11768_v0  ;;  %v11785_v28 = vld [vmem:[%s14922_s6 + $0x400] sm:$0xff]   ;;  %v14148_v29 = vrot.slane %v5601_v26, %v12262_v42  ;;  %v11913_v62 = vld [vmem:[%s14922_s6 + $0x7b8] sm:$0xff]   ;;  %v11788_v32 = vld [vmem:[%s14922_s6 + $0x448] sm:$0xff]   ;;  %v5631_v35 = vcombine.high %v14154_v30, %v14154_v30  ;;  %v14237_v0 = vadd.f32 %v10726_v63, %v10725_v58  ;;  %v10728_v2 = vpop.f32.mrb[58].mxu0  ;;  %p12063_p3 = por %p12062_p2, %p12061_p1 }
 0x2f0   :  { %10785 = vmatprep.subr.bf16.mxu1 %v11771_v4  ;;  %v11916_v36 = vld [vmem:[%s14922_s6 + $0x8c0] sm:$0xff]   ;;  %v11789_v37 = vld [vmem:[%s14922_s6 + $0x408] sm:$0xff]   ;;  %v11796_v43 = vld [vmem:[%s14922_s6 + $0x458] sm:$0xff]  }
 0x2f1   :  { %10982 = vmatpush3.bf16.msra.mxu0 %v11900_v9  ;;  %v5633_v33 = vcombine.high %v14148_v29, %v14148_v29  ;;  %v11917_v38 = vld [vmem:[%s14922_s6 + $0x880] sm:$0xff]   ;;  %v11920_v39 = vld [vmem:[%s14922_s6 + $0x8c8] sm:$0xff]   ;;  %v11924_v45 = vld [vmem:[%s14922_s6 + $0x8d0] sm:$0xff]   ;;  %p12064_p4 = pnand %p12063_p3, %p12057_p0 }
 0x2f2   :  { %10983 = vmatprep.subr.bf16.mxu0 %v11903_v11  ;;  %v11921_v40 = vld [vmem:[%s14922_s6 + $0x888] sm:$0xff]   ;;  %v11797_v47 = vld [vmem:[%s14922_s6 + $0x418] sm:$0xff]   ;;  %v11925_v49 = vld [vmem:[%s14922_s6 + $0x890] sm:$0xff]  }
 0x2f3   :  { %10786 = vmatpush3.bf16.msra.mxu1 %v11772_v7  ;;  %8779 = vmatprep.mubr.bf16.mxu0 %v5633_v33  ;;  %v11800_v50 = vld [vmem:[%s14922_s6 + $0x460] sm:$0xff]   ;;  %v11928_v51 = vld [vmem:[%s14922_s6 + $0x8d8] sm:$0xff]   ;;  %v11804_v60 = vld [vmem:[%s14922_s6 + $0x468] sm:$0xff]   ;;  %v10729_v7 = vpop.f32.mrb[59].mxu0 }
 0x2f4   :  { %10787 = vmatprep.subr.bf16.mxu1 %v11775_v10  ;;  %v11801_v52 = vld [vmem:[%s14922_s6 + $0x420] sm:$0xff]   ;;  %v11929_v53 = vld [vmem:[%s14922_s6 + $0x898] sm:$0xff]   ;;  %v11805_v54 = vld [vmem:[%s14922_s6 + $0x428] sm:$0xff]  }
 0x2f5   :  { %10984 = vmatpush3.bf16.msra.mxu0 %v11904_v6  ;;  %v11932_v8 = vld [vmem:[%s14922_s6 + $0x8e0] sm:$0xff]   ;;  %v11808_v55 = vld [vmem:[%s14922_s6 + $0x470] sm:$0xff]   ;;  %v11936_v56 = vld [vmem:[%s14922_s6 + $0x8e8] sm:$0xff]  }
 0x2f6   :  { %10985 = vmatprep.subr.bf16.mxu0 %v11907_v18  ;;  %v11933_v41 = vld [vmem:[%s14922_s6 + $0x8a0] sm:$0xff]   ;;  %v11809_v57 = vld [vmem:[%s14922_s6 + $0x430] sm:$0xff]   ;;  %v11937_v59 = vld [vmem:[%s14922_s6 + $0x8a8] sm:$0xff]  }
 0x2f7   :  { %10788 = vmatpush3.bf16.msra.mxu1 %v11776_v34  ;;  %v11812_v61 = vld [vmem:[%s14922_s6 + $0x478] sm:$0xff]   ;;  %v11940_v4 = vld [vmem:[%s14922_s6 + $0x8f0] sm:$0xff]   ;;  %v14245_v5 = vld [vmem:[%s14917_s1 + $0x20] sm:$0xff] }
 0x2f8   :  { %10789 = vmatprep.subr.bf16.mxu1 %v11779_v13  ;;  %v11813_v9 = vld [vmem:[%s14922_s6 + $0x438] sm:$0xff]   ;;  %v11941_v10 = vld [vmem:[%s14922_s6 + $0x8b0] sm:$0xff]   ;;  %v5641_v11 = vrot.slane %v14245_v5, %v12262_v42  ;;  %v11816_v34 = vld [vmem:[%s14922_s6 + $0x540] sm:$0xff]  }
 0x2f9   :  { %10986 = vmatpush3.bf16.msra.mxu0 %v11908_v22  ;;  %v11944_v6 = vld [vmem:[%s14922_s6 + $0x8f8] sm:$0xff]   ;;  %v11817_v13 = vld [vmem:[%s14922_s6 + $0x500] sm:$0xff]   ;;  %v11820_v18 = vld [vmem:[%s14922_s6 + $0x548] sm:$0xff]  }
 0x2fa   :  { %10987 = vmatprep.subr.bf16.mxu0 %v11911_v27  ;;  %v5649_v12 = vcombine.high %v5641_v11, %v5641_v11  ;;  %v11945_v16 = vld [vmem:[%s14922_s6 + $0x8b8] sm:$0xff]   ;;  %v14271_v17 = vrot.slane %v5641_v11, %v12262_v42  ;;  %v11948_v22 = vld [vmem:[%s14922_s6 + $0x9c0] sm:$0xff]   ;;  %v11821_v24 = vld [vmem:[%s14922_s6 + $0x508] sm:$0xff]  }
 0x2fb   :  { %10790 = vmatpush3.bf16.msra.mxu1 %v11780_v20  ;;  %v11952_v26 = vld [vmem:[%s14922_s6 + $0x9c8] sm:$0xff]   ;;  %v11957_v33 = vld [vmem:[%s14922_s6 + $0x990] sm:$0xff]   ;;  %v11849_v58 = vld [vmem:[%s14922_s6 + $0x640] sm:$0xff]  }
 0x2fc   :  { %10819 = vmatprep.subr.bf16.mxu1 %v11784_v25  ;;  %v14265_v14 = vrot.slane %v5649_v12, %v12262_v42  ;;  %v5679_v20 = vcombine.high %v14271_v17, %v14271_v17  ;;  %v11949_v25 = vld [vmem:[%s14922_s6 + $0x980] sm:$0xff]   ;;  %v11953_v27 = vld [vmem:[%s14922_s6 + $0x988] sm:$0xff]  }
 0x2fd   :  { %10988 = vmatpush3.bf16.msra.mxu0 %v11913_v62  ;;  %v11956_v62 = vld [vmem:[%s14922_s6 + $0x9d0] sm:$0xff]   ;;  %v11850_v63 = vld [vmem:[%s14922_s6 + $0x600] sm:$0xff]   ;;  %v11853_v7 = vld [vmem:[%s14922_s6 + $0x648] sm:$0xff]  }
 0x2fe   :  { %8420 = vmatmul.mubr.bf16.vlgmr.msra.gmra.mrb[64].mxu1 %v13700_v44  ;;  %v11792_v44 = vld [vmem:[%s14922_s6 + $0x450] sm:$0xff]   ;;  %11017 = vmatprep.subr.bf16.mxu0 %v11916_v36  ;;  %v5681_v19 = vcombine.high %v14265_v14, %v14265_v14  ;;  %v11960_v36 = vld [vmem:[%s14922_s6 + $0x9d8] sm:$0xff]   ;;  %v11981_v11 = vld [vmem:[%s14922_s6 + $0xac0] sm:$0xff]  }
 0x2ff   :  { %10820 = vmatpush3.bf16.msra.mxu1 %v11785_v28  ;;  %8499 = vmatprep.mubr.bf16.mxu1 %v13809_v21  ;;  %v11793_v21 = vld [vmem:[%s14922_s6 + $0x410] sm:$0xff]   ;;  %v11828_v28 = vld [vmem:[%s14922_s6 + $0x558] sm:$0xff]   ;;  %v11982_v12 = vld [vmem:[%s14922_s6 + $0xa80] sm:$0xff]  }
 0x300   :  { %10821 = vmatprep.subr.bf16.mxu1 %v11788_v32  ;;  %8780 = vmatmul.mubr.bf16.vlgmr.msra.gmra.mrb[80].mxu0 %v5631_v35  ;;  %v11829_v32 = vld [vmem:[%s14922_s6 + $0x518] sm:$0xff]   ;;  %v11832_v35 = vld [vmem:[%s14922_s6 + $0x560] sm:$0xff]  }
 0x301   :  { %11018 = vmatpush3.bf16.msra.mxu0 %v11917_v38  ;;  %8859 = vmatprep.mubr.bf16.mxu0 %v5681_v19  ;;  %v11961_v38 = vld [vmem:[%s14922_s6 + $0x998] sm:$0xff]  }
 0x302   :  { %11019 = vmatprep.subr.bf16.mxu0 %v11920_v39  ;;  %v11964_v39 = vld [vmem:[%s14922_s6 + $0x9e0] sm:$0xff]   ;;  %v11862_v19 = vld [vmem:[%s14922_s6 + $0x618] sm:$0xff]  }
 0x303   :  { %10822 = vmatpush3.bf16.msra.mxu1 %v11789_v37  ;;  %v11833_v37 = vld [vmem:[%s14922_s6 + $0x520] sm:$0xff]  }
 0x304   :  { %10823 = vmatprep.subr.bf16.mxu1 %v11792_v44  ;;  %v11836_v44 = vld [vmem:[%s14922_s6 + $0x568] sm:$0xff]  }
 0x305   :  { %11020 = vmatpush3.bf16.msra.mxu0 %v11921_v40  ;;  %v11965_v40 = vld [vmem:[%s14922_s6 + $0x9a0] sm:$0xff]  }
 0x306   :  { %11021 = vmatprep.subr.bf16.mxu0 %v11924_v45  ;;  %v11968_v45 = vld [vmem:[%s14922_s6 + $0x9e8] sm:$0xff]  }
 0x307   :  { %10824 = vmatpush3.bf16.msra.mxu1 %v11793_v21  ;;  %v11837_v21 = vld [vmem:[%s14922_s6 + $0x528] sm:$0xff]  }
 0x308   :  { %10825 = vmatprep.subr.bf16.mxu1 %v11796_v43  ;;  %v11840_v43 = vld [vmem:[%s14922_s6 + $0x570] sm:$0xff]  }
 0x309   :  { %11022 = vmatpush3.bf16.msra.mxu0 %v11925_v49  ;;  %v10769_v49 = vpop.f32.mrb[60].mxu0 }
 0x30a   :  { %11023 = vmatprep.subr.bf16.mxu0 %v11928_v51  ;;  %v11844_v51 = vld [vmem:[%s14922_s6 + $0x578] sm:$0xff]  }
 0x30b   :  { %10826 = vmatpush3.bf16.msra.mxu1 %v11797_v47  ;;  %v11841_v47 = vld [vmem:[%s14922_s6 + $0x530] sm:$0xff]  }
 0x30c   :  { %10827 = vmatprep.subr.bf16.mxu1 %v11800_v50  ;;  %v11969_v50 = vld [vmem:[%s14922_s6 + $0x9a8] sm:$0xff]  }
 0x30d   :  { %11024 = vmatpush3.bf16.msra.mxu0 %v11929_v53 }
 0x30e   :  { %11025 = vmatprep.subr.bf16.mxu0 %v11932_v8 }
 0x30f   :  { %10828 = vmatpush3.bf16.msra.mxu1 %v11801_v52  ;;  %v10770_v52 = vpop.f32.mrb[61].mxu0 }
 0x310   :  { %10829 = vmatprep.subr.bf16.mxu1 %v11804_v60  ;;  %v14354_v53 = vadd.f32 %v10770_v52, %v10769_v49  ;;  %v5634_v60 = vcombine.high %v14245_v5, %v14245_v5  ;;  %v10772_v8 = vpop.f32.mrb[62].mxu0 }
 0x311   :  { %11026 = vmatpush3.bf16.msra.mxu0 %v11933_v41  ;;  %v10773_v41 = vpop.f32.mrb[63].mxu0  ;;  %v12006_v8 = vld [vmem:[%s14922_s6 + $0xab0] sm:$0xff]  }
 0x312   :  { %11027 = vmatprep.subr.bf16.mxu0 %v11936_v56  ;;  %v11973_v56 = vld [vmem:[%s14922_s6 + $0x9b0] sm:$0xff]  }
 0x313   :  { %10830 = vmatpush3.bf16.msra.mxu1 %v11805_v54  ;;  %v11972_v54 = vld [vmem:[%s14922_s6 + $0x9f0] sm:$0xff]  }
 0x314   :  { %10831 = vmatprep.subr.bf16.mxu1 %v11808_v55  ;;  %v11845_v55 = vld [vmem:[%s14922_s6 + $0x538] sm:$0xff]  }
 0x315   :  { %11028 = vmatpush3.bf16.msra.mxu0 %v11937_v59 }
 0x316   :  { %11029 = vmatprep.subr.bf16.mxu0 %v11940_v4  ;;  %v11978_v4 = vld [vmem:[%s14922_s6 + $0x9b8] sm:$0xff]  }
 0x317   :  { %10832 = vmatpush3.bf16.msra.mxu1 %v11809_v57  ;;  %v5648_v57 = vrot.slane %v5634_v60, %v12262_v42  ;;  %v11878_v60 = vld [vmem:[%s14922_s6 + $0x638] sm:$0xff]  }
 0x318   :  { %10833 = vmatprep.subr.bf16.mxu1 %v11812_v61  ;;  %v11976_v61 = vld [vmem:[%s14922_s6 + $0x9f8] sm:$0xff]  }
 0x319   :  { %11030 = vmatpush3.bf16.msra.mxu0 %v11941_v10  ;;  %v5650_v59 = vcombine.high %v5648_v57, %v5648_v57  ;;  %v14384_v5 = vrot.slane %v5648_v57, %v12262_v42  ;;  %v12009_v57 = vld [vmem:[%s14922_s6 + $0xaf8] sm:$0xff]  }
 0x31a   :  { %11031 = vmatprep.subr.bf16.mxu0 %v11944_v6  ;;  %v11985_v6 = vld [vmem:[%s14922_s6 + $0xac8] sm:$0xff]  }
 0x31b   :  { %10834 = vmatpush3.bf16.msra.mxu1 %v11813_v9  ;;  %v14378_v2 = vrot.slane %v5650_v59, %v12262_v42  ;;  %v5680_v10 = vcombine.high %v14384_v5, %v14384_v5 }
 0x31c   :  { %10863 = vmatprep.subr.bf16.mxu1 %v11816_v34  ;;  %v11854_v34 = vld [vmem:[%s14922_s6 + $0x608] sm:$0xff]  }
 0x31d   :  { %11032 = vmatpush3.bf16.msra.mxu0 %v11945_v16  ;;  %v5682_v9 = vcombine.high %v14378_v2, %v14378_v2  ;;  %v11861_v16 = vld [vmem:[%s14922_s6 + $0x658] sm:$0xff]  }
 0x31e   :  { %8500 = vmatmul.mubr.bf16.vlgmr.msra.gmra.mrb[68].mxu1 %v13815_v23  ;;  %v11824_v23 = vld [vmem:[%s14922_s6 + $0x550] sm:$0xff]   ;;  %11061 = vmatprep.subr.bf16.mxu0 %v11948_v22  ;;  %v11865_v22 = vld [vmem:[%s14922_s6 + $0x660] sm:$0xff]  }
 0x31f   :  { %10864 = vmatpush3.bf16.msra.mxu1 %v11817_v13  ;;  %8579 = vmatprep.mubr.bf16.mxu1 %v13920_v1  ;;  %v11825_v1 = vld [vmem:[%s14922_s6 + $0x510] sm:$0xff]   ;;  %v11986_v13 = vld [vmem:[%s14922_s6 + $0xa88] sm:$0xff]  }
 0x320   :  { %10865 = vmatprep.subr.bf16.mxu1 %v11820_v18  ;;  %8860 = vmatmul.mubr.bf16.vlgmr.msra.gmra.mrb[84].mxu0 %v5679_v20  ;;  %v11989_v18 = vld [vmem:[%s14922_s6 + $0xad0] sm:$0xff]  }
 0x321   :  { %11062 = vmatpush3.bf16.msra.mxu0 %v11949_v25  ;;  %8939 = vmatprep.mubr.bf16.mxu0 %v5682_v9  ;;  %v11990_v20 = vld [vmem:[%s14922_s6 + $0xa90] sm:$0xff]   ;;  %v11866_v25 = vld [vmem:[%s14922_s6 + $0x620] sm:$0xff]  }
 0x322   :  { %11063 = vmatprep.subr.bf16.mxu0 %v11952_v26  ;;  %v11869_v26 = vld [vmem:[%s14922_s6 + $0x668] sm:$0xff]  }
 0x323   :  { %10866 = vmatpush3.bf16.msra.mxu1 %v11821_v24  ;;  %v11993_v24 = vld [vmem:[%s14922_s6 + $0xad8] sm:$0xff]  }
 0x324   :  { %10867 = vmatprep.subr.bf16.mxu1 %v11824_v23  ;;  %v11994_v23 = vld [vmem:[%s14922_s6 + $0xa98] sm:$0xff]  }
 0x325   :  { %11064 = vmatpush3.bf16.msra.mxu0 %v11953_v27  ;;  %v9697_v27 = vld [vmem:[%s14921_s5] ss:$0 sm:$0xff] }
 0x326   :  { %11065 = vmatprep.subr.bf16.mxu0 %v11956_v62  ;;  %v11998_v62 = vld [vmem:[%s14922_s6 + $0xaa0] sm:$0xff]  }
 0x327   :  { %10868 = vmatpush3.bf16.msra.mxu1 %v11825_v1  ;;  %v11997_v1 = vld [vmem:[%s14922_s6 + $0xae0] sm:$0xff]  }
 0x328   :  { %10869 = vmatprep.subr.bf16.mxu1 %v11828_v28  ;;  %v11870_v28 = vld [vmem:[%s14922_s6 + $0x628] sm:$0xff]  }
 0x329   :  { %11066 = vmatpush3.bf16.msra.mxu0 %v11957_v33 }
 0x32a   :  { %11067 = vmatprep.subr.bf16.mxu0 %v11960_v36 }
 0x32b   :  { %10870 = vmatpush3.bf16.msra.mxu1 %v11829_v32  ;;  %v11873_v32 = vld [vmem:[%s14922_s6 + $0x670] sm:$0xff]  }
 0x32c   :  { %10871 = vmatprep.subr.bf16.mxu1 %v11832_v35 }
 0x32d   :  { %11068 = vmatpush3.bf16.msra.mxu0 %v11961_v38 }
 0x32e   :  { %11069 = vmatprep.subr.bf16.mxu0 %v11964_v39  ;;  %v12002_v39 = vld [vmem:[%s14922_s6 + $0xaa8] sm:$0xff]  }
 0x32f   :  { %10872 = vmatpush3.bf16.msra.mxu1 %v11833_v37  ;;  %v12001_v37 = vld [vmem:[%s14922_s6 + $0xae8] sm:$0xff]  }
 0x330   :  { %10873 = vmatprep.subr.bf16.mxu1 %v11836_v44  ;;  %v11874_v44 = vld [vmem:[%s14922_s6 + $0x630] sm:$0xff]  }
 0x331   :  { %11070 = vmatpush3.bf16.msra.mxu0 %v11965_v40 }
 0x332   :  { %11071 = vmatprep.subr.bf16.mxu0 %v11968_v45 }
 0x333   :  { %10874 = vmatpush3.bf16.msra.mxu1 %v11837_v21 }
 0x334   :  { %10875 = vmatprep.subr.bf16.mxu1 %v11840_v43  ;;  %v11877_v43 = vld [vmem:[%s14922_s6 + $0x678] sm:$0xff]  }
 0x335   :  { %11072 = vmatpush3.bf16.msra.mxu0 %v11969_v50  ;;  %v10813_v45 = vpop.f32.mrb[64].mxu0  ;;  %v12005_v50 = vld [vmem:[%s14922_s6 + $0xaf0] sm:$0xff]  }
 0x336   :  { %11073 = vmatprep.subr.bf16.mxu0 %v11972_v54 }
 0x337   :  { %10876 = vmatpush3.bf16.msra.mxu1 %v11841_v47  ;;  %v10814_v47 = vpop.f32.mrb[65].mxu0 }
 0x338   :  { %10877 = vmatprep.subr.bf16.mxu1 %v11844_v51  ;;  %v14470_v49 = vadd.f32 %v10814_v47, %v10813_v45  ;;  %v14478_v51 = vld [vmem:[%s14917_s1 + $0x28] sm:$0xff]  ;;  %v10816_v52 = vpop.f32.mrb[66].mxu0  ;;  %v12037_v47 = vld [vmem:[%s14922_s6 + $0xbf0] sm:$0xff]  }
 0x339   :  { %11074 = vmatpush3.bf16.msra.mxu0 %v11973_v56  ;;  %v5690_v54 = vrot.slane %v14478_v51, %v12262_v42  ;;  %v10817_v41 = vpop.f32.mrb[67].mxu0 }
 0x33a   :  { %11075 = vmatprep.subr.bf16.mxu0 %v11976_v61  ;;  %v12010_v61 = vld [vmem:[%s14922_s6 + $0xab8] sm:$0xff]   ;;  %v11914_v41 = vld [vmem:[%s14922_s6 + $0x840] sm:$0xff]  }
 0x33b   :  { %10878 = vmatpush3.bf16.msra.mxu1 %v11845_v55  ;;  %v11881_v55 = vld [vmem:[%s14922_s6 + $0x740] sm:$0xff]   ;;  %v5698_v56 = vcombine.high %v5690_v54, %v5690_v54 }
 0x33c   :  { %10907 = vmatprep.subr.bf16.mxu1 %v11849_v58  ;;  %v11882_v58 = vld [vmem:[%s14922_s6 + $0x700] sm:$0xff]  }
 0x33d   :  { %11076 = vmatpush3.bf16.msra.mxu0 %v11978_v4  ;;  %v14498_v59 = vrot.slane %v5698_v56, %v12262_v42  ;;  %v11885_v4 = vld [vmem:[%s14922_s6 + $0x748] sm:$0xff]   ;;  %v11915_v56 = vld [vmem:[%s14922_s6 + $0x800] sm:$0xff]  }
 0x33e   :  { %8580 = vmatmul.mubr.bf16.vlgmr.msra.gmra.mrb[72].mxu1 %v13926_v3  ;;  %v11857_v3 = vld [vmem:[%s14922_s6 + $0x650] sm:$0xff]   ;;  %11105 = vmatprep.subr.bf16.mxu0 %v11981_v11  ;;  %v11886_v11 = vld [vmem:[%s14922_s6 + $0x708] sm:$0xff]  }
 0x33f   :  { %10908 = vmatpush3.bf16.msra.mxu1 %v11850_v63  ;;  %8659 = vmatprep.mubr.bf16.mxu1 %v14035_v46  ;;  %v11858_v46 = vld [vmem:[%s14922_s6 + $0x610] sm:$0xff]   ;;  %v14504_v63 = vrot.slane %v5690_v54, %v12262_v42 }
 0x340   :  { %10909 = vmatprep.subr.bf16.mxu1 %v11853_v7  ;;  %8940 = vmatmul.mubr.bf16.vlgmr.msra.gmra.mrb[88].mxu0 %v5680_v10  ;;  %v5730_v7 = vcombine.high %v14498_v59, %v14498_v59  ;;  %v12013_v10 = vld [vmem:[%s14922_s6 + $0xbc0] sm:$0xff]  }
 0x341   :  { %11106 = vmatpush3.bf16.msra.mxu0 %v11982_v12  ;;  %v5728_v9 = vcombine.high %v14504_v63, %v14504_v63  ;;  %v12017_v12 = vld [vmem:[%s14922_s6 + $0xbc8] sm:$0xff]  }
 0x342   :  { %11107 = vmatprep.subr.bf16.mxu0 %v11985_v6  ;;  %9019 = vmatprep.mubr.bf16.mxu0 %v5730_v7  ;;  %v11893_v6 = vld [vmem:[%s14922_s6 + $0x758] sm:$0xff]  }
 0x343   :  { %10910 = vmatpush3.bf16.msra.mxu1 %v11854_v34  ;;  %v12014_v34 = vld [vmem:[%s14922_s6 + $0xb80] sm:$0xff]  }
 0x344   :  { %10911 = vmatprep.subr.bf16.mxu1 %v11857_v3  ;;  %v12018_v3 = vld [vmem:[%s14922_s6 + $0xb88] sm:$0xff]  }
 0x345   :  { %11108 = vmatpush3.bf16.msra.mxu0 %v11986_v13  ;;  %v11894_v13 = vld [vmem:[%s14922_s6 + $0x718] sm:$0xff]  }
 0x346   :  { %11109 = vmatprep.subr.bf16.mxu0 %v11989_v18  ;;  %v11897_v18 = vld [vmem:[%s14922_s6 + $0x760] sm:$0xff]  }
 0x347   :  { %10912 = vmatpush3.bf16.msra.mxu1 %v11858_v46  ;;  %v12021_v46 = vld [vmem:[%s14922_s6 + $0xbd0] sm:$0xff]  }
 0x348   :  { %10913 = vmatprep.subr.bf16.mxu1 %v11861_v16  ;;  %v12022_v16 = vld [vmem:[%s14922_s6 + $0xb90] sm:$0xff]  }
 0x349   :  { %11110 = vmatpush3.bf16.msra.mxu0 %v11990_v20  ;;  %v11898_v20 = vld [vmem:[%s14922_s6 + $0x720] sm:$0xff]  }
 0x34a   :  { %11111 = vmatprep.subr.bf16.mxu0 %v11993_v24  ;;  %v11901_v24 = vld [vmem:[%s14922_s6 + $0x768] sm:$0xff]  }
 0x34b   :  { %10914 = vmatpush3.bf16.msra.mxu1 %v11862_v19  ;;  %v12025_v19 = vld [vmem:[%s14922_s6 + $0xbd8] sm:$0xff]  }
 0x34c   :  { %10915 = vmatprep.subr.bf16.mxu1 %v11865_v22  ;;  %v12026_v22 = vld [vmem:[%s14922_s6 + $0xb98] sm:$0xff]  }
 0x34d   :  { %11112 = vmatpush3.bf16.msra.mxu0 %v11994_v23  ;;  %v11902_v23 = vld [vmem:[%s14922_s6 + $0x728] sm:$0xff]  }
 0x34e   :  { %11113 = vmatprep.subr.bf16.mxu0 %v11997_v1  ;;  %v11905_v1 = vld [vmem:[%s14922_s6 + $0x770] sm:$0xff]  }
 0x34f   :  { %10916 = vmatpush3.bf16.msra.mxu1 %v11866_v25  ;;  %v12029_v25 = vld [vmem:[%s14922_s6 + $0xbe0] sm:$0xff]  }
 0x350   :  { %10917 = vmatprep.subr.bf16.mxu1 %v11869_v26  ;;  %v12030_v26 = vld [vmem:[%s14922_s6 + $0xba0] sm:$0xff]  }
 0x351   :  { %v4624_v33 = vpop.f32.mrb[48].mxu1  ;;  %11114 = vmatpush3.bf16.msra.mxu0 %v11998_v62 }
 0x352   :  { %v4625_v35 = vadd.f32 %v9697_v27, %v4624_v33  ;;  %v11212_v36 = vpop.f32.mrb[49].mxu1  ;;  %11115 = vmatprep.subr.bf16.mxu0 %v12001_v37  ;;  %v12034_v37 = vld [vmem:[%s14922_s6 + $0xba8] sm:$0xff]  }
 0x353   :  { %10918 = vmatpush3.bf16.msra.mxu1 %v11870_v28  ;;  %v4627_v38 = vpop.f32.mrb[50].mxu1  ;;  %v9701_v28 = vld [vmem:[%s14923_s7] ss:$0 sm:$0xff]  ;;  %v11906_v36 = vld [vmem:[%s14922_s6 + $0x730] sm:$0xff]  }
 0x354   :  { %v4630_v21 = vmax.f32 %v4625_v35, 0.0  ;;  %v11213_v40 = vpop.f32.mrb[51].mxu1  ;;  %10919 = vmatprep.subr.bf16.mxu1 %v11873_v32  ;;  %v12033_v32 = vld [vmem:[%s14922_s6 + $0xbe8] sm:$0xff]  }
 0x355   :  { %11116 = vmatpush3.bf16.msra.mxu0 %v12002_v39 }
 0x356   :  { %4632 = vst.msk [vmem:[#allocation3] sm:$0x3] %vm4631_vm2, %v4630_v21  ;;  %11117 = vmatprep.subr.bf16.mxu0 %v12005_v50 }
 0x357   :  { %10920 = vmatpush3.bf16.msra.mxu1 %v11874_v44  ;;  %v11909_v44 = vld [vmem:[%s14922_s6 + $0x778] sm:$0xff]   ;;  %v10857_v39 = vpop.f32.mrb[68].mxu0 }
 0x358   :  { %10921 = vmatprep.subr.bf16.mxu1 %v11877_v43  ;;  %v10858_v40 = vpop.f32.mrb[69].mxu0  ;;  %v5683_v43 = vcombine.high %v14478_v51, %v14478_v51 }
 0x359   :  { %11118 = vmatpush3.bf16.msra.mxu0 %v12006_v8  ;;  %v14592_v45 = vadd.f32 %v10858_v40, %v10857_v39  ;;  %v10860_v50 = vpop.f32.mrb[70].mxu0  ;;  %v12038_v8 = vld [vmem:[%s14922_s6 + $0xbb0] sm:$0xff]   ;;  %v11966_v39 = vld [vmem:[%s14922_s6 + $0x968] sm:$0xff]  }
 0x35a   :  { %11119 = vmatprep.subr.bf16.mxu0 %v12009_v57  ;;  %v5697_v51 = vrot.slane %v5683_v43, %v12262_v42  ;;  %v10861_v54 = vpop.f32.mrb[71].mxu0  ;;  %v11970_v40 = vld [vmem:[%s14922_s6 + $0x970] sm:$0xff]  }
 0x35b   :  { %10922 = vmatpush3.bf16.msra.mxu1 %v11878_v60  ;;  %v11910_v60 = vld [vmem:[%s14922_s6 + $0x738] sm:$0xff]  }
 0x35c   :  { %10951 = vmatprep.subr.bf16.mxu1 %v11881_v55  ;;  %v5699_v55 = vcombine.high %v5697_v51, %v5697_v51 }
 0x35d   :  { %11120 = vmatpush3.bf16.msra.mxu0 %v12010_v61  ;;  %v14621_v61 = vrot.slane %v5697_v51, %v12262_v42  ;;  %v11974_v51 = vld [vmem:[%s14922_s6 + $0x978] sm:$0xff]  }
 0x35e   :  { %8660 = vmatmul.mubr.bf16.vlgmr.msra.gmra.mrb[76].mxu1 %v14041_v48  ;;  %v11889_v48 = vld [vmem:[%s14922_s6 + $0x750] sm:$0xff]   ;;  %11149 = vmatprep.subr.bf16.mxu0 %v12013_v10  ;;  %v14615_v57 = vrot.slane %v5699_v55, %v12262_v42  ;;  %v11919_v10 = vld [vmem:[%s14922_s6 + $0x808] sm:$0xff]  }
 0x35f   :  { %10952 = vmatpush3.bf16.msra.mxu1 %v11882_v58  ;;  %8739 = vmatprep.mubr.bf16.mxu1 %v14148_v29  ;;  %v11890_v29 = vld [vmem:[%s14922_s6 + $0x710] sm:$0xff]   ;;  %v12043_v58 = vld [vmem:[%s14922_s6 + $0xbb8] sm:$0xff]  }
 0x360   :  { %10953 = vmatprep.subr.bf16.mxu1 %v11885_v4  ;;  %9020 = vmatmul.mubr.bf16.vlgmr.msra.gmra.mrb[92].mxu0 %v5728_v9  ;;  %v11918_v4 = vld [vmem:[%s14922_s6 + $0x848] sm:$0xff]   ;;  %v5731_v7 = vcombine.high %v14615_v57, %v14615_v57  ;;  %v5729_v9 = vcombine.high %v14621_v61, %v14621_v61 }
 0x361   :  { %11150 = vmatpush3.bf16.msra.mxu0 %v12014_v34  ;;  %v11927_v34 = vld [vmem:[%s14922_s6 + $0x818] sm:$0xff]  }
 0x362   :  { %11151 = vmatprep.subr.bf16.mxu0 %v12017_v12  ;;  %9099 = vmatprep.mubr.bf16.mxu0 %v5731_v7  ;;  %v11931_v12 = vld [vmem:[%s14922_s6 + $0x820] sm:$0xff]  }
 0x363   :  { %10954 = vmatpush3.bf16.msra.mxu1 %v11886_v11  ;;  %v11922_v11 = vld [vmem:[%s14922_s6 + $0x850] sm:$0xff]  }
 0x364   :  { %10955 = vmatprep.subr.bf16.mxu1 %v11889_v48  ;;  %v11930_v48 = vld [vmem:[%s14922_s6 + $0x860] sm:$0xff]  }
 0x365   :  { %11152 = vmatpush3.bf16.msra.mxu0 %v12018_v3  ;;  %v11935_v3 = vld [vmem:[%s14922_s6 + $0x828] sm:$0xff]  }
 0x366   :  { %11153 = vmatprep.subr.bf16.mxu0 %v12021_v46 }
 0x367   :  { %10956 = vmatpush3.bf16.msra.mxu1 %v11890_v29  ;;  %v11934_v29 = vld [vmem:[%s14922_s6 + $0x868] sm:$0xff]  }
 0x368   :  { %10957 = vmatprep.subr.bf16.mxu1 %v11893_v6  ;;  %v11938_v6 = vld [vmem:[%s14922_s6 + $0x870] sm:$0xff]  }
 0x369   :  { %11154 = vmatpush3.bf16.msra.mxu0 %v12022_v16 }
 0x36a   :  { %11155 = vmatprep.subr.bf16.mxu0 %v12025_v19  ;;  %v11939_v19 = vld [vmem:[%s14922_s6 + $0x830] sm:$0xff]  }
 0x36b   :  { %10958 = vmatpush3.bf16.msra.mxu1 %v11894_v13 }
 0x36c   :  { %10959 = vmatprep.subr.bf16.mxu1 %v11897_v18 }
 0x36d   :  { %11156 = vmatpush3.bf16.msra.mxu0 %v12026_v22  ;;  %v11942_v22 = vld [vmem:[%s14922_s6 + $0x878] sm:$0xff]  }
 0x36e   :  { %11157 = vmatprep.subr.bf16.mxu0 %v12029_v25 }
 0x36f   :  { %10960 = vmatpush3.bf16.msra.mxu1 %v11898_v20 }
 0x370   :  { %10961 = vmatprep.subr.bf16.mxu1 %v11901_v24 }
 0x371   :  { %v10659_v27 = vpop.f32.mrb[52].mxu1  ;;  %11158 = vmatpush3.bf16.msra.mxu0 %v12030_v26 }
 0x372   :  { %v10660_v62 = vpop.f32.mrb[53].mxu1  ;;  %11159 = vmatprep.subr.bf16.mxu0 %v12033_v32  ;;  %v11946_v32 = vld [vmem:[%s14922_s6 + $0x940] sm:$0xff]  }
 0x373   :  { %v10661_v33 = vadd.f32 %v10660_v62, %v10659_v27  ;;  %v10662_v35 = vpop.f32.mrb[54].mxu1  ;;  %10962 = vmatpush3.bf16.msra.mxu1 %v11902_v23 }
 0x374   :  { %v10663_v38 = vpop.f32.mrb[55].mxu1  ;;  %10963 = vmatprep.subr.bf16.mxu1 %v11905_v1  ;;  %v11951_v35 = vld [vmem:[%s14922_s6 + $0x908] sm:$0xff]  }
 0x375   :  { %v8182_v21 = vadd.f32 %v10661_v33, %v9701_v28  ;;  %11160 = vmatpush3.bf16.msra.mxu0 %v12034_v37  ;;  %v11943_v28 = vld [vmem:[%s14922_s6 + $0x838] sm:$0xff]   ;;  %v11947_v33 = vld [vmem:[%s14922_s6 + $0x900] sm:$0xff]   ;;  %v11955_v37 = vld [vmem:[%s14922_s6 + $0x910] sm:$0xff]  }
 0x376   :  { %11161 = vmatprep.subr.bf16.mxu0 %v12037_v47  ;;  %v11962_v38 = vld [vmem:[%s14922_s6 + $0x960] sm:$0xff]  }
 0x377   :  { %v8222_v52 = vadd.f32 %v14124_v15, %v8182_v21  ;;  %10964 = vmatpush3.bf16.msra.mxu1 %v11906_v36  ;;  %v12041_v15 = vld [vmem:[%s14922_s6 + $0xbf8] sm:$0xff]   ;;  %v10901_v24 = vpop.f32.mrb[72].mxu0  ;;  %v11954_v36 = vld [vmem:[%s14922_s6 + $0x950] sm:$0xff]   ;;  %v11967_v21 = vld [vmem:[%s14922_s6 + $0x928] sm:$0xff]  }
 0x378   :  { %10965 = vmatprep.subr.bf16.mxu1 %v11909_v44  ;;  %v10902_v23 = vpop.f32.mrb[73].mxu0  ;;  %v11963_v44 = vld [vmem:[%s14922_s6 + $0x920] sm:$0xff]  }
 0x379   :  { %11162 = vmatpush3.bf16.msra.mxu0 %v12038_v8  ;;  %v14671_v26 = vadd.f32 %v10902_v23, %v10901_v24  ;;  %v10904_v1 = vpop.f32.mrb[74].mxu0 }
 0x37a   :  { %11163 = vmatprep.subr.bf16.mxu0 %v12041_v15  ;;  %v10905_v62 = vpop.f32.mrb[75].mxu0 }
 0x37b   :  { %10966 = vmatpush3.bf16.msra.mxu1 %v11910_v60  ;;  %v11971_v60 = vld [vmem:[%s14922_s6 + $0x930] sm:$0xff]  }
 0x37c   :  { %10995 = vmatprep.subr.bf16.mxu1 %v11914_v41 }
 0x37d   :  { %11164 = vmatpush3.bf16.msra.mxu0 %v12043_v58 }
 0x37e   :  { %8740 = vmatmul.mubr.bf16.vlgmr.msra.gmra.mrb[80].mxu1 %v14154_v30  ;;  %11234 = vmatprep.subr.bf16.mxu0 %v12081_v31  ;;  %v11923_v30 = vld [vmem:[%s14922_s6 + $0x810] sm:$0xff]  }
 0x37f   :  { %10996 = vmatpush3.bf16.msra.mxu1 %v11915_v56  ;;  %8819 = vmatprep.mubr.bf16.mxu1 %v14265_v14  ;;  %v11926_v14 = vld [vmem:[%s14922_s6 + $0x858] sm:$0xff]  }
 0x380   :  { %10997 = vmatprep.subr.bf16.mxu1 %v11918_v4  ;;  %9100 = vmatmul.mubr.bf16.vlgmr.msra.gmra.mrb[96].mxu0 %v5729_v9  ;;  %v11975_v4 = vld [vmem:[%s14922_s6 + $0x938] sm:$0xff]   ;;  %v11979_v9 = vld [vmem:[%s14922_s6 + $0xa40] sm:$0xff]  }
 0x381   :  { %11238 = vmatprep.mubr.msk.bf16.mxu0 %vm12082_vm0, %v12081_v31 }
 0x383   :  { %10998 = vmatpush3.bf16.msra.mxu1 %v11919_v10  ;;  %v11980_v10 = vld [vmem:[%s14922_s6 + $0xa00] sm:$0xff]  }
 0x384   :  { %10999 = vmatprep.subr.bf16.mxu1 %v11922_v11  ;;  %v11984_v11 = vld [vmem:[%s14922_s6 + $0xa08] sm:$0xff]  }
 0x387   :  { %11000 = vmatpush3.bf16.msra.mxu1 %v11923_v30  ;;  %v11987_v30 = vld [vmem:[%s14922_s6 + $0xa50] sm:$0xff]  }
 0x388   :  { %11001 = vmatprep.subr.bf16.mxu1 %v11926_v14  ;;  %v11988_v14 = vld [vmem:[%s14922_s6 + $0xa10] sm:$0xff]  }
 0x38b   :  { %11002 = vmatpush3.bf16.msra.mxu1 %v11927_v34  ;;  %v11995_v34 = vld [vmem:[%s14922_s6 + $0xa60] sm:$0xff]  }
 0x38c   :  { %11003 = vmatprep.subr.bf16.mxu1 %v11930_v48  ;;  %v11996_v48 = vld [vmem:[%s14922_s6 + $0xa20] sm:$0xff]  }
 0x38f   :  { %11004 = vmatpush3.bf16.msra.mxu1 %v11931_v12  ;;  %v11999_v12 = vld [vmem:[%s14922_s6 + $0xa68] sm:$0xff]  }
 0x390   :  { %11005 = vmatprep.subr.bf16.mxu1 %v11934_v29  ;;  %v12000_v29 = vld [vmem:[%s14922_s6 + $0xa28] sm:$0xff]  }
 0x391   :  { %v10703_v46 = vpop.f32.mrb[56].mxu1 }
 0x392   :  { %v10704_v13 = vpop.f32.mrb[57].mxu1 }
 0x393   :  { %v10705_v16 = vadd.f32 %v10704_v13, %v10703_v46  ;;  %v10706_v18 = vpop.f32.mrb[58].mxu1  ;;  %11006 = vmatpush3.bf16.msra.mxu1 %v11935_v3  ;;  %v12003_v3 = vld [vmem:[%s14922_s6 + $0xa70] sm:$0xff]  }
 0x394   :  { %v10707_v20 = vpop.f32.mrb[59].mxu1  ;;  %11007 = vmatprep.subr.bf16.mxu1 %v11938_v6  ;;  %v12004_v18 = vld [vmem:[%s14922_s6 + $0xa30] sm:$0xff]  }
 0x395   :  { %v8262_v25 = vadd.f32 %v10705_v16, %v8222_v52  ;;  %v12007_v20 = vld [vmem:[%s14922_s6 + $0xa78] sm:$0xff]  }
 0x397   :  { %v8302_v27 = vadd.f32 %v14237_v0, %v8262_v25  ;;  %11008 = vmatpush3.bf16.msra.mxu1 %v11939_v19  ;;  %v11950_v0 = vld [vmem:[%s14922_s6 + $0x948] sm:$0xff]   ;;  %v10945_v54 = vpop.f32.mrb[76].mxu0 }
 0x398   :  { %11009 = vmatprep.subr.bf16.mxu1 %v11942_v22  ;;  %v10946_v55 = vpop.f32.mrb[77].mxu0 }
 0x399   :  { %v14724_v15 = vadd.f32 %v10946_v55, %v10945_v54  ;;  %v10948_v56 = vpop.f32.mrb[78].mxu0 }
 0x39a   :  { %v10949_v7 = vpop.f32.mrb[79].mxu0  ;;  %v12040_v56 = vld [vmem:[%s14922_s6 + $0xb38] sm:$0xff]  }
 0x39b   :  { %11010 = vmatpush3.bf16.msra.mxu1 %v11943_v28  ;;  %v12008_v28 = vld [vmem:[%s14922_s6 + $0xa38] sm:$0xff]   ;;  %v12046_v7 = vld [vmem:[%s14922_s6 + $0xc10] sm:$0xff]  }
 0x39c   :  { %11039 = vmatprep.subr.bf16.mxu1 %v11946_v32  ;;  %v12011_v32 = vld [vmem:[%s14922_s6 + $0xb40] sm:$0xff]  }
 0x39e   :  { %8820 = vmatmul.mubr.bf16.vlgmr.msra.gmra.mrb[84].mxu1 %v14271_v17  ;;  %v11958_v17 = vld [vmem:[%s14922_s6 + $0x958] sm:$0xff]  }
 0x39f   :  { %11040 = vmatpush3.bf16.msra.mxu1 %v11947_v33  ;;  %8899 = vmatprep.mubr.bf16.mxu1 %v14378_v2  ;;  %v11959_v2 = vld [vmem:[%s14922_s6 + $0x918] sm:$0xff]   ;;  %v12012_v33 = vld [vmem:[%s14922_s6 + $0xb00] sm:$0xff]  }
 0x3a0   :  { %11041 = vmatprep.subr.bf16.mxu1 %v11950_v0  ;;  %v12016_v0 = vld [vmem:[%s14922_s6 + $0xb08] sm:$0xff]  }
 0x3a3   :  { %11042 = vmatpush3.bf16.msra.mxu1 %v11951_v35  ;;  %v12019_v35 = vld [vmem:[%s14922_s6 + $0xb50] sm:$0xff]  }
 0x3a4   :  { %11043 = vmatprep.subr.bf16.mxu1 %v11954_v36  ;;  %v12020_v36 = vld [vmem:[%s14922_s6 + $0xb10] sm:$0xff]  }
 0x3a7   :  { %11044 = vmatpush3.bf16.msra.mxu1 %v11955_v37  ;;  %v12027_v37 = vld [vmem:[%s14922_s6 + $0xb60] sm:$0xff]  }
 0x3a8   :  { %11045 = vmatprep.subr.bf16.mxu1 %v11958_v17  ;;  %v12028_v17 = vld [vmem:[%s14922_s6 + $0xb20] sm:$0xff]  }
 0x3ab   :  { %11046 = vmatpush3.bf16.msra.mxu1 %v11959_v2  ;;  %v12031_v2 = vld [vmem:[%s14922_s6 + $0xb68] sm:$0xff]  }
 0x3ac   :  { %11047 = vmatprep.subr.bf16.mxu1 %v11962_v38  ;;  %v12032_v38 = vld [vmem:[%s14922_s6 + $0xb28] sm:$0xff]  }
 0x3af   :  { %11048 = vmatpush3.bf16.msra.mxu1 %v11963_v44  ;;  %v12035_v44 = vld [vmem:[%s14922_s6 + $0xb70] sm:$0xff]  }
 0x3b0   :  { %11049 = vmatprep.subr.bf16.mxu1 %v11966_v39 }
 0x3b1   :  { %v10747_v43 = vpop.f32.mrb[60].mxu1 }
 0x3b2   :  { %v10748_v47 = vpop.f32.mrb[61].mxu1 }
 0x3b3   :  { %v10749_v50 = vadd.f32 %v10748_v47, %v10747_v43  ;;  %v10750_v52 = vpop.f32.mrb[62].mxu1  ;;  %11050 = vmatpush3.bf16.msra.mxu1 %v11967_v21  ;;  %v12036_v47 = vld [vmem:[%s14922_s6 + $0xb30] sm:$0xff]  }
 0x3b4   :  { %v10751_v8 = vpop.f32.mrb[63].mxu1  ;;  %11051 = vmatprep.subr.bf16.mxu1 %v11970_v40  ;;  %v12039_v52 = vld [vmem:[%s14922_s6 + $0xb78] sm:$0xff]  }
 0x3b5   :  { %v8342_v41 = vadd.f32 %v10749_v50, %v8302_v27 }
 0x3b7   :  { %v8382_v58 = vadd.f32 %v14354_v53, %v8342_v41  ;;  %11052 = vmatpush3.bf16.msra.mxu1 %v11971_v60  ;;  %v11983_v53 = vld [vmem:[%s14922_s6 + $0xa48] sm:$0xff]  }
 0x3b8   :  { %11053 = vmatprep.subr.bf16.mxu1 %v11974_v51 }
 0x3bb   :  { %11054 = vmatpush3.bf16.msra.mxu1 %v11975_v4  ;;  %v12044_v4 = vld [vmem:[%s14922_s6 + $0xc00] sm:$0xff]  }
 0x3bc   :  { %11083 = vmatprep.subr.bf16.mxu1 %v11979_v9  ;;  %v12048_v9 = vld [vmem:[%s14922_s6 + $0xc20] sm:$0xff]  }
 0x3be   :  { %8900 = vmatmul.mubr.bf16.vlgmr.msra.gmra.mrb[88].mxu1 %v14384_v5  ;;  %v11991_v5 = vld [vmem:[%s14922_s6 + $0xa58] sm:$0xff]  }
 0x3bf   :  { %11084 = vmatpush3.bf16.msra.mxu1 %v11980_v10  ;;  %8979 = vmatprep.mubr.bf16.mxu1 %v14498_v59  ;;  %v11992_v59 = vld [vmem:[%s14922_s6 + $0xa18] sm:$0xff]   ;;  %v12049_v10 = vld [vmem:[%s14922_s6 + $0xc28] sm:$0xff]  }
 0x3c0   :  { %11085 = vmatprep.subr.bf16.mxu1 %v11983_v53 }
 0x3c3   :  { %11086 = vmatpush3.bf16.msra.mxu1 %v11984_v11 }
 0x3c4   :  { %11087 = vmatprep.subr.bf16.mxu1 %v11987_v30 }
 0x3c7   :  { %11088 = vmatpush3.bf16.msra.mxu1 %v11988_v14 }
 0x3c8   :  { %11089 = vmatprep.subr.bf16.mxu1 %v11991_v5  ;;  %v12050_v5 = vld [vmem:[%s14922_s6 + $0xc30] sm:$0xff]  }
 0x3cb   :  { %11090 = vmatpush3.bf16.msra.mxu1 %v11992_v59 }
 0x3cc   :  { %11091 = vmatprep.subr.bf16.mxu1 %v11995_v34 }
 0x3cf   :  { %11092 = vmatpush3.bf16.msra.mxu1 %v11996_v48 }
 0x3d0   :  { %11093 = vmatprep.subr.bf16.mxu1 %v11999_v12 }
 0x3d1   :  { %v10791_v6 = vpop.f32.mrb[64].mxu1 }
 0x3d2   :  { %v10792_v46 = vpop.f32.mrb[65].mxu1 }
 0x3d3   :  { %v10793_v13 = vadd.f32 %v10792_v46, %v10791_v6  ;;  %v10794_v16 = vpop.f32.mrb[66].mxu1  ;;  %11094 = vmatpush3.bf16.msra.mxu1 %v12000_v29  ;;  %v10989_v22 = vpop.f32.mrb[80].mxu0  ;;  %v12051_v46 = vld [vmem:[%s14922_s6 + $0xc38] sm:$0xff]  }
 0x3d4   :  { %v10795_v19 = vpop.f32.mrb[67].mxu1  ;;  %11095 = vmatprep.subr.bf16.mxu1 %v12003_v3  ;;  %v10990_v25 = vpop.f32.mrb[81].mxu0 }
 0x3d5   :  { %v8422_v24 = vadd.f32 %v10793_v13, %v8382_v58  ;;  %v14777_v23 = vadd.f32 %v10990_v25, %v10989_v22  ;;  %v10992_v1 = vpop.f32.mrb[82].mxu0  ;;  %v9702_v13 = vld.sshfl [vmem:[%s14917_s1 + $0x30] sm:$0x1 pattern:$0x75316420] }
 0x3d6   :  { %v10993_v62 = vpop.f32.mrb[83].mxu0 }
 0x3d7   :  { %v8462_v27 = vadd.f32 %v14470_v49, %v8422_v24  ;;  %11096 = vmatpush3.bf16.msra.mxu1 %v12004_v18  ;;  %v12015_v49 = vld [vmem:[%s14922_s6 + $0xb48] sm:$0xff]   ;;  %v5745_v18 = vrot.slane %v9702_v13, %v12262_v42  ;;  %v12054_v13 = vld [vmem:[%s14926_s10] sm:$0xff]  }
 0x3d8   :  { %11097 = vmatprep.subr.bf16.mxu1 %v12007_v20 }
 0x3db   :  { %11098 = vmatpush3.bf16.msra.mxu1 %v12008_v28 }
 0x3dc   :  { %11127 = vmatprep.subr.bf16.mxu1 %v12011_v32 }
 0x3de   :  { %8980 = vmatmul.mubr.bf16.vlgmr.msra.gmra.mrb[92].mxu1 %v14504_v63  ;;  %v12023_v63 = vld [vmem:[%s14922_s6 + $0xb58] sm:$0xff]  }
 0x3df   :  { %11128 = vmatpush3.bf16.msra.mxu1 %v12012_v33  ;;  %9059 = vmatprep.mubr.bf16.mxu1 %v14615_v57  ;;  %v12024_v57 = vld [vmem:[%s14922_s6 + $0xb18] sm:$0xff]  }
 0x3e0   :  { %11129 = vmatprep.subr.bf16.mxu1 %v12015_v49 }
 0x3e3   :  { %11130 = vmatpush3.bf16.msra.mxu1 %v12016_v0 }
 0x3e4   :  { %11131 = vmatprep.subr.bf16.mxu1 %v12019_v35 }
 0x3e7   :  { %11132 = vmatpush3.bf16.msra.mxu1 %v12020_v36 }
 0x3e8   :  { %11133 = vmatprep.subr.bf16.mxu1 %v12023_v63 }
 0x3eb   :  { %11134 = vmatpush3.bf16.msra.mxu1 %v12024_v57 }
 0x3ec   :  { %11135 = vmatprep.subr.bf16.mxu1 %v12027_v37 }
 0x3ef   :  { %11136 = vmatpush3.bf16.msra.mxu1 %v12028_v17  ;;  %v12052_v17 = vld [vmem:[%s14924_s8] sm:$0xff]  }
 0x3f0   :  { %11137 = vmatprep.subr.bf16.mxu1 %v12031_v2  ;;  %11235 = vmatpush3.bf16.msra.mxu0 %v12052_v17 }
 0x3f1   :  { %v10835_v39 = vpop.f32.mrb[68].mxu1  ;;  %11236 = vmatprep.subr.bf16.mxu0 %v12081_v31 }
 0x3f2   :  { %v10836_v21 = vpop.f32.mrb[69].mxu1 }
 0x3f3   :  { %v10837_v40 = vadd.f32 %v10836_v21, %v10835_v39  ;;  %v10838_v43 = vpop.f32.mrb[70].mxu1  ;;  %11138 = vmatpush3.bf16.msra.mxu1 %v12032_v38  ;;  %v11033_v60 = vpop.f32.mrb[84].mxu0 }
 0x3f4   :  { %v10839_v50 = vpop.f32.mrb[71].mxu1  ;;  %11139 = vmatprep.subr.bf16.mxu1 %v12035_v44  ;;  %v11034_v51 = vpop.f32.mrb[85].mxu0 }
 0x3f5   :  { %v8502_v8 = vadd.f32 %v10837_v40, %v8462_v27  ;;  %v14830_v54 = vadd.f32 %v11034_v51, %v11033_v60  ;;  %v11036_v41 = vpop.f32.mrb[86].mxu0 }
 0x3f6   :  { %v11037_v58 = vpop.f32.mrb[87].mxu0 }
 0x3f7   :  { %v8542_v55 = vadd.f32 %v14592_v45, %v8502_v8  ;;  %11140 = vmatpush3.bf16.msra.mxu1 %v12036_v47  ;;  %v12045_v45 = vld [vmem:[%s14922_s6 + $0xc08] sm:$0xff]  }
 0x3f8   :  { %11141 = vmatprep.subr.bf16.mxu1 %v12039_v52  ;;  %v12053_v47 = vld [vmem:[%s14924_s8 + $0x8] sm:$0xff]  }
 0x3f9   :  { %11237 = vmatpush3.bf16.msra.mxu0 %v12053_v47 }
 0x3fa   :  { %11242 = vmatprep.subr.bf16.mxu0 %v12081_v31 }
 0x3fb   :  { %11142 = vmatpush3.bf16.msra.mxu1 %v12040_v56 }
 0x3fc   :  { %11214 = vmatprep.subr.bf16.mxu1 %v12081_v31 }
 0x3fe   :  { %9060 = vmatmul.mubr.bf16.vlgmr.msra.gmra.mrb[96].mxu1 %v14621_v61  ;;  %v12047_v61 = vld [vmem:[%s14922_s6 + $0xc18] sm:$0xff]  }
 0x3ff   :  { %11215 = vmatpush3.bf16.msra.mxu1 %v12044_v4  ;;  %11230 = vmatprep.mubr.msk.bf16.mxu1 %vm12082_vm0, %v12081_v31 }
 0x400   :  { %11216 = vmatprep.subr.bf16.mxu1 %v12081_v31 }
 0x403   :  { %11217 = vmatpush3.bf16.msra.mxu1 %v12045_v45 }
 0x404   :  { %11218 = vmatprep.subr.bf16.mxu1 %v12081_v31 }
 0x407   :  { %11219 = vmatpush3.bf16.msra.mxu1 %v12046_v7 }
 0x408   :  { %11220 = vmatprep.subr.bf16.mxu1 %v12081_v31 }
 0x40b   :  { %11221 = vmatpush3.bf16.msra.mxu1 %v12047_v61 }
 0x40c   :  { %11222 = vmatprep.subr.bf16.mxu1 %v12081_v31 }
 0x40f   :  { %11223 = vmatpush3.bf16.msra.mxu1 %v12048_v9 }
 0x410   :  { %11224 = vmatprep.subr.bf16.mxu1 %v12081_v31 }
 0x411   :  { %v10879_v53 = vpop.f32.mrb[72].mxu1 }
 0x412   :  { %v10880_v11 = vpop.f32.mrb[73].mxu1 }
 0x413   :  { %v10881_v30 = vadd.f32 %v10880_v11, %v10879_v53  ;;  %v10882_v14 = vpop.f32.mrb[74].mxu1  ;;  %11225 = vmatpush3.bf16.msra.mxu1 %v12049_v10  ;;  %v11077_v34 = vpop.f32.mrb[88].mxu0 }
 0x414   :  { %v10883_v59 = vpop.f32.mrb[75].mxu1  ;;  %11226 = vmatprep.subr.bf16.mxu1 %v12081_v31  ;;  %v11078_v12 = vpop.f32.mrb[89].mxu0 }
 0x415   :  { %v8582_v48 = vadd.f32 %v10881_v30, %v8542_v55  ;;  %v11079_v29 = vadd.f32 %v11078_v12, %v11077_v34  ;;  %v11080_v3 = vpop.f32.mrb[90].mxu0 }
 0x416   :  { %v11081_v16 = vpop.f32.mrb[91].mxu0 }
 0x417   :  { %v8622_v6 = vadd.f32 %v14671_v26, %v8582_v48  ;;  %11227 = vmatpush3.bf16.msra.mxu1 %v12050_v5 }
 0x418   :  { %11228 = vmatprep.subr.bf16.mxu1 %v12081_v31 }
 0x41b   :  { %11229 = vmatpush3.bf16.msra.mxu1 %v12051_v46 }
 0x41e   :  { %11231 = vmatmul.mubr.bf16.vlgmr.msra.gmra.mrb[100].mxu1 %v5745_v18  ;;  %v12055_v18 = vld [vmem:[%s14926_s10 + $0x8] sm:$0xff]  }
 0x431   :  { %v10923_v19 = vpop.f32.mrb[76].mxu1 }
 0x432   :  { %v10924_v20 = vpop.f32.mrb[77].mxu1 }
 0x433   :  { %v10925_v22 = vadd.f32 %v10924_v20, %v10923_v19  ;;  %v10926_v26 = vpop.f32.mrb[78].mxu1  ;;  %v11121_v25 = vpop.f32.mrb[92].mxu0  ;;  %v10095_v19 = vld [vmem:[%s14925_s9] ss:$0 sm:$0xff] }
 0x434   :  { %v10927_v24 = vpop.f32.mrb[79].mxu1  ;;  %v11122_v27 = vpop.f32.mrb[93].mxu0 }
 0x435   :  { %v8662_v1 = vadd.f32 %v10925_v22, %v8622_v6  ;;  %v11123_v28 = vadd.f32 %v11122_v27, %v11121_v25  ;;  %v11124_v62 = vpop.f32.mrb[94].mxu0 }
 0x436   :  { %v11125_v33 = vpop.f32.mrb[95].mxu0 }
 0x437   :  { %v8702_v32 = vadd.f32 %v14724_v15, %v8662_v1 }
 0x451   :  { %v10967_v49 = vpop.f32.mrb[80].mxu1 }
 0x452   :  { %v10968_v0 = vpop.f32.mrb[81].mxu1 }
 0x453   :  { %v10969_v35 = vadd.f32 %v10968_v0, %v10967_v49  ;;  %v10970_v36 = vpop.f32.mrb[82].mxu1  ;;  %v11165_v63 = vpop.f32.mrb[96].mxu0 }
 0x454   :  { %v10971_v42 = vpop.f32.mrb[83].mxu1  ;;  %v11166_v37 = vpop.f32.mrb[97].mxu0 }
 0x455   :  { %v8742_v57 = vadd.f32 %v10969_v35, %v8702_v32  ;;  %v11167_v2 = vadd.f32 %v11166_v37, %v11165_v63  ;;  %v11168_v38 = vpop.f32.mrb[98].mxu0 }
 0x456   :  { %v11169_v39 = vpop.f32.mrb[99].mxu0 }
 0x457   :  { %v8782_v44 = vadd.f32 %v14777_v23, %v8742_v57 }
 0x471   :  { %v11011_v15 = vpop.f32.mrb[84].mxu1 }
 0x472   :  { %v11012_v21 = vpop.f32.mrb[85].mxu1 }
 0x473   :  { %v11013_v40 = vadd.f32 %v11012_v21, %v11011_v15  ;;  %v11014_v43 = vpop.f32.mrb[86].mxu1 }
 0x474   :  { %v11015_v50 = vpop.f32.mrb[87].mxu1 }
 0x475   :  { %v8822_v52 = vadd.f32 %v11013_v40, %v8782_v44 }
 0x477   :  { %v8862_v60 = vadd.f32 %v14830_v54, %v8822_v52 }
 0x491   :  { %v11055_v23 = vpop.f32.mrb[88].mxu1 }
 0x492   :  { %v11056_v8 = vpop.f32.mrb[89].mxu1 }
 0x493   :  { %v11057_v51 = vadd.f32 %v11056_v8, %v11055_v23  ;;  %v11058_v41 = vpop.f32.mrb[90].mxu1 }
 0x494   :  { %v11059_v55 = vpop.f32.mrb[91].mxu1 }
 0x495   :  { %v8902_v56 = vadd.f32 %v11057_v51, %v8862_v60 }
 0x497   :  { %v8942_v58 = vadd.f32 %v11079_v29, %v8902_v56 }
 0x4b1   :  { %v11099_v4 = vpop.f32.mrb[92].mxu1 }
 0x4b2   :  { %v11100_v45 = vpop.f32.mrb[93].mxu1 }
 0x4b3   :  { %v11101_v7 = vadd.f32 %v11100_v45, %v11099_v4  ;;  %v11102_v61 = vpop.f32.mrb[94].mxu1 }
 0x4b4   :  { %v11103_v9 = vpop.f32.mrb[95].mxu1 }
 0x4b5   :  { %v8982_v10 = vadd.f32 %v11101_v7, %v8942_v58 }
 0x4b7   :  { %v9022_v53 = vadd.f32 %v11123_v28, %v8982_v10 }
 0x4d1   :  { %v11143_v11 = vpop.f32.mrb[96].mxu1 }
 0x4d2   :  { %v11144_v30 = vpop.f32.mrb[97].mxu1 }
 0x4d3   :  { %v11145_v14 = vadd.f32 %v11144_v30, %v11143_v11  ;;  %v11146_v5 = vpop.f32.mrb[98].mxu1 }
 0x4d4   :  { %v11147_v59 = vpop.f32.mrb[99].mxu1 }
 0x4d5   :  { %v9062_v54 = vadd.f32 %v11145_v14, %v9022_v53 }
 0x4d7   :  { %v9102_v34 = vadd.f32 %v11167_v2, %v9062_v54 }
 0x4f1   :  { %v9141_v48 = vpop.f32.mrb[100].mxu1 }
 0x4f2   :  { %v9142_v12 = vadd.f32 %v9141_v48, %v9102_v34  ;;  %v11232_v3 = vpop.f32.mrb[101].mxu1 }
 0x4f3   :  { %v9144_v6 = vpop.f32.mrb[102].mxu1 }
 0x4f4   :  { %v9147_v46 = vmax.f32 %v9142_v12, 0.0  ;;  %v11233_v29 = vpop.f32.mrb[103].mxu1 }
 0x4f6   :  { %v9148_v16 = vpack.c.bf16 %v9147_v46, %v9147_v46 }
 0x4f8   :  { %11239 = vmatmul.mubr.msk.bf16.vlgmr.msra.gmra.mrb[100].mxu0 %vm4586_vm1, %v9148_v16 }
 0x4f9   :  { %11243 = vmatpush3.bf16.msra.mxu0 %v12054_v13  ;;  %11246 = vmatprep.mubr.msk.bf16.mxu0 %vm12082_vm0, %v12081_v31 }
 0x4fa   :  { %11244 = vmatprep.subr.bf16.mxu0 %v12081_v31 }
 0x4fd   :  { %11245 = vmatpush3.bf16.msra.mxu0 %v12055_v18 }
 0x5cb   :  { %v9209_v20 = vpop.f32.mrb[100].mxu0 }
 0x5cc   :  { %v9210_v22 = vadd.f32 %v10095_v19, %v9209_v20  ;;  %v11240_v26 = vpop.f32.mrb[101].mxu0 }
 0x5cd   :  { %v9212_v24 = vpop.f32.mrb[102].mxu0 }
 0x5ce   :  { %v9215_v25 = vmax.f32 %v9210_v22, 0.0  ;;  %v11241_v1 = vpop.f32.mrb[103].mxu0 }
 0x5d0   :  { %v9216_v27 = vpack.c.bf16 %v9215_v25, %v9215_v25 }
 0x5d2   :  { %11247 = vmatmul.mubr.msk.bf16.vlgmr.msra.gmra.mrb[104].mxu0 %vm4586_vm1, %v9216_v27 }
 0x5d3   :  { %12067 = shalt.err (!%p12064_p4)
}
 0x5d4   :  { %s12068_s7 = scalar_lea.hbm %s14928_s12, 32 }
 0x5d5   :  { %p12069_p5 = scmp.ne.s32.totalorder %s14928_s12, %s12068_s7  ;;  %p12072_p6 = scmp.lt.u32.totalorder %s12068_s7, %s14928_s12 }
 0x5d7   :  { %p12074_p7 = pnand %p12072_p6, %p12069_p5 }
 0x5d9   :  { %12077 = shalt.err (!%p12074_p7)
}
 0x5da   :  { %9294 = dma.vmem_to_hbm [thread:$0]  %s9292_s21, 32, %s14928_s12, [#allocation4]   ;;  %v10099_v31 = vld [vmem:[#allocation2] ss:$0 sm:$0xff]  ;;  %vm9283_vm3 = vcmask 1024  }
 0x6a5   :  { %v9277_v28 = vpop.f32.mrb[104].mxu0 }
 0x6a6   :  { %v9278_v62 = vadd.f32 %v10099_v31, %v9277_v28  ;;  %v11248_v32 = vpop.f32.mrb[105].mxu0 }
 0x6a7   :  { %v9280_v33 = vpop.f32.mrb[106].mxu0 }
 0x6a8   :  { %9284 = vst.msk [vmem:[%s14929_s13] sm:$0x3] %vm9283_vm3, %v9278_v62  ;;  %v11249_v49 = vpop.f32.mrb[107].mxu0 }
 0x6a9   :  { %12078 = dma.done.wait [#allocation4], 32  }
 0x6aa   :  { %12079 = vsyncadd [#allocation4], 4294967264 }
 0x6ab   :  { %9302 = vsyncpa [#allocation4], 1 }

</bundles_post_ra>
